<compile_context>
chip_gen: v7x
topology: tpu7x:2x2x1
jax: 0.10.0
libtpu: 0.0.40
codegen_flags: <defaults>
</compile_context>

<pallas_src>
import math

import jax
import jax.numpy as jnp
from jax.experimental import pallas as pl
from jax.experimental.pallas import tpu as pltpu

# ----------------------------- hyperparameters --------------------------------
USER_FEATURE_DIM = 12
EVENT_FEATURE_DIM = 20
GNN_HIDDEN_DIM = 32            # == TRANSFORMER_D_MODEL -> gnn_to_transformer_proj is None
NUM_GNN_LAYERS = 2
TRANSFORMER_D_MODEL = 32
TRANSFORMER_NHEAD = 4
TRANSFORMER_NUM_LAYERS = 2
DIM_FEEDFORWARD = 4 * TRANSFORMER_D_MODEL
NUM_USERS = 8
NUM_EVENTS = 10
NUM_SNAPSHOTS = 3              # 2 history + 1 target
NUM_EDGES = 24
NUM_PAIRS = 6                  # positive / negative user-event pairs
MAX_LEN = 50                   # positional encoding buffer length
BN_EPS = 1e-5
LN_EPS = 1e-5
COS_EPS = 1e-8

assert GNN_HIDDEN_DIM == TRANSFORMER_D_MODEL      # projection layer is None in the module
assert NUM_USERS & (NUM_USERS - 1) == 0           # in-kernel user-id extraction uses bitwise AND
assert TRANSFORMER_D_MODEL % TRANSFORMER_NHEAD == 0

_F32 = jnp.float32
_VMEM = pl.BlockSpec(memory_space=pltpu.MemorySpace.VMEM)
_SMEM = pl.BlockSpec(memory_space=pltpu.MemorySpace.SMEM)


# ============================ in-kernel math helpers ===========================

def _erf_approx(x):
    # Abramowitz & Stegun 7.1.26 rational approximation, |err| <= 1.5e-7.
    ax = jnp.abs(x)
    t = 1.0 / (1.0 + 0.3275911 * ax)
    poly = ((((1.061405429 * t - 1.453152027) * t + 1.421413741) * t
             - 0.284496736) * t + 0.254829592) * t
    y = 1.0 - poly * jnp.exp(-ax * ax)
    return jnp.where(x >= 0.0, y, -y)


def _gelu_exact(x):
    # TODO(synk): PyTorch F.gelu (exact, erf-based) approximated with A&S
    # 7.1.26 (abs err <= 1.5e-7) since a native erf lowering is not guaranteed.
    return 0.5 * x * (1.0 + _erf_approx(x * (1.0 / math.sqrt(2.0))))


def _layer_norm(x, g, b):
    mean = jnp.mean(x, axis=-1, keepdims=True)
    var = jnp.mean(jnp.square(x - mean), axis=-1, keepdims=True)
    return (x - mean) * jax.lax.rsqrt(var + LN_EPS) * g + b


# ====================== single fused forward-pass kernel =======================
#
# Snapshot slot layout inside the kernel (wrapper permutes to this order):
#   slot 0            = TARGET snapshot
#   slots 1..S-1      = history snapshots in temporal order
# so the transformer history slice and the target-event slice are both
# sublane-aligned static slices.

def _fused_kernel(edge_ref, pair_u_ref, pair_e_ref, user_x_ref, event_x_ref,
                  upw_ref, epw_ref, gnn_w_ref, gnn_vec_ref,
                  pe_ref, qkv_w_ref, qkv_b_ref, out_w_ref,
                  ff1_w_ref, ff1_b_ref, ff2_w_ref, t_vec_ref,
                  mlp_wu_ref, mlp_sc_ref, o_ref):
    S, Nu, Ne, E = NUM_SNAPSHOTS, NUM_USERS, NUM_EVENTS, NUM_EDGES
    SH = S - 1
    D = TRANSFORMER_D_MODEL
    NH = TRANSFORMER_NHEAD
    dh = D // NH
    SN = SH * Nu                                   # transformer sequence * batch = 16
    GNu, GNe, GE = S * Nu, S * Ne, S * E
    P2 = 2 * NUM_PAIRS

    # ---------------- block-diagonal mean adjacency (in-kernel scatter-free) ---
    edge_u = edge_ref[0:1, :]                      # (1, GE) global user index per edge
    edge_e = edge_ref[1:2, :]                      # (1, GE) global event index per edge
    onehot_u = jnp.where(
        jax.lax.broadcasted_iota(jnp.int32, (GNu, GE), 0) == edge_u, 1.0, 0.0)   # (GNu, GE)
    onehot_e = jnp.where(
        jax.lax.broadcasted_iota(jnp.int32, (GNe, GE), 0) == edge_e, 1.0, 0.0)   # (GNe, GE)
    cnt_ue = jax.lax.dot_general(onehot_u, onehot_e, (((1,), (1,)), ((), ())),
                                 preferred_element_type=_F32)                    # (GNu, GNe)
    cnt_eu = jax.lax.dot_general(onehot_e, onehot_u, (((1,), (1,)), ((), ())),
                                 preferred_element_type=_F32)                    # (GNe, GNu)
    adj_ue = cnt_ue / jnp.maximum(jnp.sum(cnt_ue, axis=-1, keepdims=True), 1.0)
    adj_eu = cnt_eu / jnp.maximum(jnp.sum(cnt_eu, axis=-1, keepdims=True), 1.0)

    # ---------------- GNN encoder, all snapshots batched ------------------------
    vec = gnn_vec_ref[...]                         # (2 + 2L, H) packed bias rows
    xu = jnp.dot(user_x_ref[...], upw_ref[...], preferred_element_type=_F32) + vec[0:1, :]
    xe = jnp.dot(event_x_ref[...], epw_ref[...], preferred_element_type=_F32) + vec[1:2, :]

    for l in range(NUM_GNN_LAYERS):
        # SAGEConv(mean) with eval-mode BatchNorm folded into the weights:
        #   relu( aggr @ (Wl*s) + x_dst @ (Wr*s) + (bl*s + shift) )
        u_wl, u_wr = gnn_w_ref[4 * l], gnn_w_ref[4 * l + 1]
        e_wl, e_wr = gnn_w_ref[4 * l + 2], gnn_w_ref[4 * l + 3]
        u_shift = vec[2 + 2 * l:3 + 2 * l, :]
        e_shift = vec[3 + 2 * l:4 + 2 * l, :]

        aggr_u = jnp.dot(adj_ue, xe, preferred_element_type=_F32)
        xu = jnp.maximum(jnp.dot(aggr_u, u_wl, preferred_element_type=_F32)
                         + jnp.dot(xu, u_wr, preferred_element_type=_F32)
                         + u_shift, 0.0)
        # event update uses the already-updated users (matches the reference).
        aggr_e = jnp.dot(adj_eu, xu, preferred_element_type=_F32)
        xe = jnp.maximum(jnp.dot(aggr_e, e_wl, preferred_element_type=_F32)
                         + jnp.dot(xe, e_wr, preferred_element_type=_F32)
                         + e_shift, 0.0)
        # dropout: identity (eval mode)

    # ---------------- transformer over history user embeddings -----------------
    hist = xu[Nu:GNu, :]                           # (SN, D): slots 1..S-1, aligned slice
    # gnn->transformer projection skipped: GNN_HIDDEN_DIM == TRANSFORMER_D_MODEL.
    x = hist + pe_ref[...]

    # constants built in-kernel (no extra DMA inputs)
    lane = jax.lax.broadcasted_iota(jnp.int32, (1, D), 1)
    head_masks = [jnp.where((lane >= h * dh) & (lane < (h + 1) * dh), 1.0, 0.0)
                  for h in range(NH)]
    ri = jax.lax.broadcasted_iota(jnp.int32, (SN, SN), 0)
    ci = jax.lax.broadcasted_iota(jnp.int32, (SN, SN), 1)
    same_user = jnp.bitwise_and(ri, Nu - 1) == jnp.bitwise_and(ci, Nu - 1)
    bias = jnp.where(same_user, 0.0, -1e9)         # attention only across a user's own sequence
    bias_all = jnp.concatenate([bias] * NH, axis=0)          # (NH*SN, SN)

    scale = 1.0 / math.sqrt(dh)
    for l in range(TRANSFORMER_NUM_LAYERS):
        tv = t_vec_ref[l]                                    # (6, D) packed vectors
        # fused QKV: one (SN, D) @ (D, 3D) matmul per layer
        qkv = jnp.dot(x, qkv_w_ref[l], preferred_element_type=_F32) + qkv_b_ref[l]
        q, k, v = qkv[:, 0:D], qkv[:, D:2 * D], qkv[:, 2 * D:3 * D]

        # head-batched attention: stack head-masked q along sublanes -> 2 MXU ops
        q_all = jnp.concatenate([q * head_masks[h] for h in range(NH)], axis=0)  # (NH*SN, D)
        s_all = jax.lax.dot_general(q_all, k, (((1,), (1,)), ((), ())),
                                    preferred_element_type=_F32) * scale + bias_all
        m = jnp.max(s_all, axis=-1, keepdims=True)
        p = jnp.exp(s_all - m)
        p = p / jnp.sum(p, axis=-1, keepdims=True)
        pv = jnp.dot(p, v, preferred_element_type=_F32)                          # (NH*SN, D)
        attn = head_masks[0] * pv[0:SN, :]
        for h in range(1, NH):
            attn = attn + head_masks[h] * pv[h * SN:(h + 1) * SN, :]

        attn = jnp.dot(attn, out_w_ref[l], preferred_element_type=_F32) + tv[0:1, :]
        x = _layer_norm(x + attn, tv[1:2, :], tv[2:3, :])                        # post-norm

        ff = jnp.dot(x, ff1_w_ref[l], preferred_element_type=_F32) + ff1_b_ref[l]
        ff = _gelu_exact(ff)
        ff = jnp.dot(ff, ff2_w_ref[l], preferred_element_type=_F32) + tv[3:4, :]
        x = _layer_norm(x + ff, tv[4:5, :], tv[5:6, :])
        # dropout: identity (eval mode)

    # ---------------- scoring head (lane-dense (1, 2P) output) -----------------
    user_emb = x[SN - Nu:SN, :]                    # last sequence position, (Nu, D)
    event_emb = xe[0:Ne, :]                        # target snapshot events (slot 0), (Ne, D)

    sel_u = jnp.where(jax.lax.broadcasted_iota(jnp.int32, (P2, Nu), 1)
                      == pair_u_ref[...], 1.0, 0.0)                               # (2P, Nu)
    sel_e = jnp.where(jax.lax.broadcasted_iota(jnp.int32, (P2, Ne), 1)
                      == pair_e_ref[...], 1.0, 0.0)                               # (2P, Ne)
    u = jnp.dot(sel_u, user_emb, preferred_element_type=_F32)                     # (2P, D)
    e = jnp.dot(sel_e, event_emb, preferred_element_type=_F32)                    # (2P, D)

    ones_row = jnp.ones((1, D), _F32)

    def row_sum(mat):  # (2P, D) -> (1, 2P) per-pair lane sum, kept lane-oriented
        return jax.lax.dot_general(ones_row, mat, (((1,), (1,)), ((), ())),
                                   preferred_element_type=_F32)

    num = row_sum(u * e)
    nrm_u = jnp.sqrt(row_sum(u * u))
    nrm_e = jnp.sqrt(row_sum(e * e))
    # torch.cosine_similarity: clamp EACH norm individually with eps.
    sim = num / (jnp.maximum(nrm_u, COS_EPS) * jnp.maximum(nrm_e, COS_EPS))

    uw = row_sum(u * mlp_wu_ref[...])              # user-embedding part of the MLP head
    w_sim = mlp_sc_ref[0, 0]
    b = mlp_sc_ref[0, 1]
    o_ref[...] = uw + sim * w_sim + b              # (1, 2P) lane-oriented store


def pallas_forward(params, edge_gl, pair_u, pair_e, user_x_flat, event_x_flat):
    args = (edge_gl, pair_u, pair_e, user_x_flat, event_x_flat,
            params['u_proj_w'], params['e_proj_w'],
            params['gnn_w'], params['gnn_vec'],
            params['pe'], params['qkv_w'], params['qkv_b'], params['out_w'],
            params['ff1_w'], params['ff1_b'], params['ff2_w'], params['t_vec'],
            params['mlp_wu'], params['mlp_sc'])
    in_specs = [_VMEM] * (len(args) - 1) + [_SMEM]          # mlp scalars live in SMEM
    return pl.pallas_call(
        _fused_kernel,
        out_shape=jax.ShapeDtypeStruct((1, 2 * NUM_PAIRS), _F32),
        in_specs=in_specs,
        out_specs=_VMEM,
    )(*args)


# ================================ JAX glue =====================================

def model_forward(params, user_x_all, event_x_all, edge_index_all,
                  pos_user, pos_event, neg_user, neg_event):
    S, Nu, Ne = NUM_SNAPSHOTS, NUM_USERS, NUM_EVENTS
    # kernel slot layout: slot 0 = target snapshot, slots 1.. = history (temporal order)
    orig_by_slot = [S - 1] + list(range(S - 1))
    slot_of_orig = jnp.asarray(list(range(1, S)) + [0], jnp.int32)[:, None]       # (S, 1)

    user_x_flat = jnp.concatenate([user_x_all[i] for i in orig_by_slot], axis=0)   # (S*Nu, Fu)
    event_x_flat = jnp.concatenate([event_x_all[i] for i in orig_by_slot], axis=0)  # (S*Ne, Fe)

    # global (block-diagonal) edge indices; the expensive scatter-add adjacency
    # build now happens in-kernel from these int32 vectors.
    edge_u_gl = edge_index_all[:, 0, :] + slot_of_orig * Nu
    edge_e_gl = edge_index_all[:, 1, :] + slot_of_orig * Ne
    edge_gl = jnp.stack([edge_u_gl.reshape(-1), edge_e_gl.reshape(-1)],
                        axis=0).astype(jnp.int32)                                  # (2, S*E)

    pair_u = jnp.concatenate([pos_user, neg_user]).astype(jnp.int32)[:, None]      # (2P, 1)
    pair_e = jnp.concatenate([pos_event, neg_event]).astype(jnp.int32)[:, None]

    scores = pallas_forward(params, edge_gl, pair_u, pair_e,
                            user_x_flat, event_x_flat)[0]                          # (2P,)
    p = pos_user.shape[0]
    return {'positive_scores': scores[:p], 'negative_scores': scores[p:]}


# ============================ parameter construction ===========================

def make_params(key):
    keys = iter(jax.random.split(key, 64))
    nk = lambda: next(keys)
    nrm = lambda shape, scale=0.1: scale * jax.random.normal(nk(), shape, _F32)

    H, D = GNN_HIDDEN_DIM, TRANSFORMER_D_MODEL
    L, TL = NUM_GNN_LAYERS, TRANSFORMER_NUM_LAYERS

    # ---- GNN: fold eval-mode BatchNorm (init running stats mean=0, var=1) into
    # ---- the SAGE weights; pack per-layer [u_wl, u_wr, e_wl, e_wr] into one slab.
    # TODO(synk): re-fold if trained running statistics are ever loaded.
    u_proj_w, u_proj_b = nrm((USER_FEATURE_DIM, H)), nrm((1, H))
    e_proj_w, e_proj_b = nrm((EVENT_FEATURE_DIM, H)), nrm((1, H))

    gnn_w_blocks, shift_rows = [], []
    for _ in range(L):
        u_wl, u_wr, e_wl, e_wr = nrm((H, H)), nrm((H, H)), nrm((H, H)), nrm((H, H))
        u_bl, e_bl = nrm((1, H)), nrm((1, H))
        u_gamma, u_beta = 1.0 + nrm((1, H)), nrm((1, H))
        e_gamma, e_beta = 1.0 + nrm((1, H)), nrm((1, H))
        u_s = u_gamma / jnp.sqrt(1.0 + BN_EPS)     # running_var = 1, running_mean = 0
        e_s = e_gamma / jnp.sqrt(1.0 + BN_EPS)
        gnn_w_blocks += [u_wl * u_s, u_wr * u_s, e_wl * e_s, e_wr * e_s]
        shift_rows += [u_bl * u_s + u_beta, e_bl * e_s + e_beta]
    gnn_w = jnp.stack(gnn_w_blocks, axis=0)                          # (4L, H, H)
    gnn_vec = jnp.concatenate([u_proj_b, e_proj_b] + shift_rows, 0)  # (2 + 2L, H)

    # ---- transformer: fused QKV weight/bias, packed per-layer vector slab ------
    qkv_w = nrm((TL, D, 3 * D))
    qkv_b = nrm((TL, 1, 3 * D))
    out_w = nrm((TL, D, D))
    ff1_w = nrm((TL, D, DIM_FEEDFORWARD))
    ff1_b = nrm((TL, 1, DIM_FEEDFORWARD))
    ff2_w = nrm((TL, DIM_FEEDFORWARD, D))
    t_rows = []
    for _ in range(TL):
        out_b = nrm((1, D))
        ln1g, ln1b = 1.0 + nrm((1, D)), nrm((1, D))
        ff2b = nrm((1, D))
        ln2g, ln2b = 1.0 + nrm((1, D)), nrm((1, D))
        t_rows.append(jnp.concatenate([out_b, ln1g, ln1b, ff2b, ln2g, ln2b], axis=0))
    t_vec = jnp.stack(t_rows, axis=0)                                # (TL, 6, D)

    # ---- positional encoding, pre-expanded to the flattened (S_hist*N, D) layout
    s_hist = NUM_SNAPSHOTS - 1
    position = jnp.arange(MAX_LEN, dtype=_F32)[:, None]
    div_term = jnp.exp(jnp.arange(0, D, 2, dtype=_F32) * (-math.log(10000.0) / D))
    ang = position * div_term
    pe = jnp.zeros((MAX_LEN, D), _F32)
    pe = pe.at[:, 0::2].set(jnp.sin(ang)).at[:, 1::2].set(jnp.cos(ang))
    pe_seq = jnp.broadcast_to(pe[:s_hist, None, :],
                              (s_hist, NUM_USERS, D)).reshape(s_hist * NUM_USERS, D)

    # ---- scoring MLP: Linear(D+1, 1) split into user-part row + [w_sim, bias] --
    mlp_wu = nrm((1, D))
    mlp_wsim = nrm((1, 1))
    mlp_b = nrm((1, 1))
    mlp_sc = jnp.concatenate([mlp_wsim, mlp_b], axis=1)              # (1, 2), SMEM scalars

    return {'u_proj_w': u_proj_w, 'e_proj_w': e_proj_w,
            'gnn_w': gnn_w, 'gnn_vec': gnn_vec,
            'pe': pe_seq, 'qkv_w': qkv_w, 'qkv_b': qkv_b, 'out_w': out_w,
            'ff1_w': ff1_w, 'ff1_b': ff1_b, 'ff2_w': ff2_w, 't_vec': t_vec,
            'mlp_wu': mlp_wu, 'mlp_sc': mlp_sc}


# ==================================== main =====================================

if __name__ == "__main__":
    root = jax.random.PRNGKey(0)
    pkey, dkey = jax.random.split(root)
    params = make_params(pkey)

    dkeys = iter(jax.random.split(dkey, 16))
    nk = lambda: next(dkeys)

    user_x_all = jax.random.normal(nk(), (NUM_SNAPSHOTS, NUM_USERS, USER_FEATURE_DIM), _F32)
    event_x_all = jax.random.normal(nk(), (NUM_SNAPSHOTS, NUM_EVENTS, EVENT_FEATURE_DIM), _F32)
    edge_u = jax.random.randint(nk(), (NUM_SNAPSHOTS, NUM_EDGES), 0, NUM_USERS, jnp.int32)
    edge_e = jax.random.randint(nk(), (NUM_SNAPSHOTS, NUM_EDGES), 0, NUM_EVENTS, jnp.int32)
    edge_index_all = jnp.stack([edge_u, edge_e], axis=1)             # (S, 2, E)

    pos_user = jax.random.randint(nk(), (NUM_PAIRS,), 0, NUM_USERS, jnp.int32)
    pos_event = jax.random.randint(nk(), (NUM_PAIRS,), 0, NUM_EVENTS, jnp.int32)
    neg_user = jax.random.randint(nk(), (NUM_PAIRS,), 0, NUM_USERS, jnp.int32)
    neg_event = jax.random.randint(nk(), (NUM_PAIRS,), 0, NUM_EVENTS, jnp.int32)

    fwd = jax.jit(model_forward)
    out = fwd(params, user_x_all, event_x_all, edge_index_all,
              pos_user, pos_event, neg_user, neg_event)
    jax.block_until_ready(out)

    assert out['positive_scores'].shape == (NUM_PAIRS,)
    assert out['negative_scores'].shape == (NUM_PAIRS,)
    assert bool(jnp.all(jnp.isfinite(out['positive_scores'])))
    assert bool(jnp.all(jnp.isfinite(out['negative_scores'])))
    # TODO(synk): training-mode dropout / batch-stat BatchNorm are stochastic /
    # stateful; eval-mode semantics are implemented instead.
    print("KERNEL_OK")
</pallas_src>

<mosaic_0001>
module attributes {stable_mosaic.version = 11 : i64} {
  func.func @_fused_kernel(%arg0: memref<2x72xi32, #tpu.memory_space<vmem>>, %arg1: memref<12x1xi32, #tpu.memory_space<vmem>>, %arg2: memref<12x1xi32, #tpu.memory_space<vmem>>, %arg3: memref<24x12xf32, #tpu.memory_space<vmem>>, %arg4: memref<30x20xf32, #tpu.memory_space<vmem>>, %arg5: memref<12x32xf32, #tpu.memory_space<vmem>>, %arg6: memref<20x32xf32, #tpu.memory_space<vmem>>, %arg7: memref<8x32x32xf32, #tpu.memory_space<vmem>>, %arg8: memref<6x32xf32, #tpu.memory_space<vmem>>, %arg9: memref<16x32xf32, #tpu.memory_space<vmem>>, %arg10: memref<2x32x96xf32, #tpu.memory_space<vmem>>, %arg11: memref<2x1x96xf32, #tpu.memory_space<vmem>>, %arg12: memref<2x32x32xf32, #tpu.memory_space<vmem>>, %arg13: memref<2x32x128xf32, #tpu.memory_space<vmem>>, %arg14: memref<2x1x128xf32, #tpu.memory_space<vmem>>, %arg15: memref<2x128x32xf32, #tpu.memory_space<vmem>>, %arg16: memref<2x6x32xf32, #tpu.memory_space<vmem>>, %arg17: memref<1x32xf32, #tpu.memory_space<vmem>>, %arg18: memref<1x2xf32, #tpu.memory_space<smem>>, %arg19: memref<1x12xf32, #tpu.memory_space<vmem>>) attributes {dimension_semantics = [], scalar_prefetch = 0 : i64, scratch_operands = 0 : i64, tpu.core_type = #tpu.core_type<tc>} {
    %c0 = arith.constant 0 : index
    %c0_0 = arith.constant 0 : index
    %0 = vector.load %arg0[%c0, %c0_0] : memref<2x72xi32, #tpu.memory_space<vmem>>, vector<1x72xi32>
    %c1 = arith.constant 1 : index
    %c0_1 = arith.constant 0 : index
    %1 = vector.load %arg0[%c1, %c0_1] : memref<2x72xi32, #tpu.memory_space<vmem>>, vector<1x72xi32>
    %2 = tpu.iota {dimensions = array<i32: 0>} : vector<24x72xi32>
    %3 = vector.broadcast %0 : vector<1x72xi32> to vector<24x72xi32>
    %4 = arith.cmpi eq, %2, %3 : vector<24x72xi32>
    %cst = arith.constant 1.000000e+00 : f32
    %cst_2 = arith.constant 0.000000e+00 : f32
    %5 = vector.broadcast %cst : f32 to vector<24x72xf32>
    %6 = vector.broadcast %cst_2 : f32 to vector<24x72xf32>
    %7 = arith.select %4, %5, %6 : vector<24x72xi1>, vector<24x72xf32>
    %8 = tpu.iota {dimensions = array<i32: 0>} : vector<30x72xi32>
    %9 = vector.broadcast %1 : vector<1x72xi32> to vector<30x72xi32>
    %10 = arith.cmpi eq, %8, %9 : vector<30x72xi32>
    %cst_3 = arith.constant 1.000000e+00 : f32
    %cst_4 = arith.constant 0.000000e+00 : f32
    %11 = vector.broadcast %cst_3 : f32 to vector<30x72xf32>
    %12 = vector.broadcast %cst_4 : f32 to vector<30x72xf32>
    %13 = arith.select %10, %11, %12 : vector<30x72xi1>, vector<30x72xf32>
    %cst_5 = arith.constant dense<0.000000e+00> : vector<24x30xf32>
    %14 = tpu.matmul %7, %13, %cst_5 {dimension_numbers = #tpu.dot_dimension_numbers<[1], [1], [0], [0], [0, 0, 1, 0], [], []>} : vector<24x72xf32>, vector<30x72xf32>, vector<24x30xf32> -> vector<24x30xf32>
    %cst_6 = arith.constant dense<0.000000e+00> : vector<30x24xf32>
    %15 = tpu.matmul %13, %7, %cst_6 {dimension_numbers = #tpu.dot_dimension_numbers<[1], [1], [0], [0], [0, 0, 1, 0], [], []>} : vector<30x72xf32>, vector<24x72xf32>, vector<30x24xf32> -> vector<30x24xf32>
    %cst_7 = arith.constant dense<0.000000e+00> : vector<24xf32>
    %16 = vector.multi_reduction <add>, %14, %cst_7 [1] : vector<24x30xf32> to vector<24xf32>
    %17 = vector.shape_cast %16 : vector<24xf32> to vector<24x1xf32>
    %cst_8 = arith.constant 1.000000e+00 : f32
    %18 = vector.broadcast %cst_8 : f32 to vector<24x1xf32>
    %19 = arith.maximumf %17, %18 : vector<24x1xf32>
    %20 = vector.broadcast %19 : vector<24x1xf32> to vector<24x30xf32>
    %21 = arith.divf %14, %20 : vector<24x30xf32>
    %cst_9 = arith.constant dense<0.000000e+00> : vector<30xf32>
    %22 = vector.multi_reduction <add>, %15, %cst_9 [1] : vector<30x24xf32> to vector<30xf32>
    %23 = vector.shape_cast %22 : vector<30xf32> to vector<30x1xf32>
    %cst_10 = arith.constant 1.000000e+00 : f32
    %24 = vector.broadcast %cst_10 : f32 to vector<30x1xf32>
    %25 = arith.maximumf %23, %24 : vector<30x1xf32>
    %26 = vector.broadcast %25 : vector<30x1xf32> to vector<30x24xf32>
    %27 = arith.divf %15, %26 : vector<30x24xf32>
    %c0_11 = arith.constant 0 : index
    %c0_12 = arith.constant 0 : index
    %28 = vector.load %arg8[%c0_11, %c0_12] : memref<6x32xf32, #tpu.memory_space<vmem>>, vector<6x32xf32>
    %c0_13 = arith.constant 0 : index
    %c0_14 = arith.constant 0 : index
    %29 = vector.load %arg3[%c0_13, %c0_14] : memref<24x12xf32, #tpu.memory_space<vmem>>, vector<24x12xf32>
    %c0_15 = arith.constant 0 : index
    %c0_16 = arith.constant 0 : index
    %30 = vector.load %arg5[%c0_15, %c0_16] : memref<12x32xf32, #tpu.memory_space<vmem>>, vector<12x32xf32>
    %cst_17 = arith.constant dense<0.000000e+00> : vector<24x32xf32>
    %31 = tpu.matmul %29, %30, %cst_17 {dimension_numbers = #tpu.dot_dimension_numbers<[1], [0], [0], [1], [0, 0, 1, 1], [], []>} : vector<24x12xf32>, vector<12x32xf32>, vector<24x32xf32> -> vector<24x32xf32>
    %32 = vector.extract_strided_slice %28 {offsets = [0, 0], sizes = [1, 32], strides = [1, 1]} : vector<6x32xf32> to vector<1x32xf32>
    %33 = vector.broadcast %32 : vector<1x32xf32> to vector<24x32xf32>
    %34 = arith.addf %31, %33 : vector<24x32xf32>
    %c0_18 = arith.constant 0 : index
    %c0_19 = arith.constant 0 : index
    %35 = vector.load %arg4[%c0_18, %c0_19] : memref<30x20xf32, #tpu.memory_space<vmem>>, vector<30x20xf32>
    %c0_20 = arith.constant 0 : index
    %c0_21 = arith.constant 0 : index
    %36 = vector.load %arg6[%c0_20, %c0_21] : memref<20x32xf32, #tpu.memory_space<vmem>>, vector<20x32xf32>
    %cst_22 = arith.constant dense<0.000000e+00> : vector<30x32xf32>
    %37 = tpu.matmul %35, %36, %cst_22 {dimension_numbers = #tpu.dot_dimension_numbers<[1], [0], [0], [1], [0, 0, 1, 1], [], []>} : vector<30x20xf32>, vector<20x32xf32>, vector<30x32xf32> -> vector<30x32xf32>
    %38 = vector.extract_strided_slice %28 {offsets = [1, 0], sizes = [1, 32], strides = [1, 1]} : vector<6x32xf32> to vector<1x32xf32>
    %39 = vector.broadcast %38 : vector<1x32xf32> to vector<30x32xf32>
    %40 = arith.addf %37, %39 : vector<30x32xf32>
    %c0_23 = arith.constant 0 : index
    %c0_24 = arith.constant 0 : index
    %c0_25 = arith.constant 0 : index
    %41 = vector.load %arg7[%c0_23, %c0_24, %c0_25] : memref<8x32x32xf32, #tpu.memory_space<vmem>>, vector<1x32x32xf32>
    %42 = vector.shape_cast %41 : vector<1x32x32xf32> to vector<32x32xf32>
    %c1_26 = arith.constant 1 : index
    %c0_27 = arith.constant 0 : index
    %c0_28 = arith.constant 0 : index
    %43 = vector.load %arg7[%c1_26, %c0_27, %c0_28] : memref<8x32x32xf32, #tpu.memory_space<vmem>>, vector<1x32x32xf32>
    %44 = vector.shape_cast %43 : vector<1x32x32xf32> to vector<32x32xf32>
    %c2 = arith.constant 2 : index
    %c0_29 = arith.constant 0 : index
    %c0_30 = arith.constant 0 : index
    %45 = vector.load %arg7[%c2, %c0_29, %c0_30] : memref<8x32x32xf32, #tpu.memory_space<vmem>>, vector<1x32x32xf32>
    %46 = vector.shape_cast %45 : vector<1x32x32xf32> to vector<32x32xf32>
    %c3 = arith.constant 3 : index
    %c0_31 = arith.constant 0 : index
    %c0_32 = arith.constant 0 : index
    %47 = vector.load %arg7[%c3, %c0_31, %c0_32] : memref<8x32x32xf32, #tpu.memory_space<vmem>>, vector<1x32x32xf32>
    %48 = vector.shape_cast %47 : vector<1x32x32xf32> to vector<32x32xf32>
    %49 = vector.extract_strided_slice %28 {offsets = [2, 0], sizes = [1, 32], strides = [1, 1]} : vector<6x32xf32> to vector<1x32xf32>
    %50 = vector.extract_strided_slice %28 {offsets = [3, 0], sizes = [1, 32], strides = [1, 1]} : vector<6x32xf32> to vector<1x32xf32>
    %cst_33 = arith.constant dense<0.000000e+00> : vector<24x32xf32>
    %51 = tpu.matmul %21, %40, %cst_33 {dimension_numbers = #tpu.dot_dimension_numbers<[1], [0], [0], [1], [0, 0, 1, 1], [], []>} : vector<24x30xf32>, vector<30x32xf32>, vector<24x32xf32> -> vector<24x32xf32>
    %cst_34 = arith.constant dense<0.000000e+00> : vector<24x32xf32>
    %52 = tpu.matmul %51, %42, %cst_34 {dimension_numbers = #tpu.dot_dimension_numbers<[1], [0], [0], [1], [0, 0, 1, 1], [], []>} : vector<24x32xf32>, vector<32x32xf32>, vector<24x32xf32> -> vector<24x32xf32>
    %cst_35 = arith.constant dense<0.000000e+00> : vector<24x32xf32>
    %53 = tpu.matmul %34, %44, %cst_35 {dimension_numbers = #tpu.dot_dimension_numbers<[1], [0], [0], [1], [0, 0, 1, 1], [], []>} : vector<24x32xf32>, vector<32x32xf32>, vector<24x32xf32> -> vector<24x32xf32>
    %54 = arith.addf %52, %53 : vector<24x32xf32>
    %55 = vector.broadcast %49 : vector<1x32xf32> to vector<24x32xf32>
    %56 = arith.addf %54, %55 : vector<24x32xf32>
    %cst_36 = arith.constant 0.000000e+00 : f32
    %57 = vector.broadcast %cst_36 : f32 to vector<24x32xf32>
    %58 = arith.maximumf %56, %57 : vector<24x32xf32>
    %cst_37 = arith.constant dense<0.000000e+00> : vector<30x32xf32>
    %59 = tpu.matmul %27, %58, %cst_37 {dimension_numbers = #tpu.dot_dimension_numbers<[1], [0], [0], [1], [0, 0, 1, 1], [], []>} : vector<30x24xf32>, vector<24x32xf32>, vector<30x32xf32> -> vector<30x32xf32>
    %cst_38 = arith.constant dense<0.000000e+00> : vector<30x32xf32>
    %60 = tpu.matmul %59, %46, %cst_38 {dimension_numbers = #tpu.dot_dimension_numbers<[1], [0], [0], [1], [0, 0, 1, 1], [], []>} : vector<30x32xf32>, vector<32x32xf32>, vector<30x32xf32> -> vector<30x32xf32>
    %cst_39 = arith.constant dense<0.000000e+00> : vector<30x32xf32>
    %61 = tpu.matmul %40, %48, %cst_39 {dimension_numbers = #tpu.dot_dimension_numbers<[1], [0], [0], [1], [0, 0, 1, 1], [], []>} : vector<30x32xf32>, vector<32x32xf32>, vector<30x32xf32> -> vector<30x32xf32>
    %62 = arith.addf %60, %61 : vector<30x32xf32>
    %63 = vector.broadcast %50 : vector<1x32xf32> to vector<30x32xf32>
    %64 = arith.addf %62, %63 : vector<30x32xf32>
    %cst_40 = arith.constant 0.000000e+00 : f32
    %65 = vector.broadcast %cst_40 : f32 to vector<30x32xf32>
    %66 = arith.maximumf %64, %65 : vector<30x32xf32>
    %c4 = arith.constant 4 : index
    %c0_41 = arith.constant 0 : index
    %c0_42 = arith.constant 0 : index
    %67 = vector.load %arg7[%c4, %c0_41, %c0_42] : memref<8x32x32xf32, #tpu.memory_space<vmem>>, vector<1x32x32xf32>
    %68 = vector.shape_cast %67 : vector<1x32x32xf32> to vector<32x32xf32>
    %c5 = arith.constant 5 : index
    %c0_43 = arith.constant 0 : index
    %c0_44 = arith.constant 0 : index
    %69 = vector.load %arg7[%c5, %c0_43, %c0_44] : memref<8x32x32xf32, #tpu.memory_space<vmem>>, vector<1x32x32xf32>
    %70 = vector.shape_cast %69 : vector<1x32x32xf32> to vector<32x32xf32>
    %c6 = arith.constant 6 : index
    %c0_45 = arith.constant 0 : index
    %c0_46 = arith.constant 0 : index
    %71 = vector.load %arg7[%c6, %c0_45, %c0_46] : memref<8x32x32xf32, #tpu.memory_space<vmem>>, vector<1x32x32xf32>
    %72 = vector.shape_cast %71 : vector<1x32x32xf32> to vector<32x32xf32>
    %c7 = arith.constant 7 : index
    %c0_47 = arith.constant 0 : index
    %c0_48 = arith.constant 0 : index
    %73 = vector.load %arg7[%c7, %c0_47, %c0_48] : memref<8x32x32xf32, #tpu.memory_space<vmem>>, vector<1x32x32xf32>
    %74 = vector.shape_cast %73 : vector<1x32x32xf32> to vector<32x32xf32>
    %75 = vector.extract_strided_slice %28 {offsets = [4, 0], sizes = [1, 32], strides = [1, 1]} : vector<6x32xf32> to vector<1x32xf32>
    %76 = vector.extract_strided_slice %28 {offsets = [5, 0], sizes = [1, 32], strides = [1, 1]} : vector<6x32xf32> to vector<1x32xf32>
    %cst_49 = arith.constant dense<0.000000e+00> : vector<24x32xf32>
    %77 = tpu.matmul %21, %66, %cst_49 {dimension_numbers = #tpu.dot_dimension_numbers<[1], [0], [0], [1], [0, 0, 1, 1], [], []>} : vector<24x30xf32>, vector<30x32xf32>, vector<24x32xf32> -> vector<24x32xf32>
    %cst_50 = arith.constant dense<0.000000e+00> : vector<24x32xf32>
    %78 = tpu.matmul %77, %68, %cst_50 {dimension_numbers = #tpu.dot_dimension_numbers<[1], [0], [0], [1], [0, 0, 1, 1], [], []>} : vector<24x32xf32>, vector<32x32xf32>, vector<24x32xf32> -> vector<24x32xf32>
    %cst_51 = arith.constant dense<0.000000e+00> : vector<24x32xf32>
    %79 = tpu.matmul %58, %70, %cst_51 {dimension_numbers = #tpu.dot_dimension_numbers<[1], [0], [0], [1], [0, 0, 1, 1], [], []>} : vector<24x32xf32>, vector<32x32xf32>, vector<24x32xf32> -> vector<24x32xf32>
    %80 = arith.addf %78, %79 : vector<24x32xf32>
    %81 = vector.broadcast %75 : vector<1x32xf32> to vector<24x32xf32>
    %82 = arith.addf %80, %81 : vector<24x32xf32>
    %cst_52 = arith.constant 0.000000e+00 : f32
    %83 = vector.broadcast %cst_52 : f32 to vector<24x32xf32>
    %84 = arith.maximumf %82, %83 : vector<24x32xf32>
    %cst_53 = arith.constant dense<0.000000e+00> : vector<30x32xf32>
    %85 = tpu.matmul %27, %84, %cst_53 {dimension_numbers = #tpu.dot_dimension_numbers<[1], [0], [0], [1], [0, 0, 1, 1], [], []>} : vector<30x24xf32>, vector<24x32xf32>, vector<30x32xf32> -> vector<30x32xf32>
    %cst_54 = arith.constant dense<0.000000e+00> : vector<30x32xf32>
    %86 = tpu.matmul %85, %72, %cst_54 {dimension_numbers = #tpu.dot_dimension_numbers<[1], [0], [0], [1], [0, 0, 1, 1], [], []>} : vector<30x32xf32>, vector<32x32xf32>, vector<30x32xf32> -> vector<30x32xf32>
    %cst_55 = arith.constant dense<0.000000e+00> : vector<30x32xf32>
    %87 = tpu.matmul %66, %74, %cst_55 {dimension_numbers = #tpu.dot_dimension_numbers<[1], [0], [0], [1], [0, 0, 1, 1], [], []>} : vector<30x32xf32>, vector<32x32xf32>, vector<30x32xf32> -> vector<30x32xf32>
    %88 = arith.addf %86, %87 : vector<30x32xf32>
    %89 = vector.broadcast %76 : vector<1x32xf32> to vector<30x32xf32>
    %90 = arith.addf %88, %89 : vector<30x32xf32>
    %cst_56 = arith.constant 0.000000e+00 : f32
    %91 = vector.broadcast %cst_56 : f32 to vector<30x32xf32>
    %92 = arith.maximumf %90, %91 : vector<30x32xf32>
    %93 = vector.extract_strided_slice %84 {offsets = [8, 0], sizes = [16, 32], strides = [1, 1]} : vector<24x32xf32> to vector<16x32xf32>
    %c0_57 = arith.constant 0 : index
    %c0_58 = arith.constant 0 : index
    %94 = vector.load %arg9[%c0_57, %c0_58] : memref<16x32xf32, #tpu.memory_space<vmem>>, vector<16x32xf32>
    %95 = arith.addf %93, %94 : vector<16x32xf32>
    %96 = tpu.iota {dimensions = array<i32: 1>} : vector<1x32xi32>
    %c0_i32 = arith.constant 0 : i32
    %97 = vector.broadcast %c0_i32 : i32 to vector<1x32xi32>
    %98 = arith.cmpi sge, %96, %97 : vector<1x32xi32>
    %c8_i32 = arith.constant 8 : i32
    %99 = vector.broadcast %c8_i32 : i32 to vector<1x32xi32>
    %100 = arith.cmpi slt, %96, %99 : vector<1x32xi32>
    %101 = arith.andi %98, %100 : vector<1x32xi1>
    %cst_59 = arith.constant 1.000000e+00 : f32
    %cst_60 = arith.constant 0.000000e+00 : f32
    %102 = vector.broadcast %cst_59 : f32 to vector<1x32xf32>
    %103 = vector.broadcast %cst_60 : f32 to vector<1x32xf32>
    %104 = arith.select %101, %102, %103 : vector<1x32xi1>, vector<1x32xf32>
    %c8_i32_61 = arith.constant 8 : i32
    %105 = vector.broadcast %c8_i32_61 : i32 to vector<1x32xi32>
    %106 = arith.cmpi sge, %96, %105 : vector<1x32xi32>
    %c16_i32 = arith.constant 16 : i32
    %107 = vector.broadcast %c16_i32 : i32 to vector<1x32xi32>
    %108 = arith.cmpi slt, %96, %107 : vector<1x32xi32>
    %109 = arith.andi %106, %108 : vector<1x32xi1>
    %cst_62 = arith.constant 1.000000e+00 : f32
    %cst_63 = arith.constant 0.000000e+00 : f32
    %110 = vector.broadcast %cst_62 : f32 to vector<1x32xf32>
    %111 = vector.broadcast %cst_63 : f32 to vector<1x32xf32>
    %112 = arith.select %109, %110, %111 : vector<1x32xi1>, vector<1x32xf32>
    %c16_i32_64 = arith.constant 16 : i32
    %113 = vector.broadcast %c16_i32_64 : i32 to vector<1x32xi32>
    %114 = arith.cmpi sge, %96, %113 : vector<1x32xi32>
    %c24_i32 = arith.constant 24 : i32
    %115 = vector.broadcast %c24_i32 : i32 to vector<1x32xi32>
    %116 = arith.cmpi slt, %96, %115 : vector<1x32xi32>
    %117 = arith.andi %114, %116 : vector<1x32xi1>
    %cst_65 = arith.constant 1.000000e+00 : f32
    %cst_66 = arith.constant 0.000000e+00 : f32
    %118 = vector.broadcast %cst_65 : f32 to vector<1x32xf32>
    %119 = vector.broadcast %cst_66 : f32 to vector<1x32xf32>
    %120 = arith.select %117, %118, %119 : vector<1x32xi1>, vector<1x32xf32>
    %c24_i32_67 = arith.constant 24 : i32
    %121 = vector.broadcast %c24_i32_67 : i32 to vector<1x32xi32>
    %122 = arith.cmpi sge, %96, %121 : vector<1x32xi32>
    %c32_i32 = arith.constant 32 : i32
    %123 = vector.broadcast %c32_i32 : i32 to vector<1x32xi32>
    %124 = arith.cmpi slt, %96, %123 : vector<1x32xi32>
    %125 = arith.andi %122, %124 : vector<1x32xi1>
    %cst_68 = arith.constant 1.000000e+00 : f32
    %cst_69 = arith.constant 0.000000e+00 : f32
    %126 = vector.broadcast %cst_68 : f32 to vector<1x32xf32>
    %127 = vector.broadcast %cst_69 : f32 to vector<1x32xf32>
    %128 = arith.select %125, %126, %127 : vector<1x32xi1>, vector<1x32xf32>
    %129 = tpu.iota {dimensions = array<i32: 0>} : vector<16x16xi32>
    %130 = tpu.iota {dimensions = array<i32: 1>} : vector<16x16xi32>
    %c7_i32 = arith.constant 7 : i32
    %131 = vector.broadcast %c7_i32 : i32 to vector<16x16xi32>
    %132 = arith.andi %129, %131 : vector<16x16xi32>
    %c7_i32_70 = arith.constant 7 : i32
    %133 = vector.broadcast %c7_i32_70 : i32 to vector<16x16xi32>
    %134 = arith.andi %130, %133 : vector<16x16xi32>
    %135 = arith.cmpi eq, %132, %134 : vector<16x16xi32>
    %cst_71 = arith.constant 0.000000e+00 : f32
    %cst_72 = arith.constant -1.000000e+09 : f32
    %136 = vector.broadcast %cst_71 : f32 to vector<16x16xf32>
    %137 = vector.broadcast %cst_72 : f32 to vector<16x16xf32>
    %138 = arith.select %135, %136, %137 : vector<16x16xi1>, vector<16x16xf32>
    %139 = tpu.concatenate %138, %138, %138, %138 in 0 : vector<16x16xf32>, vector<16x16xf32>, vector<16x16xf32>, vector<16x16xf32> -> vector<64x16xf32>
    %c0_73 = arith.constant 0 : index
    %c0_74 = arith.constant 0 : index
    %c0_75 = arith.constant 0 : index
    %140 = vector.load %arg16[%c0_73, %c0_74, %c0_75] : memref<2x6x32xf32, #tpu.memory_space<vmem>>, vector<1x6x32xf32>
    %141 = vector.shape_cast %140 : vector<1x6x32xf32> to vector<6x32xf32>
    %c0_76 = arith.constant 0 : index
    %c0_77 = arith.constant 0 : index
    %c0_78 = arith.constant 0 : index
    %142 = vector.load %arg10[%c0_76, %c0_77, %c0_78] : memref<2x32x96xf32, #tpu.memory_space<vmem>>, vector<1x32x96xf32>
    %143 = vector.shape_cast %142 : vector<1x32x96xf32> to vector<32x96xf32>
    %cst_79 = arith.constant dense<0.000000e+00> : vector<16x96xf32>
    %144 = tpu.matmul %95, %143, %cst_79 {dimension_numbers = #tpu.dot_dimension_numbers<[1], [0], [0], [1], [0, 0, 1, 1], [], []>} : vector<16x32xf32>, vector<32x96xf32>, vector<16x96xf32> -> vector<16x96xf32>
    %c0_80 = arith.constant 0 : index
    %c0_81 = arith.constant 0 : index
    %c0_82 = arith.constant 0 : index
    %145 = vector.load %arg11[%c0_80, %c0_81, %c0_82] : memref<2x1x96xf32, #tpu.memory_space<vmem>>, vector<1x1x96xf32>
    %146 = vector.shape_cast %145 : vector<1x1x96xf32> to vector<1x96xf32>
    %147 = vector.broadcast %146 : vector<1x96xf32> to vector<16x96xf32>
    %148 = arith.addf %144, %147 : vector<16x96xf32>
    %149 = vector.extract_strided_slice %148 {offsets = [0, 0], sizes = [16, 32], strides = [1, 1]} : vector<16x96xf32> to vector<16x32xf32>
    %150 = vector.extract_strided_slice %148 {offsets = [0, 32], sizes = [16, 32], strides = [1, 1]} : vector<16x96xf32> to vector<16x32xf32>
    %151 = vector.extract_strided_slice %148 {offsets = [0, 64], sizes = [16, 32], strides = [1, 1]} : vector<16x96xf32> to vector<16x32xf32>
    %152 = vector.broadcast %104 : vector<1x32xf32> to vector<16x32xf32>
    %153 = arith.mulf %149, %152 : vector<16x32xf32>
    %154 = vector.broadcast %112 : vector<1x32xf32> to vector<16x32xf32>
    %155 = arith.mulf %149, %154 : vector<16x32xf32>
    %156 = vector.broadcast %120 : vector<1x32xf32> to vector<16x32xf32>
    %157 = arith.mulf %149, %156 : vector<16x32xf32>
    %158 = vector.broadcast %128 : vector<1x32xf32> to vector<16x32xf32>
    %159 = arith.mulf %149, %158 : vector<16x32xf32>
    %160 = tpu.concatenate %153, %155, %157, %159 in 0 : vector<16x32xf32>, vector<16x32xf32>, vector<16x32xf32>, vector<16x32xf32> -> vector<64x32xf32>
    %cst_83 = arith.constant dense<0.000000e+00> : vector<64x16xf32>
    %161 = tpu.matmul %160, %150, %cst_83 {dimension_numbers = #tpu.dot_dimension_numbers<[1], [1], [0], [0], [0, 0, 1, 0], [], []>} : vector<64x32xf32>, vector<16x32xf32>, vector<64x16xf32> -> vector<64x16xf32>
    %cst_84 = arith.constant 0.353553385 : f32
    %162 = vector.broadcast %cst_84 : f32 to vector<64x16xf32>
    %163 = arith.mulf %161, %162 : vector<64x16xf32>
    %164 = arith.addf %163, %139 : vector<64x16xf32>
    %cst_85 = arith.constant dense<0xFF800000> : vector<64xf32>
    %165 = vector.multi_reduction <maximumf>, %164, %cst_85 [1] : vector<64x16xf32> to vector<64xf32>
    %166 = vector.shape_cast %165 : vector<64xf32> to vector<64x1xf32>
    %167 = vector.broadcast %166 : vector<64x1xf32> to vector<64x16xf32>
    %168 = arith.subf %164, %167 : vector<64x16xf32>
    %169 = math.exp %168 : vector<64x16xf32>
    %cst_86 = arith.constant dense<0.000000e+00> : vector<64xf32>
    %170 = vector.multi_reduction <add>, %169, %cst_86 [1] : vector<64x16xf32> to vector<64xf32>
    %171 = vector.shape_cast %170 : vector<64xf32> to vector<64x1xf32>
    %172 = vector.broadcast %171 : vector<64x1xf32> to vector<64x16xf32>
    %173 = arith.divf %169, %172 : vector<64x16xf32>
    %cst_87 = arith.constant dense<0.000000e+00> : vector<64x32xf32>
    %174 = tpu.matmul %173, %151, %cst_87 {dimension_numbers = #tpu.dot_dimension_numbers<[1], [0], [0], [1], [0, 0, 1, 1], [], []>} : vector<64x16xf32>, vector<16x32xf32>, vector<64x32xf32> -> vector<64x32xf32>
    %175 = vector.extract_strided_slice %174 {offsets = [0, 0], sizes = [16, 32], strides = [1, 1]} : vector<64x32xf32> to vector<16x32xf32>
    %176 = vector.broadcast %104 : vector<1x32xf32> to vector<16x32xf32>
    %177 = arith.mulf %176, %175 : vector<16x32xf32>
    %178 = vector.extract_strided_slice %174 {offsets = [16, 0], sizes = [16, 32], strides = [1, 1]} : vector<64x32xf32> to vector<16x32xf32>
    %179 = vector.broadcast %112 : vector<1x32xf32> to vector<16x32xf32>
    %180 = arith.mulf %179, %178 : vector<16x32xf32>
    %181 = arith.addf %177, %180 : vector<16x32xf32>
    %182 = vector.extract_strided_slice %174 {offsets = [32, 0], sizes = [16, 32], strides = [1, 1]} : vector<64x32xf32> to vector<16x32xf32>
    %183 = vector.broadcast %120 : vector<1x32xf32> to vector<16x32xf32>
    %184 = arith.mulf %183, %182 : vector<16x32xf32>
    %185 = arith.addf %181, %184 : vector<16x32xf32>
    %186 = vector.extract_strided_slice %174 {offsets = [48, 0], sizes = [16, 32], strides = [1, 1]} : vector<64x32xf32> to vector<16x32xf32>
    %187 = vector.broadcast %128 : vector<1x32xf32> to vector<16x32xf32>
    %188 = arith.mulf %187, %186 : vector<16x32xf32>
    %189 = arith.addf %185, %188 : vector<16x32xf32>
    %c0_88 = arith.constant 0 : index
    %c0_89 = arith.constant 0 : index
    %c0_90 = arith.constant 0 : index
    %190 = vector.load %arg12[%c0_88, %c0_89, %c0_90] : memref<2x32x32xf32, #tpu.memory_space<vmem>>, vector<1x32x32xf32>
    %191 = vector.shape_cast %190 : vector<1x32x32xf32> to vector<32x32xf32>
    %cst_91 = arith.constant dense<0.000000e+00> : vector<16x32xf32>
    %192 = tpu.matmul %189, %191, %cst_91 {dimension_numbers = #tpu.dot_dimension_numbers<[1], [0], [0], [1], [0, 0, 1, 1], [], []>} : vector<16x32xf32>, vector<32x32xf32>, vector<16x32xf32> -> vector<16x32xf32>
    %193 = vector.extract_strided_slice %141 {offsets = [0, 0], sizes = [1, 32], strides = [1, 1]} : vector<6x32xf32> to vector<1x32xf32>
    %194 = vector.broadcast %193 : vector<1x32xf32> to vector<16x32xf32>
    %195 = arith.addf %192, %194 : vector<16x32xf32>
    %196 = arith.addf %95, %195 : vector<16x32xf32>
    %197 = vector.extract_strided_slice %141 {offsets = [1, 0], sizes = [1, 32], strides = [1, 1]} : vector<6x32xf32> to vector<1x32xf32>
    %198 = vector.extract_strided_slice %141 {offsets = [2, 0], sizes = [1, 32], strides = [1, 1]} : vector<6x32xf32> to vector<1x32xf32>
    %cst_92 = arith.constant dense<0.000000e+00> : vector<16xf32>
    %199 = vector.multi_reduction <add>, %196, %cst_92 [1] : vector<16x32xf32> to vector<16xf32>
    %200 = vector.shape_cast %199 : vector<16xf32> to vector<16x1xf32>
    %cst_93 = arith.constant 3.200000e+01 : f32
    %201 = vector.broadcast %cst_93 : f32 to vector<16x1xf32>
    %202 = arith.divf %200, %201 : vector<16x1xf32>
    %203 = vector.broadcast %202 : vector<16x1xf32> to vector<16x32xf32>
    %204 = arith.subf %196, %203 : vector<16x32xf32>
    %205 = arith.mulf %204, %204 : vector<16x32xf32>
    %cst_94 = arith.constant dense<0.000000e+00> : vector<16xf32>
    %206 = vector.multi_reduction <add>, %205, %cst_94 [1] : vector<16x32xf32> to vector<16xf32>
    %207 = vector.shape_cast %206 : vector<16xf32> to vector<16x1xf32>
    %cst_95 = arith.constant 3.200000e+01 : f32
    %208 = vector.broadcast %cst_95 : f32 to vector<16x1xf32>
    %209 = arith.divf %207, %208 : vector<16x1xf32>
    %210 = vector.broadcast %202 : vector<16x1xf32> to vector<16x32xf32>
    %211 = arith.subf %196, %210 : vector<16x32xf32>
    %cst_96 = arith.constant 9.99999974E-6 : f32
    %212 = vector.broadcast %cst_96 : f32 to vector<16x1xf32>
    %213 = arith.addf %209, %212 : vector<16x1xf32>
    %214 = math.rsqrt %213 : vector<16x1xf32>
    %215 = vector.broadcast %214 : vector<16x1xf32> to vector<16x32xf32>
    %216 = arith.mulf %211, %215 : vector<16x32xf32>
    %217 = vector.broadcast %197 : vector<1x32xf32> to vector<16x32xf32>
    %218 = arith.mulf %216, %217 : vector<16x32xf32>
    %219 = vector.broadcast %198 : vector<1x32xf32> to vector<16x32xf32>
    %220 = arith.addf %218, %219 : vector<16x32xf32>
    %c0_97 = arith.constant 0 : index
    %c0_98 = arith.constant 0 : index
    %c0_99 = arith.constant 0 : index
    %221 = vector.load %arg13[%c0_97, %c0_98, %c0_99] : memref<2x32x128xf32, #tpu.memory_space<vmem>>, vector<1x32x128xf32>
    %222 = vector.shape_cast %221 : vector<1x32x128xf32> to vector<32x128xf32>
    %cst_100 = arith.constant dense<0.000000e+00> : vector<16x128xf32>
    %223 = tpu.matmul %220, %222, %cst_100 {dimension_numbers = #tpu.dot_dimension_numbers<[1], [0], [0], [1], [0, 0, 1, 1], [], []>} : vector<16x32xf32>, vector<32x128xf32>, vector<16x128xf32> -> vector<16x128xf32>
    %c0_101 = arith.constant 0 : index
    %c0_102 = arith.constant 0 : index
    %c0_103 = arith.constant 0 : index
    %224 = vector.load %arg14[%c0_101, %c0_102, %c0_103] : memref<2x1x128xf32, #tpu.memory_space<vmem>>, vector<1x1x128xf32>
    %225 = vector.shape_cast %224 : vector<1x1x128xf32> to vector<1x128xf32>
    %226 = vector.broadcast %225 : vector<1x128xf32> to vector<16x128xf32>
    %227 = arith.addf %223, %226 : vector<16x128xf32>
    %cst_104 = arith.constant 5.000000e-01 : f32
    %228 = vector.broadcast %cst_104 : f32 to vector<16x128xf32>
    %229 = arith.mulf %228, %227 : vector<16x128xf32>
    %cst_105 = arith.constant 0.707106769 : f32
    %230 = vector.broadcast %cst_105 : f32 to vector<16x128xf32>
    %231 = arith.mulf %227, %230 : vector<16x128xf32>
    %232 = math.absf %231 : vector<16x128xf32>
    %cst_106 = arith.constant 0.327591091 : f32
    %233 = vector.broadcast %cst_106 : f32 to vector<16x128xf32>
    %234 = arith.mulf %233, %232 : vector<16x128xf32>
    %cst_107 = arith.constant 1.000000e+00 : f32
    %235 = vector.broadcast %cst_107 : f32 to vector<16x128xf32>
    %236 = arith.addf %235, %234 : vector<16x128xf32>
    %cst_108 = arith.constant 1.000000e+00 : f32
    %237 = vector.broadcast %cst_108 : f32 to vector<16x128xf32>
    %238 = arith.divf %237, %236 : vector<16x128xf32>
    %cst_109 = arith.constant 1.06140542 : f32
    %239 = vector.broadcast %cst_109 : f32 to vector<16x128xf32>
    %240 = arith.mulf %239, %238 : vector<16x128xf32>
    %cst_110 = arith.constant 1.45315206 : f32
    %241 = vector.broadcast %cst_110 : f32 to vector<16x128xf32>
    %242 = arith.subf %240, %241 : vector<16x128xf32>
    %243 = arith.mulf %242, %238 : vector<16x128xf32>
    %cst_111 = arith.constant 1.42141378 : f32
    %244 = vector.broadcast %cst_111 : f32 to vector<16x128xf32>
    %245 = arith.addf %243, %244 : vector<16x128xf32>
    %246 = arith.mulf %245, %238 : vector<16x128xf32>
    %cst_112 = arith.constant 0.284496725 : f32
    %247 = vector.broadcast %cst_112 : f32 to vector<16x128xf32>
    %248 = arith.subf %246, %247 : vector<16x128xf32>
    %249 = arith.mulf %248, %238 : vector<16x128xf32>
    %cst_113 = arith.constant 0.254829586 : f32
    %250 = vector.broadcast %cst_113 : f32 to vector<16x128xf32>
    %251 = arith.addf %249, %250 : vector<16x128xf32>
    %252 = arith.mulf %251, %238 : vector<16x128xf32>
    %cst_114 = arith.constant 0.000000e+00 : f32
    %253 = vector.broadcast %cst_114 : f32 to vector<16x128xf32>
    %254 = arith.subf %253, %232 : vector<16x128xf32>
    %255 = arith.mulf %254, %232 : vector<16x128xf32>
    %256 = math.exp %255 : vector<16x128xf32>
    %257 = arith.mulf %252, %256 : vector<16x128xf32>
    %cst_115 = arith.constant 1.000000e+00 : f32
    %258 = vector.broadcast %cst_115 : f32 to vector<16x128xf32>
    %259 = arith.subf %258, %257 : vector<16x128xf32>
    %cst_116 = arith.constant 0.000000e+00 : f32
    %260 = vector.broadcast %cst_116 : f32 to vector<16x128xf32>
    %261 = arith.cmpf oge, %231, %260 : vector<16x128xf32>
    %cst_117 = arith.constant 0.000000e+00 : f32
    %262 = vector.broadcast %cst_117 : f32 to vector<16x128xf32>
    %263 = arith.subf %262, %259 : vector<16x128xf32>
    %264 = arith.select %261, %259, %263 : vector<16x128xi1>, vector<16x128xf32>
    %cst_118 = arith.constant 1.000000e+00 : f32
    %265 = vector.broadcast %cst_118 : f32 to vector<16x128xf32>
    %266 = arith.addf %265, %264 : vector<16x128xf32>
    %267 = arith.mulf %229, %266 : vector<16x128xf32>
    %c0_119 = arith.constant 0 : index
    %c0_120 = arith.constant 0 : index
    %c0_121 = arith.constant 0 : index
    %268 = vector.load %arg15[%c0_119, %c0_120, %c0_121] : memref<2x128x32xf32, #tpu.memory_space<vmem>>, vector<1x128x32xf32>
    %269 = vector.shape_cast %268 : vector<1x128x32xf32> to vector<128x32xf32>
    %cst_122 = arith.constant dense<0.000000e+00> : vector<16x32xf32>
    %270 = tpu.matmul %267, %269, %cst_122 {dimension_numbers = #tpu.dot_dimension_numbers<[1], [0], [0], [1], [0, 0, 1, 1], [], []>} : vector<16x128xf32>, vector<128x32xf32>, vector<16x32xf32> -> vector<16x32xf32>
    %271 = vector.extract_strided_slice %141 {offsets = [3, 0], sizes = [1, 32], strides = [1, 1]} : vector<6x32xf32> to vector<1x32xf32>
    %272 = vector.broadcast %271 : vector<1x32xf32> to vector<16x32xf32>
    %273 = arith.addf %270, %272 : vector<16x32xf32>
    %274 = arith.addf %220, %273 : vector<16x32xf32>
    %275 = vector.extract_strided_slice %141 {offsets = [4, 0], sizes = [1, 32], strides = [1, 1]} : vector<6x32xf32> to vector<1x32xf32>
    %276 = vector.extract_strided_slice %141 {offsets = [5, 0], sizes = [1, 32], strides = [1, 1]} : vector<6x32xf32> to vector<1x32xf32>
    %cst_123 = arith.constant dense<0.000000e+00> : vector<16xf32>
    %277 = vector.multi_reduction <add>, %274, %cst_123 [1] : vector<16x32xf32> to vector<16xf32>
    %278 = vector.shape_cast %277 : vector<16xf32> to vector<16x1xf32>
    %cst_124 = arith.constant 3.200000e+01 : f32
    %279 = vector.broadcast %cst_124 : f32 to vector<16x1xf32>
    %280 = arith.divf %278, %279 : vector<16x1xf32>
    %281 = vector.broadcast %280 : vector<16x1xf32> to vector<16x32xf32>
    %282 = arith.subf %274, %281 : vector<16x32xf32>
    %283 = arith.mulf %282, %282 : vector<16x32xf32>
    %cst_125 = arith.constant dense<0.000000e+00> : vector<16xf32>
    %284 = vector.multi_reduction <add>, %283, %cst_125 [1] : vector<16x32xf32> to vector<16xf32>
    %285 = vector.shape_cast %284 : vector<16xf32> to vector<16x1xf32>
    %cst_126 = arith.constant 3.200000e+01 : f32
    %286 = vector.broadcast %cst_126 : f32 to vector<16x1xf32>
    %287 = arith.divf %285, %286 : vector<16x1xf32>
    %288 = vector.broadcast %280 : vector<16x1xf32> to vector<16x32xf32>
    %289 = arith.subf %274, %288 : vector<16x32xf32>
    %cst_127 = arith.constant 9.99999974E-6 : f32
    %290 = vector.broadcast %cst_127 : f32 to vector<16x1xf32>
    %291 = arith.addf %287, %290 : vector<16x1xf32>
    %292 = math.rsqrt %291 : vector<16x1xf32>
    %293 = vector.broadcast %292 : vector<16x1xf32> to vector<16x32xf32>
    %294 = arith.mulf %289, %293 : vector<16x32xf32>
    %295 = vector.broadcast %275 : vector<1x32xf32> to vector<16x32xf32>
    %296 = arith.mulf %294, %295 : vector<16x32xf32>
    %297 = vector.broadcast %276 : vector<1x32xf32> to vector<16x32xf32>
    %298 = arith.addf %296, %297 : vector<16x32xf32>
    %c1_128 = arith.constant 1 : index
    %c0_129 = arith.constant 0 : index
    %c0_130 = arith.constant 0 : index
    %299 = vector.load %arg16[%c1_128, %c0_129, %c0_130] : memref<2x6x32xf32, #tpu.memory_space<vmem>>, vector<1x6x32xf32>
    %300 = vector.shape_cast %299 : vector<1x6x32xf32> to vector<6x32xf32>
    %c1_131 = arith.constant 1 : index
    %c0_132 = arith.constant 0 : index
    %c0_133 = arith.constant 0 : index
    %301 = vector.load %arg10[%c1_131, %c0_132, %c0_133] : memref<2x32x96xf32, #tpu.memory_space<vmem>>, vector<1x32x96xf32>
    %302 = vector.shape_cast %301 : vector<1x32x96xf32> to vector<32x96xf32>
    %cst_134 = arith.constant dense<0.000000e+00> : vector<16x96xf32>
    %303 = tpu.matmul %298, %302, %cst_134 {dimension_numbers = #tpu.dot_dimension_numbers<[1], [0], [0], [1], [0, 0, 1, 1], [], []>} : vector<16x32xf32>, vector<32x96xf32>, vector<16x96xf32> -> vector<16x96xf32>
    %c1_135 = arith.constant 1 : index
    %c0_136 = arith.constant 0 : index
    %c0_137 = arith.constant 0 : index
    %304 = vector.load %arg11[%c1_135, %c0_136, %c0_137] : memref<2x1x96xf32, #tpu.memory_space<vmem>>, vector<1x1x96xf32>
    %305 = vector.shape_cast %304 : vector<1x1x96xf32> to vector<1x96xf32>
    %306 = vector.broadcast %305 : vector<1x96xf32> to vector<16x96xf32>
    %307 = arith.addf %303, %306 : vector<16x96xf32>
    %308 = vector.extract_strided_slice %307 {offsets = [0, 0], sizes = [16, 32], strides = [1, 1]} : vector<16x96xf32> to vector<16x32xf32>
    %309 = vector.extract_strided_slice %307 {offsets = [0, 32], sizes = [16, 32], strides = [1, 1]} : vector<16x96xf32> to vector<16x32xf32>
    %310 = vector.extract_strided_slice %307 {offsets = [0, 64], sizes = [16, 32], strides = [1, 1]} : vector<16x96xf32> to vector<16x32xf32>
    %311 = vector.broadcast %104 : vector<1x32xf32> to vector<16x32xf32>
    %312 = arith.mulf %308, %311 : vector<16x32xf32>
    %313 = vector.broadcast %112 : vector<1x32xf32> to vector<16x32xf32>
    %314 = arith.mulf %308, %313 : vector<16x32xf32>
    %315 = vector.broadcast %120 : vector<1x32xf32> to vector<16x32xf32>
    %316 = arith.mulf %308, %315 : vector<16x32xf32>
    %317 = vector.broadcast %128 : vector<1x32xf32> to vector<16x32xf32>
    %318 = arith.mulf %308, %317 : vector<16x32xf32>
    %319 = tpu.concatenate %312, %314, %316, %318 in 0 : vector<16x32xf32>, vector<16x32xf32>, vector<16x32xf32>, vector<16x32xf32> -> vector<64x32xf32>
    %cst_138 = arith.constant dense<0.000000e+00> : vector<64x16xf32>
    %320 = tpu.matmul %319, %309, %cst_138 {dimension_numbers = #tpu.dot_dimension_numbers<[1], [1], [0], [0], [0, 0, 1, 0], [], []>} : vector<64x32xf32>, vector<16x32xf32>, vector<64x16xf32> -> vector<64x16xf32>
    %cst_139 = arith.constant 0.353553385 : f32
    %321 = vector.broadcast %cst_139 : f32 to vector<64x16xf32>
    %322 = arith.mulf %320, %321 : vector<64x16xf32>
    %323 = arith.addf %322, %139 : vector<64x16xf32>
    %cst_140 = arith.constant dense<0xFF800000> : vector<64xf32>
    %324 = vector.multi_reduction <maximumf>, %323, %cst_140 [1] : vector<64x16xf32> to vector<64xf32>
    %325 = vector.shape_cast %324 : vector<64xf32> to vector<64x1xf32>
    %326 = vector.broadcast %325 : vector<64x1xf32> to vector<64x16xf32>
    %327 = arith.subf %323, %326 : vector<64x16xf32>
    %328 = math.exp %327 : vector<64x16xf32>
    %cst_141 = arith.constant dense<0.000000e+00> : vector<64xf32>
    %329 = vector.multi_reduction <add>, %328, %cst_141 [1] : vector<64x16xf32> to vector<64xf32>
    %330 = vector.shape_cast %329 : vector<64xf32> to vector<64x1xf32>
    %331 = vector.broadcast %330 : vector<64x1xf32> to vector<64x16xf32>
    %332 = arith.divf %328, %331 : vector<64x16xf32>
    %cst_142 = arith.constant dense<0.000000e+00> : vector<64x32xf32>
    %333 = tpu.matmul %332, %310, %cst_142 {dimension_numbers = #tpu.dot_dimension_numbers<[1], [0], [0], [1], [0, 0, 1, 1], [], []>} : vector<64x16xf32>, vector<16x32xf32>, vector<64x32xf32> -> vector<64x32xf32>
    %334 = vector.extract_strided_slice %333 {offsets = [0, 0], sizes = [16, 32], strides = [1, 1]} : vector<64x32xf32> to vector<16x32xf32>
    %335 = vector.broadcast %104 : vector<1x32xf32> to vector<16x32xf32>
    %336 = arith.mulf %335, %334 : vector<16x32xf32>
    %337 = vector.extract_strided_slice %333 {offsets = [16, 0], sizes = [16, 32], strides = [1, 1]} : vector<64x32xf32> to vector<16x32xf32>
    %338 = vector.broadcast %112 : vector<1x32xf32> to vector<16x32xf32>
    %339 = arith.mulf %338, %337 : vector<16x32xf32>
    %340 = arith.addf %336, %339 : vector<16x32xf32>
    %341 = vector.extract_strided_slice %333 {offsets = [32, 0], sizes = [16, 32], strides = [1, 1]} : vector<64x32xf32> to vector<16x32xf32>
    %342 = vector.broadcast %120 : vector<1x32xf32> to vector<16x32xf32>
    %343 = arith.mulf %342, %341 : vector<16x32xf32>
    %344 = arith.addf %340, %343 : vector<16x32xf32>
    %345 = vector.extract_strided_slice %333 {offsets = [48, 0], sizes = [16, 32], strides = [1, 1]} : vector<64x32xf32> to vector<16x32xf32>
    %346 = vector.broadcast %128 : vector<1x32xf32> to vector<16x32xf32>
    %347 = arith.mulf %346, %345 : vector<16x32xf32>
    %348 = arith.addf %344, %347 : vector<16x32xf32>
    %c1_143 = arith.constant 1 : index
    %c0_144 = arith.constant 0 : index
    %c0_145 = arith.constant 0 : index
    %349 = vector.load %arg12[%c1_143, %c0_144, %c0_145] : memref<2x32x32xf32, #tpu.memory_space<vmem>>, vector<1x32x32xf32>
    %350 = vector.shape_cast %349 : vector<1x32x32xf32> to vector<32x32xf32>
    %cst_146 = arith.constant dense<0.000000e+00> : vector<16x32xf32>
    %351 = tpu.matmul %348, %350, %cst_146 {dimension_numbers = #tpu.dot_dimension_numbers<[1], [0], [0], [1], [0, 0, 1, 1], [], []>} : vector<16x32xf32>, vector<32x32xf32>, vector<16x32xf32> -> vector<16x32xf32>
    %352 = vector.extract_strided_slice %300 {offsets = [0, 0], sizes = [1, 32], strides = [1, 1]} : vector<6x32xf32> to vector<1x32xf32>
    %353 = vector.broadcast %352 : vector<1x32xf32> to vector<16x32xf32>
    %354 = arith.addf %351, %353 : vector<16x32xf32>
    %355 = arith.addf %298, %354 : vector<16x32xf32>
    %356 = vector.extract_strided_slice %300 {offsets = [1, 0], sizes = [1, 32], strides = [1, 1]} : vector<6x32xf32> to vector<1x32xf32>
    %357 = vector.extract_strided_slice %300 {offsets = [2, 0], sizes = [1, 32], strides = [1, 1]} : vector<6x32xf32> to vector<1x32xf32>
    %cst_147 = arith.constant dense<0.000000e+00> : vector<16xf32>
    %358 = vector.multi_reduction <add>, %355, %cst_147 [1] : vector<16x32xf32> to vector<16xf32>
    %359 = vector.shape_cast %358 : vector<16xf32> to vector<16x1xf32>
    %cst_148 = arith.constant 3.200000e+01 : f32
    %360 = vector.broadcast %cst_148 : f32 to vector<16x1xf32>
    %361 = arith.divf %359, %360 : vector<16x1xf32>
    %362 = vector.broadcast %361 : vector<16x1xf32> to vector<16x32xf32>
    %363 = arith.subf %355, %362 : vector<16x32xf32>
    %364 = arith.mulf %363, %363 : vector<16x32xf32>
    %cst_149 = arith.constant dense<0.000000e+00> : vector<16xf32>
    %365 = vector.multi_reduction <add>, %364, %cst_149 [1] : vector<16x32xf32> to vector<16xf32>
    %366 = vector.shape_cast %365 : vector<16xf32> to vector<16x1xf32>
    %cst_150 = arith.constant 3.200000e+01 : f32
    %367 = vector.broadcast %cst_150 : f32 to vector<16x1xf32>
    %368 = arith.divf %366, %367 : vector<16x1xf32>
    %369 = vector.broadcast %361 : vector<16x1xf32> to vector<16x32xf32>
    %370 = arith.subf %355, %369 : vector<16x32xf32>
    %cst_151 = arith.constant 9.99999974E-6 : f32
    %371 = vector.broadcast %cst_151 : f32 to vector<16x1xf32>
    %372 = arith.addf %368, %371 : vector<16x1xf32>
    %373 = math.rsqrt %372 : vector<16x1xf32>
    %374 = vector.broadcast %373 : vector<16x1xf32> to vector<16x32xf32>
    %375 = arith.mulf %370, %374 : vector<16x32xf32>
    %376 = vector.broadcast %356 : vector<1x32xf32> to vector<16x32xf32>
    %377 = arith.mulf %375, %376 : vector<16x32xf32>
    %378 = vector.broadcast %357 : vector<1x32xf32> to vector<16x32xf32>
    %379 = arith.addf %377, %378 : vector<16x32xf32>
    %c1_152 = arith.constant 1 : index
    %c0_153 = arith.constant 0 : index
    %c0_154 = arith.constant 0 : index
    %380 = vector.load %arg13[%c1_152, %c0_153, %c0_154] : memref<2x32x128xf32, #tpu.memory_space<vmem>>, vector<1x32x128xf32>
    %381 = vector.shape_cast %380 : vector<1x32x128xf32> to vector<32x128xf32>
    %cst_155 = arith.constant dense<0.000000e+00> : vector<16x128xf32>
    %382 = tpu.matmul %379, %381, %cst_155 {dimension_numbers = #tpu.dot_dimension_numbers<[1], [0], [0], [1], [0, 0, 1, 1], [], []>} : vector<16x32xf32>, vector<32x128xf32>, vector<16x128xf32> -> vector<16x128xf32>
    %c1_156 = arith.constant 1 : index
    %c0_157 = arith.constant 0 : index
    %c0_158 = arith.constant 0 : index
    %383 = vector.load %arg14[%c1_156, %c0_157, %c0_158] : memref<2x1x128xf32, #tpu.memory_space<vmem>>, vector<1x1x128xf32>
    %384 = vector.shape_cast %383 : vector<1x1x128xf32> to vector<1x128xf32>
    %385 = vector.broadcast %384 : vector<1x128xf32> to vector<16x128xf32>
    %386 = arith.addf %382, %385 : vector<16x128xf32>
    %cst_159 = arith.constant 5.000000e-01 : f32
    %387 = vector.broadcast %cst_159 : f32 to vector<16x128xf32>
    %388 = arith.mulf %387, %386 : vector<16x128xf32>
    %cst_160 = arith.constant 0.707106769 : f32
    %389 = vector.broadcast %cst_160 : f32 to vector<16x128xf32>
    %390 = arith.mulf %386, %389 : vector<16x128xf32>
    %391 = math.absf %390 : vector<16x128xf32>
    %cst_161 = arith.constant 0.327591091 : f32
    %392 = vector.broadcast %cst_161 : f32 to vector<16x128xf32>
    %393 = arith.mulf %392, %391 : vector<16x128xf32>
    %cst_162 = arith.constant 1.000000e+00 : f32
    %394 = vector.broadcast %cst_162 : f32 to vector<16x128xf32>
    %395 = arith.addf %394, %393 : vector<16x128xf32>
    %cst_163 = arith.constant 1.000000e+00 : f32
    %396 = vector.broadcast %cst_163 : f32 to vector<16x128xf32>
    %397 = arith.divf %396, %395 : vector<16x128xf32>
    %cst_164 = arith.constant 1.06140542 : f32
    %398 = vector.broadcast %cst_164 : f32 to vector<16x128xf32>
    %399 = arith.mulf %398, %397 : vector<16x128xf32>
    %cst_165 = arith.constant 1.45315206 : f32
    %400 = vector.broadcast %cst_165 : f32 to vector<16x128xf32>
    %401 = arith.subf %399, %400 : vector<16x128xf32>
    %402 = arith.mulf %401, %397 : vector<16x128xf32>
    %cst_166 = arith.constant 1.42141378 : f32
    %403 = vector.broadcast %cst_166 : f32 to vector<16x128xf32>
    %404 = arith.addf %402, %403 : vector<16x128xf32>
    %405 = arith.mulf %404, %397 : vector<16x128xf32>
    %cst_167 = arith.constant 0.284496725 : f32
    %406 = vector.broadcast %cst_167 : f32 to vector<16x128xf32>
    %407 = arith.subf %405, %406 : vector<16x128xf32>
    %408 = arith.mulf %407, %397 : vector<16x128xf32>
    %cst_168 = arith.constant 0.254829586 : f32
    %409 = vector.broadcast %cst_168 : f32 to vector<16x128xf32>
    %410 = arith.addf %408, %409 : vector<16x128xf32>
    %411 = arith.mulf %410, %397 : vector<16x128xf32>
    %cst_169 = arith.constant 0.000000e+00 : f32
    %412 = vector.broadcast %cst_169 : f32 to vector<16x128xf32>
    %413 = arith.subf %412, %391 : vector<16x128xf32>
    %414 = arith.mulf %413, %391 : vector<16x128xf32>
    %415 = math.exp %414 : vector<16x128xf32>
    %416 = arith.mulf %411, %415 : vector<16x128xf32>
    %cst_170 = arith.constant 1.000000e+00 : f32
    %417 = vector.broadcast %cst_170 : f32 to vector<16x128xf32>
    %418 = arith.subf %417, %416 : vector<16x128xf32>
    %cst_171 = arith.constant 0.000000e+00 : f32
    %419 = vector.broadcast %cst_171 : f32 to vector<16x128xf32>
    %420 = arith.cmpf oge, %390, %419 : vector<16x128xf32>
    %cst_172 = arith.constant 0.000000e+00 : f32
    %421 = vector.broadcast %cst_172 : f32 to vector<16x128xf32>
    %422 = arith.subf %421, %418 : vector<16x128xf32>
    %423 = arith.select %420, %418, %422 : vector<16x128xi1>, vector<16x128xf32>
    %cst_173 = arith.constant 1.000000e+00 : f32
    %424 = vector.broadcast %cst_173 : f32 to vector<16x128xf32>
    %425 = arith.addf %424, %423 : vector<16x128xf32>
    %426 = arith.mulf %388, %425 : vector<16x128xf32>
    %c1_174 = arith.constant 1 : index
    %c0_175 = arith.constant 0 : index
    %c0_176 = arith.constant 0 : index
    %427 = vector.load %arg15[%c1_174, %c0_175, %c0_176] : memref<2x128x32xf32, #tpu.memory_space<vmem>>, vector<1x128x32xf32>
    %428 = vector.shape_cast %427 : vector<1x128x32xf32> to vector<128x32xf32>
    %cst_177 = arith.constant dense<0.000000e+00> : vector<16x32xf32>
    %429 = tpu.matmul %426, %428, %cst_177 {dimension_numbers = #tpu.dot_dimension_numbers<[1], [0], [0], [1], [0, 0, 1, 1], [], []>} : vector<16x128xf32>, vector<128x32xf32>, vector<16x32xf32> -> vector<16x32xf32>
    %430 = vector.extract_strided_slice %300 {offsets = [3, 0], sizes = [1, 32], strides = [1, 1]} : vector<6x32xf32> to vector<1x32xf32>
    %431 = vector.broadcast %430 : vector<1x32xf32> to vector<16x32xf32>
    %432 = arith.addf %429, %431 : vector<16x32xf32>
    %433 = arith.addf %379, %432 : vector<16x32xf32>
    %434 = vector.extract_strided_slice %300 {offsets = [4, 0], sizes = [1, 32], strides = [1, 1]} : vector<6x32xf32> to vector<1x32xf32>
    %435 = vector.extract_strided_slice %300 {offsets = [5, 0], sizes = [1, 32], strides = [1, 1]} : vector<6x32xf32> to vector<1x32xf32>
    %cst_178 = arith.constant dense<0.000000e+00> : vector<16xf32>
    %436 = vector.multi_reduction <add>, %433, %cst_178 [1] : vector<16x32xf32> to vector<16xf32>
    %437 = vector.shape_cast %436 : vector<16xf32> to vector<16x1xf32>
    %cst_179 = arith.constant 3.200000e+01 : f32
    %438 = vector.broadcast %cst_179 : f32 to vector<16x1xf32>
    %439 = arith.divf %437, %438 : vector<16x1xf32>
    %440 = vector.broadcast %439 : vector<16x1xf32> to vector<16x32xf32>
    %441 = arith.subf %433, %440 : vector<16x32xf32>
    %442 = arith.mulf %441, %441 : vector<16x32xf32>
    %cst_180 = arith.constant dense<0.000000e+00> : vector<16xf32>
    %443 = vector.multi_reduction <add>, %442, %cst_180 [1] : vector<16x32xf32> to vector<16xf32>
    %444 = vector.shape_cast %443 : vector<16xf32> to vector<16x1xf32>
    %cst_181 = arith.constant 3.200000e+01 : f32
    %445 = vector.broadcast %cst_181 : f32 to vector<16x1xf32>
    %446 = arith.divf %444, %445 : vector<16x1xf32>
    %447 = vector.broadcast %439 : vector<16x1xf32> to vector<16x32xf32>
    %448 = arith.subf %433, %447 : vector<16x32xf32>
    %cst_182 = arith.constant 9.99999974E-6 : f32
    %449 = vector.broadcast %cst_182 : f32 to vector<16x1xf32>
    %450 = arith.addf %446, %449 : vector<16x1xf32>
    %451 = math.rsqrt %450 : vector<16x1xf32>
    %452 = vector.broadcast %451 : vector<16x1xf32> to vector<16x32xf32>
    %453 = arith.mulf %448, %452 : vector<16x32xf32>
    %454 = vector.broadcast %434 : vector<1x32xf32> to vector<16x32xf32>
    %455 = arith.mulf %453, %454 : vector<16x32xf32>
    %456 = vector.broadcast %435 : vector<1x32xf32> to vector<16x32xf32>
    %457 = arith.addf %455, %456 : vector<16x32xf32>
    %458 = vector.extract_strided_slice %457 {offsets = [8, 0], sizes = [8, 32], strides = [1, 1]} : vector<16x32xf32> to vector<8x32xf32>
    %459 = vector.extract_strided_slice %92 {offsets = [0, 0], sizes = [10, 32], strides = [1, 1]} : vector<30x32xf32> to vector<10x32xf32>
    %460 = tpu.iota {dimensions = array<i32: 1>} : vector<12x8xi32>
    %c0_183 = arith.constant 0 : index
    %c0_184 = arith.constant 0 : index
    %461 = vector.load %arg1[%c0_183, %c0_184] : memref<12x1xi32, #tpu.memory_space<vmem>>, vector<12x1xi32>
    %462 = vector.broadcast %461 : vector<12x1xi32> to vector<12x8xi32>
    %463 = arith.cmpi eq, %460, %462 : vector<12x8xi32>
    %cst_185 = arith.constant 1.000000e+00 : f32
    %cst_186 = arith.constant 0.000000e+00 : f32
    %464 = vector.broadcast %cst_185 : f32 to vector<12x8xf32>
    %465 = vector.broadcast %cst_186 : f32 to vector<12x8xf32>
    %466 = arith.select %463, %464, %465 : vector<12x8xi1>, vector<12x8xf32>
    %467 = tpu.iota {dimensions = array<i32: 1>} : vector<12x10xi32>
    %c0_187 = arith.constant 0 : index
    %c0_188 = arith.constant 0 : index
    %468 = vector.load %arg2[%c0_187, %c0_188] : memref<12x1xi32, #tpu.memory_space<vmem>>, vector<12x1xi32>
    %469 = vector.broadcast %468 : vector<12x1xi32> to vector<12x10xi32>
    %470 = arith.cmpi eq, %467, %469 : vector<12x10xi32>
    %cst_189 = arith.constant 1.000000e+00 : f32
    %cst_190 = arith.constant 0.000000e+00 : f32
    %471 = vector.broadcast %cst_189 : f32 to vector<12x10xf32>
    %472 = vector.broadcast %cst_190 : f32 to vector<12x10xf32>
    %473 = arith.select %470, %471, %472 : vector<12x10xi1>, vector<12x10xf32>
    %cst_191 = arith.constant dense<0.000000e+00> : vector<12x32xf32>
    %474 = tpu.matmul %466, %458, %cst_191 {dimension_numbers = #tpu.dot_dimension_numbers<[1], [0], [0], [1], [0, 0, 1, 1], [], []>} : vector<12x8xf32>, vector<8x32xf32>, vector<12x32xf32> -> vector<12x32xf32>
    %cst_192 = arith.constant dense<0.000000e+00> : vector<12x32xf32>
    %475 = tpu.matmul %473, %459, %cst_192 {dimension_numbers = #tpu.dot_dimension_numbers<[1], [0], [0], [1], [0, 0, 1, 1], [], []>} : vector<12x10xf32>, vector<10x32xf32>, vector<12x32xf32> -> vector<12x32xf32>
    %cst_193 = arith.constant 1.000000e+00 : f32
    %476 = vector.broadcast %cst_193 : f32 to vector<1x32xf32>
    %477 = arith.mulf %474, %475 : vector<12x32xf32>
    %cst_194 = arith.constant dense<0.000000e+00> : vector<1x12xf32>
    %478 = tpu.matmul %476, %477, %cst_194 {dimension_numbers = #tpu.dot_dimension_numbers<[1], [1], [0], [0], [0, 0, 1, 0], [], []>} : vector<1x32xf32>, vector<12x32xf32>, vector<1x12xf32> -> vector<1x12xf32>
    %479 = arith.mulf %474, %474 : vector<12x32xf32>
    %cst_195 = arith.constant dense<0.000000e+00> : vector<1x12xf32>
    %480 = tpu.matmul %476, %479, %cst_195 {dimension_numbers = #tpu.dot_dimension_numbers<[1], [1], [0], [0], [0, 0, 1, 0], [], []>} : vector<1x32xf32>, vector<12x32xf32>, vector<1x12xf32> -> vector<1x12xf32>
    %481 = math.sqrt %480 : vector<1x12xf32>
    %482 = arith.mulf %475, %475 : vector<12x32xf32>
    %cst_196 = arith.constant dense<0.000000e+00> : vector<1x12xf32>
    %483 = tpu.matmul %476, %482, %cst_196 {dimension_numbers = #tpu.dot_dimension_numbers<[1], [1], [0], [0], [0, 0, 1, 0], [], []>} : vector<1x32xf32>, vector<12x32xf32>, vector<1x12xf32> -> vector<1x12xf32>
    %484 = math.sqrt %483 : vector<1x12xf32>
    %cst_197 = arith.constant 9.99999993E-9 : f32
    %485 = vector.broadcast %cst_197 : f32 to vector<1x12xf32>
    %486 = arith.maximumf %481, %485 : vector<1x12xf32>
    %cst_198 = arith.constant 9.99999993E-9 : f32
    %487 = vector.broadcast %cst_198 : f32 to vector<1x12xf32>
    %488 = arith.maximumf %484, %487 : vector<1x12xf32>
    %489 = arith.mulf %486, %488 : vector<1x12xf32>
    %490 = arith.divf %478, %489 : vector<1x12xf32>
    %c0_199 = arith.constant 0 : index
    %c0_200 = arith.constant 0 : index
    %491 = vector.load %arg17[%c0_199, %c0_200] : memref<1x32xf32, #tpu.memory_space<vmem>>, vector<1x32xf32>
    %492 = vector.broadcast %491 : vector<1x32xf32> to vector<12x32xf32>
    %493 = arith.mulf %474, %492 : vector<12x32xf32>
    %cst_201 = arith.constant dense<0.000000e+00> : vector<1x12xf32>
    %494 = tpu.matmul %476, %493, %cst_201 {dimension_numbers = #tpu.dot_dimension_numbers<[1], [1], [0], [0], [0, 0, 1, 0], [], []>} : vector<1x32xf32>, vector<12x32xf32>, vector<1x12xf32> -> vector<1x12xf32>
    %c0_202 = arith.constant 0 : index
    %c0_203 = arith.constant 0 : index
    %495 = memref.load %arg18[%c0_202, %c0_203] : memref<1x2xf32, #tpu.memory_space<smem>>
    %c0_204 = arith.constant 0 : index
    %c1_205 = arith.constant 1 : index
    %496 = memref.load %arg18[%c0_204, %c1_205] : memref<1x2xf32, #tpu.memory_space<smem>>
    %497 = vector.broadcast %495 : f32 to vector<1x12xf32>
    %498 = arith.mulf %490, %497 : vector<1x12xf32>
    %499 = arith.addf %494, %498 : vector<1x12xf32>
    %500 = vector.broadcast %496 : f32 to vector<1x12xf32>
    %501 = arith.addf %499, %500 : vector<1x12xf32>
    %c0_206 = arith.constant 0 : index
    %c0_207 = arith.constant 0 : index
    %502 = vector.load %arg19[%c0_206, %c0_207] : memref<1x12xf32, #tpu.memory_space<vmem>>, vector<1x12xf32>
    tpu.vector_store %arg19[%c0_206, %c0_207], %501 {strides = array<i32>} : memref<1x12xf32, #tpu.memory_space<vmem>>, vector<1x12xf32>,
    return
  }
}

</mosaic_0001>

<bundles_post_ra>
// kernel: model_forward.1
= control target key start
LH: loop header
LB: loop body
LE: loop exit
PB: predicated region body
PF: predicated region fallthrough
CT: control target
= control target key end

     0   :  { %s6501_s0 = inlined_call_operand.vmem [shape: s32[2,72], index: 0, kind: input, shape index: {}]   ;;  %s6502_s1 = inlined_call_operand.vmem [shape: s32[12,1], index: 1, kind: input, shape index: {}]   ;;  %s6503_s2 = inlined_call_operand.vmem [shape: s32[12,1], index: 2, kind: input, shape index: {}]   ;;  %s6504_s3 = inlined_call_operand.vmem [shape: f32[24,12], index: 3, kind: input, shape index: {}]   ;;  %s6505_s4 = inlined_call_operand.vmem [shape: f32[30,20], index: 4, kind: input, shape index: {}]   ;;  %s6506_s5 = inlined_call_operand.vmem [shape: f32[12,32], index: 5, kind: input, shape index: {}]   ;;  %s6507_s6 = inlined_call_operand.vmem [shape: f32[20,32], index: 6, kind: input, shape index: {}]   ;;  %s6508_s7 = inlined_call_operand.vmem [shape: f32[8,32,32], index: 7, kind: input, shape index: {}]   ;;  %s6509_s8 = inlined_call_operand.vmem [shape: f32[6,32], index: 8, kind: input, shape index: {}]   ;;  %s6510_s9 = inlined_call_operand.vmem [shape: f32[16,32], index: 9, kind: input, shape index: {}]   ;;  %s6511_s10 = inlined_call_operand.vmem [shape: f32[2,32,96], index: 10, kind: input, shape index: {}]   ;;  %s6512_s11 = inlined_call_operand.vmem [shape: f32[2,1,96], index: 11, kind: input, shape index: {}]   ;;  %s6513_s12 = inlined_call_operand.vmem [shape: f32[2,32,32], index: 12, kind: input, shape index: {}]   ;;  %s6514_s13 = inlined_call_operand.vmem [shape: f32[2,32,128], index: 13, kind: input, shape index: {}]   ;;  %s6515_s14 = inlined_call_operand.vmem [shape: f32[2,1,128], index: 14, kind: input, shape index: {}]   ;;  %s6516_s15 = inlined_call_operand.vmem [shape: f32[2,128,32], index: 15, kind: input, shape index: {}]   ;;  %s6517_s16 = inlined_call_operand.vmem [shape: f32[2,6,32], index: 16, kind: input, shape index: {}]   ;;  %s6518_s17 = inlined_call_operand.vmem [shape: f32[1,32], index: 17, kind: input, shape index: {}]   ;;  %s6519_s18 = inlined_call_operand.vmem [shape: f32[1,2], index: 18, kind: input, shape index: {}]   ;;  %s6520_s19 = inlined_call_operand.vmem [shape: f32[1,12], index: 19, kind: output, shape index: {}]  }
   0x1   :  { %6525 = sst [smem:[#allocation5_spill]] %s6501_s0 }
   0x2   :  { %6526 = sst [smem:[#allocation6_spill]] %s6502_s1 }
   0x3   :  { %6527 = sst [smem:[#allocation7_spill]] %s6503_s2 }
   0x4   :  { %6528 = sst [smem:[#allocation8_spill]] %s6504_s3 }
   0x5   :  { %24 = vsyncpa [#allocation3], 0  ;;  %s67_s20 = sshll.u32 %s6519_s18, 4  ;;  %s68_s20 = int_to_ptr.vmem [resolvable:$true] %s67_s20 }
   0x6   :  { %s5435_s21 = scalar_lea.vmem %s68_s20, 16  ;;  %p5440_p1 = scmp.lt.s32.totalorder %s68_s20, %s68_s20 }
   0x7   :  { %p5436_p0 = scmp.ne.s32.totalorder %s68_s20, %s5435_s21  ;;  %p5441_p2 = scmp.lt.s32.totalorder %s5435_s21, %s5435_s21 }
   0x9   :  { %p5442_p3 = por %p5441_p2, %p5440_p1 }
   0xb   :  { %p5443_p4 = pnand %p5442_p3, %p5436_p0 }
   0xd   :  { %5446 = shalt.err (!%p5443_p4)
}
   0xe   :  { %s5449_s1 = smov [#allocation2]  }
   0xf   :  { %70 = dma.vmem_to_smem %s68_s20, 16, %s5449_s1, [#allocation3]  }
  0x10   :  { %5447 = dma.done.wait [#allocation3], 16  }
  0x11   :  { %5448 = vsyncadd [#allocation3], 4294967280 }
  0x12   :  { %74 = sfence }
  0x13   :  { %v77_v0 = vlaneseq  ;;  %v5450_v1 = vmov 0.0|0.0   ;;  %s6529_s18 = sld [smem:[#allocation5_spill]]  ;;  %vm5451_vm0 = vmmov 0   ;;  %v5452_v4 = vmov 0.0   ;;  %v444_v19 = vld [vmem:[%s6507_s6] sm:$0xff]  ;;  %v445_v20 = vld [vmem:[%s6507_s6 + $0x8] sm:$0xff] }
  0x14   :  { %5029 = vmatprep.subr.bf16.mxu0 %v5450_v1  ;;  %4561 = vmatprep.mubr.msk.f32.mxu0 %vm5451_vm0, %v5452_v4  ;;  %vm104_vm2 = vcmask 588800   ;;  %v5047_v22 = vpack.c.bf16 %v445_v20, %v444_v19  ;;  %vm356_vm10 = vcmask 1043456   ;;  %v446_v23 = vld [vmem:[%s6507_s6 + $0x10] sm:$0xf]  ;;  %v440_v24 = vld [vmem:[%s6505_s4] sm:$0xff]  ;;  %vm451_vm11 = vcmask 162816  }
  0x15   :  { %v5567_v3 = vshrl.u32 %v77_v0, 7  ;;  %vm5587_vm5 = vmpackc.low %vm104_vm2, %vm104_vm2  ;;  %v441_v25 = vld [vmem:[%s6505_s4 + $0x8] sm:$0xff]  ;;  %v442_v26 = vld [vmem:[%s6505_s4 + $0x10] sm:$0xff]  ;;  %vm5453_vm12 = vmmov 1   ;;  %s6532_s26 = sld [smem:[#allocation8_spill]]  ;;  %vm346_vm14 = vcmask 97280  }
  0x16   :  { %v443_v27 = vld [vmem:[%s6505_s4 + $0x18] sm:$0x3f]  ;;  %v340_v28 = vld [vmem:[%s6506_s5] sm:$0xff]  ;;  %v341_v29 = vld [vmem:[%s6506_s5 + $0x8] sm:$0xf]  ;;  %vm291_vm15 = vcmask 244736  }
  0x17   :  { %v5575_v6 = vadd.s32 8, %v5567_v3  ;;  %v80_v7 = vadd.s32 16, %v5567_v3  ;;  %v91_v9 = vadd.s32 24, %v5567_v3  ;;  %v5044_v30 = vpack.c.bf16 %v341_v29, %v340_v28  ;;  %vm5045_vm13 = vmpackc.low %vm356_vm10, %vm5453_vm12  ;;  %v5689_v44 = vld [vmem:[%s6509_s8] sm:$0x3f]  ;;  %v4127_v59 = vld [vmem:[%s6508_s7 + $0x28] sm:$0xff] }
  0x18   :  { %v5684_v43 = vsub.s32 1, %v5567_v3  ;;  %v4126_v58 = vld [vmem:[%s6508_s7 + $0x20] sm:$0xff]  ;;  %s5454_s5 = smov 96   ;;  %s5456_s29 = smov 64  }
  0x19   :  { %v4102_v2 = vld [vmem:[%s6529_s18 + $0x1] ss:$0 sm:$0xff]  ;;  %v4101_v5 = vld [vmem:[%s6529_s18] ss:$0 sm:$0xff]  ;;  %v5059_v62 = vpack.c.bf16 %v4127_v59, %v4126_v58  ;;  %s6538_s0 = sld [smem:[#allocation7_spill]] }
  0x1a   :  { %vm96_vm1 = vcmp.eq.s32.totalorder %v5567_v3, %v4102_v2  ;;  %vm85_vm3 = vcmp.eq.s32.totalorder %v5567_v3, %v4101_v5  ;;  %vm97_vm4 = vcmp.eq.s32.totalorder %v5575_v6, %v4102_v2  ;;  %vm98_vm6 = vcmp.eq.s32.totalorder %v80_v7, %v4102_v2  ;;  %v552_v29 = vld [vmem:[%s6508_s7] sm:$0xff] }
  0x1b   :  { %v100_v8 = vsel %vm96_vm1, 1.0, %v5452_v4  ;;  %v101_v10 = vsel %vm97_vm4, 1.0, %v5452_v4  ;;  %vm86_vm7 = vcmp.eq.s32.totalorder %v5575_v6, %v4101_v5  ;;  %vm99_vm8 = vcmp.eq.s32.totalorder %v91_v9, %v4102_v2  ;;  %v337_v31 = vld [vmem:[%s6532_s26] sm:$0xff]  ;;  %v338_v32 = vld [vmem:[%s6532_s26 + $0x8] sm:$0xff]  ;;  %v339_v33 = vld [vmem:[%s6532_s26 + $0x10] sm:$0xff] }
  0x1c   :  { %4576 = vmatprep.mubr.msk.f32.mxu1 %vm104_vm2, %v100_v8  ;;  %v5030_v12 = vpack.c.bf16 %v101_v10, %v100_v8  ;;  %v88_v13 = vsel %vm85_vm3, 1.0, %v5452_v4  ;;  %v89_v14 = vsel %vm86_vm7, 1.0, %v5452_v4  ;;  %vm87_vm9 = vcmp.eq.s32.totalorder %v80_v7, %v4101_v5  ;;  %v4128_v9 = vld [vmem:[%s6508_s7 + $0x30] sm:$0xff] }
  0x1d   :  { %v5037_v15 = vpack.c.bf16 %v89_v14, %v88_v13  ;;  %v102_v16 = vsel %vm98_vm6, 1.0, %v5452_v4  ;;  %v103_v17 = vsel %vm99_vm8, 1.0, %v5452_v4  ;;  %v90_v18 = vsel %vm87_vm9, 1.0, %v5452_v4 }
  0x1e   :  { %5032 = vmatpush3.bf16.xpose.msk.msra.mxu0 %vm5587_vm5, %v5030_v12  ;;  %v5034_v21 = vpack.c.bf16 %v103_v17, %v102_v16  ;;  %v450_v45 = vrot.slane %v5689_v44, %v5684_v43  ;;  %vm580_vm1 = vcmask 1045504   ;;  %vm310_vm3 = vcmask 195584  }
  0x1f   :  { %5033 = vmatprep.subr.bf16.mxu0 %v5450_v1  ;;  %5039 = vmatprep.subr.msk.bf16.mxu1 %vm5587_vm5, %v5037_v15  ;;  %vm320_vm4 = vcmask 193536   ;;  %v5743_v12 = vsub.s32 0, %v5567_v3 }
  0x20   :  { %5042 = vmatpush3.bf16.xpose.msk.msra.mxu1 %vm5587_vm5, %v5037_v15 }
  0x21   :  { %4574 = vmatprep.subr.msk.mxu1 %vm104_vm2, %v90_v18 }
  0x26   :  { %5036 = vmatpush3.bf16.xpose.msk.msra.mxu0 %vm5587_vm5, %v5034_v21  ;;  %vm664_vm5 = vcmask 261120  }
  0x27   :  { %5048 = vmatprep.subr.bf16.mxu0 %v5047_v22  ;;  %vm6034_vm7 = vmpackc.low %vm664_vm5, %vm664_vm5 }
  0x28   :  { %4575 = vmatpush3.xpose.msk.msra.mxu1 %vm104_vm2, %v90_v18 }
  0x29   :  { %5043 = vmatprep.subr.bf16.mxu1 %v5450_v1 }
  0x2b   :  { %4577 = vmatmul.mubr.msk.f32.vlgmr.msra.gmra.mrb[0].mxu1 %vm104_vm2, %v101_v10  ;;  %v4129_v10 = vld [vmem:[%s6508_s7 + $0x38] sm:$0xff] }
  0x2c   :  { %4579 = vmatprep.mubr.msk.f32.mxu1 %vm104_vm2, %v102_v16  ;;  %5046 = vmatpush3.bf16.msk.msra.mxu1 %vm5045_vm13, %v5044_v30  ;;  %v5062_v11 = vpack.c.bf16 %v4129_v10, %v4128_v9  ;;  %v553_v30 = vld [vmem:[%s6508_s7 + $0x8] sm:$0xff]  ;;  %v5804_v9 = vsub.s32 2, %v5567_v3 }
  0x2d   :  { %4562 = vmatmul.mubr.msk.f32.vlgmr.msra.gmra.mrb[0].mxu0 %vm104_vm2, %v88_v13  ;;  %5051 = vmatprep.subr.bf16.mxu1 %v5450_v1  ;;  %v345_v13 = vrot.slane %v5689_v44, %v5743_v12 }
  0x2e   :  { %4564 = vmatprep.mubr.msk.f32.mxu0 %vm5451_vm0, %v5452_v4  ;;  %5050 = vmatpush3.bf16.msra.mxu0 %v5047_v22 }
  0x2f   :  { %4599 = vmatprep.subr.msk.mxu0 %vm356_vm10, %v446_v23  ;;  %4580 = vmatmul.mubr.msk.f32.gmra.mrb[2].mxu1 %vm104_vm2, %v103_v17 }
  0x30   :  { %4586 = vmatprep.mubr.msk.f32.mxu1 %vm5451_vm0, %v5452_v4 }
  0x31   :  { %4565 = vmatmul.mubr.msk.f32.gmra.mrb[2].mxu0 %vm104_vm2, %v89_v14 }
  0x32   :  { %4567 = vmatprep.mubr.msk.f32.mxu0 %vm5451_vm0, %v5452_v4  ;;  %4600 = vmatpush3.msk.msra.mxu0 %vm356_vm10, %v446_v23 }
  0x33   :  { %5058 = vmatprep.subr.bf16.mxu0 %v5450_v1  ;;  %4587 = vmatmul.mubr.msk.f32.vlgmr.msra.gmra.mrb[4].mxu1 %vm346_vm14, %v337_v31 }
  0x34   :  { %4589 = vmatprep.mubr.msk.f32.mxu1 %vm5451_vm0, %v5452_v4 }
  0x35   :  { %4568 = vmatmul.mubr.msk.f32.gmra.mrb[4].mxu0 %vm104_vm2, %v90_v18  ;;  %vm5707_vm2 = vmpackc.low %vm580_vm1, %vm5453_vm12 }
  0x36   :  { %4601 = vmatprep.mubr.msk.f32.mxu0 %vm451_vm11, %v440_v24 }
  0x37   :  { %4590 = vmatmul.mubr.msk.f32.gmra.mrb[6].mxu1 %vm346_vm14, %v338_v32  ;;  %v5065_v32 = vpack.c.bf16 %v553_v30, %v552_v29 }
  0x38   :  { %4592 = vmatprep.mubr.msk.f32.mxu1 %vm5451_vm0, %v5452_v4 }
  0x39   :  { %4602 = vmatmul.mubr.msk.f32.vlgmr.msra.gmra.mrb[6].mxu0 %vm451_vm11, %v441_v25 }
  0x3a   :  { %4604 = vmatprep.mubr.msk.f32.mxu0 %vm451_vm11, %v442_v26  ;;  %5060 = vmatpush3.bf16.msra.mxu0 %v5059_v62 }
  0x3b   :  { %4593 = vmatmul.mubr.msk.f32.gmra.mrb[8].mxu1 %vm346_vm14, %v339_v33  ;;  %5061 = vmatprep.subr.bf16.mxu0 %v5450_v1 }
  0x3c   :  { %4615 = vmatprep.mubr.msk.f32.mxu1 %vm5451_vm0, %v5452_v4 }
  0x3d   :  { %4605 = vmatmul.mubr.msk.f32.gmra.mrb[8].mxu0 %vm451_vm11, %v443_v27 }
  0x3e   :  { %4632 = vmatprep.mubr.msk.f32.mxu0 %vm5451_vm0, %v5452_v4  ;;  %5063 = vmatpush3.bf16.msra.mxu0 %v5062_v11 }
  0xfe   :  { %v5714_v57 = vpop.f32.mrb[0].mxu1 }
  0xff   :  { %v5722_v60 = vpop.f32.mrb[1].mxu1  ;;  %v314_v61 = vsel %vm310_vm3, %v5714_v57, 0.0 }
 0x100   :  { %v5671_v34 = vpop.f32.mrb[0].mxu0  ;;  %v311_v63 = vsel %vm310_vm3, %v5722_v60, 0.0 }
 0x101   :  { %v4563_v35 = vpop.f32.mrb[1].mxu0  ;;  %v292_v36 = vsel %vm291_vm15, %v5671_v34, 0.0 }
 0x102   :  { %293 = vadd.xlane.f32.xlu0 %v292_v36  ;;  %v5728_v2 = vpop.f32.mrb[2].mxu1  ;;  %v554_v35 = vld [vmem:[%s6508_s7 + $0x10] sm:$0xff]  ;;  %v555_v36 = vld [vmem:[%s6508_s7 + $0x18] sm:$0xff] }
 0x103   :  { %v5730_v5 = vpop.f32.mrb[3].mxu1  ;;  %v321_v7 = vsel %vm320_vm4, %v5728_v2, 0.0 }
 0x104   :  { %v5675_v37 = vpop.f32.mrb[2].mxu0  ;;  %v317_v8 = vsel %vm310_vm3, %v5730_v5, 0.0 }
 0x105   :  { %v4566_v38 = vpop.f32.mrb[3].mxu0  ;;  %v295_v39 = vsel %vm291_vm15, %v5675_v37, 0.0 }
 0x106   :  { %296 = vadd.xlane.f32.xlu0 %v295_v39  ;;  %v426_v14 = vpop.f32.mrb[4].mxu1  ;;  %v5068_v39 = vpack.c.bf16 %v555_v36, %v554_v35  ;;  %v4135_v35 = vld [vmem:[%s6508_s7 + $0x68] sm:$0xff] }
 0x107   :  { %v427_v15 = vadd.f32 %v426_v14, %v345_v13  ;;  %v4588_v16 = vpop.f32.mrb[5].mxu1 }
 0x108   :  { %v5679_v40 = vpop.f32.mrb[4].mxu0 }
 0x109   :  { %v298_v41 = vsel %vm291_vm15, %v5679_v40, 0.0  ;;  %v4569_v42 = vpop.f32.mrb[5].mxu0  ;;  %4633 = vmatmul.mubr.msk.f32.vlgmr.msra.gmra.mrb[10].mxu0 %vm664_vm5, %v427_v15 }
 0x10a   :  { %299 = vadd.xlane.f32.xlu1 %v298_v41  ;;  %315 = vadd.xlane.f32.xlu0 %v314_v61  ;;  %v431_v17 = vpop.f32.mrb[6].mxu1 }
 0x10b   :  { %4635 = vmatprep.mubr.msk.f32.mxu0 %vm5451_vm0, %v5452_v4  ;;  %v432_v18 = vadd.f32 %v431_v17, %v345_v13  ;;  %v4591_v19 = vpop.f32.mrb[7].mxu1  ;;  %v846_v17 = vrot.slane %v5689_v44, %v5804_v9 }
 0x10c   :  { %v4603_v46 = vpop.f32.mrb[6].mxu0 }
 0x10d   :  { %v533_v47 = vpop.f32.mrb[7].mxu0  ;;  %v5693_v48 = vadd.f32 %v4603_v46, %v450_v45  ;;  %4636 = vmatmul.mubr.msk.f32.gmra.mrb[12].mxu0 %vm664_vm5, %v432_v18 }
 0x10e   :  { %v5695_v49 = vadd.f32 %v533_v47, %v450_v45  ;;  %312 = vadd.xlane.f32.xlu1 %v311_v63  ;;  %322 = vadd.xlane.f32.xlu0 %v321_v7  ;;  %v436_v20 = vpop.f32.mrb[8].mxu1 }
 0x10f   :  { %4638 = vmatprep.mubr.msk.f32.mxu0 %vm5451_vm0, %v5452_v4  ;;  %v437_v21 = vadd.f32 %v436_v20, %v345_v13  ;;  %v4594_v22 = vpop.f32.mrb[9].mxu1 }
 0x110   :  { %v5052_v50 = vpack.c.bf16 %v5693_v48, %v5695_v49  ;;  %v4606_v51 = vpop.f32.mrb[8].mxu0 }
 0x111   :  { %v543_v52 = vpop.f32.mrb[9].mxu0  ;;  %v5699_v53 = vadd.f32 %v4606_v51, %v450_v45  ;;  %4639 = vmatmul.mubr.msk.f32.gmra.mrb[14].mxu0 %vm664_vm5, %v437_v21 }
 0x112   :  { %v5701_v54 = vadd.f32 %v543_v52, %v450_v45  ;;  %5053 = vmatpush3.bf16.msra.mxu1 %v5052_v50  ;;  %318 = vadd.xlane.f32.xlu1 %v317_v8 }
 0x113   :  { %5054 = vmatprep.subr.bf16.mxu1 %v5450_v1 }
 0x114   :  { %v5055_v55 = vpack.c.bf16 %v5699_v53, %v5701_v54 }
 0x116   :  { %5057 = vmatpush3.bf16.msk.msra.mxu1 %vm5707_vm2, %v5055_v55 }
 0x117   :  { %5064 = vmatprep.subr.bf16.mxu1 %v5450_v1 }
 0x18f   :  { %v294_v23 = vpop.xlane.xlu0 %293 }
 0x190   :  { %v301_v24 = vmax.f32 %v294_v23, 1.0 }
 0x192   :  { %5321 = vrcp.f32 %v301_v24 }
 0x193   :  { %v297_v25 = vpop.xlane.xlu0 %296 }
 0x194   :  { %v302_v26 = vmax.f32 %v297_v25, 1.0 }
 0x196   :  { %5323 = vrcp.f32 %v302_v26 }
 0x197   :  { %v300_v27 = vpop.xlane.xlu1 %299  ;;  %v316_v8 = vpop.xlane.xlu0 %315 }
 0x198   :  { %v303_v28 = vmax.f32 %v300_v27, 1.0  ;;  %v325_v11 = vmax.f32 %v316_v8, 1.0 }
 0x19a   :  { %5325 = vrcp.f32 %v303_v28 }
 0x19b   :  { %v323_v14 = vpop.xlane.xlu0 %322 }
 0x19c   :  { %v5322_v31 = vpop.eup %5321  ;;  %v327_v19 = vmax.f32 %v323_v14, 1.0 }
 0x19d   :  { %v5761_v33 = vmul.f32 %v5322_v31, %v5671_v34 }
 0x19f   :  { %4616 = vmatmul.mubr.msk.f32.vlgmr.msra.gmra.mrb[10].mxu1 %vm291_vm15, %v5761_v33 }
 0x1a0   :  { %v5324_v38 = vpop.eup %5323  ;;  %4618 = vmatprep.mubr.msk.f32.mxu1 %vm5451_vm0, %v5452_v4  ;;  %5066 = vmatpush3.bf16.msra.mxu1 %v5065_v32  ;;  %v4134_v32 = vld [vmem:[%s6508_s7 + $0x60] sm:$0xff] }
 0x1a1   :  { %v5774_v34 = vmul.f32 %v5324_v38, %v5675_v37  ;;  %5067 = vmatprep.subr.bf16.mxu1 %v5450_v1  ;;  %v313_v37 = vpop.xlane.xlu1 %312 }
 0x1a2   :  { %v324_v45 = vmax.f32 %v313_v37, 1.0 }
 0x1a3   :  { %4619 = vmatmul.mubr.msk.f32.gmra.mrb[12].mxu1 %vm291_vm15, %v5774_v34 }
 0x1a4   :  { %v5326_v41 = vpop.eup %5325  ;;  %4621 = vmatprep.mubr.msk.f32.mxu1 %vm5451_vm0, %v5452_v4  ;;  %5069 = vmatpush3.bf16.msra.mxu1 %v5068_v39  ;;  %5327 = vrcp.f32 %v324_v45  ;;  %v4136_v39 = vld [vmem:[%s6508_s7 + $0x70] sm:$0xff]  ;;  %v5074_v45 = vpack.c.bf16 %v4135_v35, %v4134_v32 }
 0x1a5   :  { %v5782_v42 = vmul.f32 %v5326_v41, %v5679_v40  ;;  %5090 = vmatprep.subr.bf16.mxu1 %v5450_v1  ;;  %v319_v10 = vpop.xlane.xlu1 %318  ;;  %5329 = vrcp.f32 %v325_v11  ;;  %v4137_v41 = vld [vmem:[%s6508_s7 + $0x78] sm:$0xff] }
 0x1a6   :  { %v326_v15 = vmax.f32 %v319_v10, 1.0  ;;  %v5890_v10 = vsub.s32 3, %v5567_v3 }
 0x1a7   :  { %4622 = vmatmul.mubr.msk.f32.gmra.mrb[14].mxu1 %vm291_vm15, %v5782_v42 }
 0x1a8   :  { %4649 = vmatprep.mubr.msk.f32.mxu1 %vm5451_vm0, %v5452_v4  ;;  %5331 = vrcp.f32 %v326_v15  ;;  %v1146_v11 = vrot.slane %v5689_v44, %v5890_v10 }
 0x1a9   :  { %5333 = vrcp.f32 %v327_v19 }
 0x1ae   :  { %v5328_v46 = vpop.eup %5327 }
 0x1af   :  { %v5790_v47 = vmul.f32 %v5328_v46, %v5722_v60  ;;  %v5330_v38 = vpop.eup %5329 }
 0x1b0   :  { %v5834_v46 = vmul.f32 %v5330_v38, %v5714_v57  ;;  %v4166_v38 = vld [vmem:[%s6508_s7 + $0xb0] sm:$0xff] }
 0x1b1   :  { %4664 = vmatprep.mubr.msk.f32.mxu0 %vm310_vm3, %v5790_v47 }
 0x1b2   :  { %v5332_v37 = vpop.eup %5331 }
 0x1dc   :  { %v740_v40 = vpop.f32.mrb[10].mxu0 }
 0x1dd   :  { %v4634_v50 = vpop.f32.mrb[11].mxu0 }
 0x1de   :  { %v5334_v50 = vpop.eup %5333 }
 0x1df   :  { %v5851_v57 = vmul.f32 %v5334_v50, %v5728_v2 }
 0x1e0   :  { %v745_v51 = vpop.f32.mrb[12].mxu0 }
 0x1e1   :  { %v4637_v52 = vpop.f32.mrb[13].mxu0 }
 0x1e2   :  { %v4130_v52 = vld [vmem:[%s6508_s7 + $0x40] sm:$0xff] }
 0x1e4   :  { %v750_v55 = vpop.f32.mrb[14].mxu0 }
 0x1e5   :  { %v4640_v58 = vpop.f32.mrb[15].mxu0 }
 0x1e6   :  { %v4132_v58 = vld [vmem:[%s6508_s7 + $0x50] sm:$0xff] }
 0x272   :  { %v650_v59 = vpop.f32.mrb[10].mxu1 }
 0x273   :  { %v4617_v61 = vpop.f32.mrb[11].mxu1  ;;  %4650 = vmatmul.mubr.msk.f32.vlgmr.msra.gmra.mrb[16].mxu1 %vm664_vm5, %v650_v59  ;;  %v4133_v59 = vld [vmem:[%s6508_s7 + $0x58] sm:$0xff] }
 0x274   :  { %4652 = vmatprep.mubr.msk.f32.mxu1 %vm5451_vm0, %v5452_v4  ;;  %v5086_v2 = vpack.c.bf16 %v4133_v59, %v4132_v58  ;;  %v4168_v59 = vld [vmem:[%s6508_s7 + $0xc0] sm:$0xff] }
 0x276   :  { %v655_v62 = vpop.f32.mrb[12].mxu1 }
 0x277   :  { %v4620_v63 = vpop.f32.mrb[13].mxu1  ;;  %4653 = vmatmul.mubr.msk.f32.gmra.mrb[18].mxu1 %vm664_vm5, %v655_v62 }
 0x278   :  { %4655 = vmatprep.mubr.msk.f32.mxu1 %vm5451_vm0, %v5452_v4 }
 0x27a   :  { %v660_v60 = vpop.f32.mrb[14].mxu1 }
 0x27b   :  { %v4623_v7 = vpop.f32.mrb[15].mxu1  ;;  %4656 = vmatmul.mubr.msk.f32.gmra.mrb[20].mxu1 %vm664_vm5, %v660_v60 }
 0x27c   :  { %4706 = vmatprep.mubr.msk.f32.mxu1 %vm5451_vm0, %v5452_v4  ;;  %v4163_v7 = vld [vmem:[%s6508_s7 + $0x98] sm:$0xff] }
 0x346   :  { %v829_v13 = vpop.f32.mrb[16].mxu1 }
 0x347   :  { %v830_v16 = vadd.f32 %v829_v13, %v740_v40  ;;  %v4651_v18 = vpop.f32.mrb[17].mxu1  ;;  %v5078_v40 = vpack.c.bf16 %v4137_v41, %v4136_v39  ;;  %v4167_v39 = vld [vmem:[%s6508_s7 + $0xb8] sm:$0xff] }
 0x348   :  { %v5101_v56 = vpack.c.bf16 %v4167_v39, %v4166_v38 }
 0x349   :  { %v5808_v21 = vadd.f32 %v846_v17, %v830_v16 }
 0x34a   :  { %v834_v20 = vpop.f32.mrb[18].mxu1 }
 0x34b   :  { %v835_v22 = vadd.f32 %v834_v20, %v745_v51  ;;  %v4654_v23 = vpop.f32.mrb[19].mxu1  ;;  %v850_v26 = vmax.f32 %v5808_v21, 0.0  ;;  %v5838_v51 = vmul.f32 %v5332_v37, %v5730_v5  ;;  %v4174_v21 = vld [vmem:[%s6508_s7 + $0xf0] sm:$0xff] }
 0x34d   :  { %v5810_v24 = vadd.f32 %v846_v17, %v835_v22 }
 0x34e   :  { %v839_v25 = vpop.f32.mrb[20].mxu1 }
 0x34f   :  { %v851_v27 = vmax.f32 %v5810_v24, 0.0  ;;  %v840_v28 = vadd.f32 %v839_v25, %v750_v55  ;;  %v4657_v29 = vpop.f32.mrb[21].mxu1  ;;  %v4131_v55 = vld [vmem:[%s6508_s7 + $0x48] sm:$0xff]  ;;  %v4175_v24 = vld [vmem:[%s6508_s7 + $0xf8] sm:$0xff] }
 0x350   :  { %v5082_v5 = vpack.c.bf16 %v4131_v55, %v4130_v52 }
 0x351   :  { %v849_v30 = vadd.f32 %v846_v17, %v840_v28  ;;  %v5070_v31 = vpack.c.bf16 %v851_v27, %v850_v26 }
 0x353   :  { %v5824_v36 = vmax.f32 %v849_v30, 0.0  ;;  %5071 = vmatprep.subr.bf16.mxu0 %v5070_v31  ;;  %v4164_v30 = vld [vmem:[%s6508_s7 + $0xa0] sm:$0xff] }
 0x354   :  { %5073 = vmatpush3.bf16.msra.mxu0 %v5070_v31  ;;  %v4165_v31 = vld [vmem:[%s6508_s7 + $0xa8] sm:$0xff] }
 0x355   :  { %4662 = vmatprep.subr.mxu0 %v5824_v36  ;;  %v5098_v35 = vpack.c.bf16 %v4165_v31, %v4164_v30  ;;  %v1760_v30 = vld [vmem:[%s6511_s10 + $0x10] sm:$0xff]  ;;  %v1761_v31 = vld [vmem:[%s6511_s10 + $0x18] sm:$0xff] }
 0x356   :  { %v5133_v39 = vpack.c.bf16 %v1761_v31, %v1760_v30 }
 0x358   :  { %4663 = vmatpush3.msra.mxu0 %v5824_v36 }
 0x359   :  { %4665 = vmatmul.mubr.msk.f32.vlgmr.msra.gmra.mrb[16].mxu0 %vm310_vm3, %v5834_v46  ;;  %5075 = vmatprep.subr.bf16.mxu0 %v5074_v45 }
 0x35a   :  { %4667 = vmatprep.mubr.msk.f32.mxu0 %vm310_vm3, %v5838_v51  ;;  %5077 = vmatpush3.bf16.msra.mxu0 %v5074_v45 }
 0x35b   :  { %5079 = vmatprep.subr.bf16.mxu0 %v5078_v40 }
 0x35d   :  { %4668 = vmatmul.mubr.msk.f32.gmra.mrb[18].mxu0 %vm310_vm3, %v5851_v57 }
 0x35e   :  { %5081 = vmatpush3.bf16.msra.mxu0 %v5078_v40  ;;  %4678 = vmatprep.mubr.msk.f32.mxu0 %vm664_vm5, %v5695_v49 }
 0x35f   :  { %5083 = vmatprep.subr.bf16.mxu0 %v5082_v5 }
 0x361   :  { %4679 = vmatmul.mubr.msk.f32.vlgmr.msra.gmra.mrb[20].mxu0 %vm664_vm5, %v5693_v48  ;;  %v4160_v48 = vld [vmem:[%s6508_s7 + $0x80] sm:$0xff] }
 0x362   :  { %4681 = vmatprep.mubr.msk.f32.mxu0 %vm664_vm5, %v5701_v54  ;;  %5085 = vmatpush3.bf16.msra.mxu0 %v5082_v5  ;;  %v4162_v54 = vld [vmem:[%s6508_s7 + $0x90] sm:$0xff] }
 0x363   :  { %5087 = vmatprep.subr.bf16.mxu0 %v5086_v2  ;;  %v5107_v8 = vpack.c.bf16 %v4163_v7, %v4162_v54 }
 0x365   :  { %4682 = vmatmul.mubr.msk.f32.gmra.mrb[22].mxu0 %vm664_vm5, %v5699_v53  ;;  %v4161_v53 = vld [vmem:[%s6508_s7 + $0x88] sm:$0xff] }
 0x366   :  { %5089 = vmatpush3.bf16.msra.mxu0 %v5086_v2  ;;  %v5104_v60 = vpack.c.bf16 %v4161_v53, %v4160_v48  ;;  %v4169_v2 = vld [vmem:[%s6508_s7 + $0xc8] sm:$0xff]  ;;  %v5976_v48 = vsub.s32 4, %v5567_v3 }
 0x367   :  { %5103 = vmatprep.subr.bf16.mxu0 %v5450_v1 }
 0x42c   :  { %v4666_v61 = vpop.f32.mrb[16].mxu0 }
 0x42d   :  { %v931_v62 = vpop.f32.mrb[17].mxu0 }
 0x42e   :  { %4692 = vmatprep.mubr.msk.f32.mxu0 %vm664_vm5, %v931_v62  ;;  %v5121_v62 = vpack.c.bf16 %v4169_v2, %v4168_v59 }
 0x42f   :  { %4693 = vmatmul.mubr.msk.f32.vlgmr.msra.gmra.mrb[20].mxu0 %vm664_vm5, %v4666_v61  ;;  %v4170_v61 = vld [vmem:[%s6508_s7 + $0xd0] sm:$0xff] }
 0x430   :  { %v4669_v49 = vpop.f32.mrb[18].mxu0  ;;  %5105 = vmatpush3.bf16.msra.mxu0 %v5104_v60  ;;  %v1439_v60 = vrot.slane %v5689_v44, %v5976_v48 }
 0x431   :  { %v941_v63 = vpop.f32.mrb[19].mxu0  ;;  %5106 = vmatprep.subr.bf16.mxu0 %v5450_v1 }
 0x432   :  { %4695 = vmatprep.mubr.msk.f32.mxu0 %vm664_vm5, %v941_v63 }
 0x433   :  { %4696 = vmatmul.mubr.msk.f32.gmra.mrb[22].mxu0 %vm664_vm5, %v4669_v49  ;;  %v4171_v49 = vld [vmem:[%s6508_s7 + $0xd8] sm:$0xff] }
 0x434   :  { %4740 = vmatprep.mubr.msk.f32.mxu0 %vm5451_vm0, %v5452_v4  ;;  %5108 = vmatpush3.bf16.msra.mxu0 %v5107_v8  ;;  %v5125_v63 = vpack.c.bf16 %v4171_v49, %v4170_v61 }
 0x502   :  { %v4694_v13 = vpop.f32.mrb[20].mxu0 }
 0x503   :  { %v5894_v14 = vadd.f32 %v4694_v13, %v1146_v11  ;;  %v1124_v15 = vpop.f32.mrb[21].mxu0 }
 0x504   :  { %v1147_v16 = vadd.f32 %v1146_v11, %v1124_v15 }
 0x505   :  { %v1152_v17 = vmax.f32 %v5894_v14, 0.0 }
 0x506   :  { %v1151_v18 = vmax.f32 %v1147_v16, 0.0  ;;  %v4697_v19 = vpop.f32.mrb[22].mxu0 }
 0x507   :  { %v1150_v20 = vadd.f32 %v4697_v19, %v1146_v11  ;;  %v1134_v22 = vpop.f32.mrb[23].mxu0 }
 0x508   :  { %v5091_v23 = vpack.c.bf16 %v1152_v17, %v1151_v18  ;;  %v1149_v25 = vadd.f32 %v1146_v11, %v1134_v22 }
 0x509   :  { %v1154_v28 = vmax.f32 %v1150_v20, 0.0 }
 0x50a   :  { %v1153_v29 = vmax.f32 %v1149_v25, 0.0  ;;  %5092 = vmatpush3.bf16.msra.mxu1 %v5091_v23  ;;  %v1758_v25 = vld [vmem:[%s6511_s10] sm:$0xff] }
 0x50b   :  { %5093 = vmatprep.subr.bf16.mxu1 %v5450_v1 }
 0x50c   :  { %v5094_v32 = vpack.c.bf16 %v1154_v28, %v1153_v29 }
 0x50e   :  { %5096 = vmatpush3.bf16.msk.msra.mxu1 %vm5707_vm2, %v5094_v32 }
 0x50f   :  { %5097 = vmatprep.subr.bf16.mxu1 %v5450_v1 }
 0x511   :  { %4707 = vmatmul.mubr.msk.f32.vlgmr.msra.gmra.mrb[22].mxu1 %vm291_vm15, %v5761_v33  ;;  %v4172_v33 = vld [vmem:[%s6508_s7 + $0xe0] sm:$0xff] }
 0x512   :  { %4709 = vmatprep.mubr.msk.f32.mxu1 %vm5451_vm0, %v5452_v4  ;;  %5099 = vmatpush3.bf16.msra.mxu1 %v5098_v35 }
 0x513   :  { %5100 = vmatprep.subr.bf16.mxu1 %v5450_v1 }
 0x515   :  { %4710 = vmatmul.mubr.msk.f32.gmra.mrb[24].mxu1 %vm291_vm15, %v5774_v34  ;;  %v4173_v34 = vld [vmem:[%s6508_s7 + $0xe8] sm:$0xff] }
 0x516   :  { %4712 = vmatprep.mubr.msk.f32.mxu1 %vm5451_vm0, %v5452_v4  ;;  %5102 = vmatpush3.bf16.msra.mxu1 %v5101_v56  ;;  %v1728_v56 = vld [vmem:[%s6510_s9] sm:$0xff] }
 0x519   :  { %4713 = vmatmul.mubr.msk.f32.gmra.mrb[26].mxu1 %vm291_vm15, %v5782_v42  ;;  %v5113_v42 = vpack.c.bf16 %v4173_v34, %v4172_v33  ;;  %v1729_v34 = vld [vmem:[%s6510_s9 + $0x8] sm:$0xff] }
 0x51a   :  { %4723 = vmatprep.mubr.msk.f32.mxu1 %vm5451_vm0, %v5452_v4 }
 0x51b   :  { %5114 = vmatprep.subr.bf16.mxu0 %v5113_v42 }
 0x51d   :  { %4724 = vmatmul.mubr.msk.f32.vlgmr.msra.gmra.mrb[28].mxu1 %vm664_vm5, %v850_v26  ;;  %v5117_v26 = vpack.c.bf16 %v4175_v24, %v4174_v21  ;;  %v6013_v21 = vand.u32 127, %v77_v0 }
 0x51e   :  { %4726 = vmatprep.mubr.msk.f32.mxu1 %vm5451_vm0, %v5452_v4 }
 0x51f   :  { %vm1735_vm6 = vcmp.lt.s32.totalorder %v6013_v21, 8  ;;  %vm1738_vm8 = vcmp.ge.s32.totalorder %v6013_v21, 8  ;;  %vm1739_vm9 = vcmp.lt.s32.totalorder %v6013_v21, 16  ;;  %vm1742_vm11 = vcmp.ge.s32.totalorder %v6013_v21, 16 }
 0x520   :  { %vm1740_vm10 = vmand %vm1738_vm8, %vm1739_vm9  ;;  %vm1743_vm13 = vcmp.lt.s32.totalorder %v6013_v21, 24  ;;  %vm1746_vm15 = vcmp.ge.s32.totalorder %v6013_v21, 24  ;;  %vm1747_vm1 = vcmp.lt.s32.totalorder %v6013_v21, 32 }
 0x521   :  { %4727 = vmatmul.mubr.msk.f32.gmra.mrb[30].mxu1 %vm664_vm5, %v851_v27  ;;  %vm1744_vm14 = vmand %vm1742_vm11, %vm1743_vm13  ;;  %vm3579_vm13 = vcmask 64512  }
 0x522   :  { %4729 = vmatprep.mubr.msk.f32.mxu1 %vm5451_vm0, %v5452_v4  ;;  %v6055_v61 = vsel %vm1744_vm14, 1.0, %v5452_v4  ;;  %vm1748_vm2 = vmand %vm1746_vm15, %vm1747_vm1  ;;  %vm3668_vm1 = vcmask 1041408  }
 0x525   :  { %4730 = vmatmul.mubr.msk.f32.gmra.mrb[32].mxu1 %vm664_vm5, %v5824_v36 }
 0x526   :  { %4755 = vmatprep.mubr.msk.f32.mxu1 %vm310_vm3, %v5790_v47 }
 0x5e4   :  { %v1244_v47 = vpop.f32.mrb[22].mxu1 }
 0x5e5   :  { %v4708_v27 = vpop.f32.mrb[23].mxu1  ;;  %4741 = vmatmul.mubr.msk.f32.vlgmr.msra.gmra.mrb[24].mxu0 %vm664_vm5, %v1244_v47 }
 0x5e6   :  { %4743 = vmatprep.mubr.msk.f32.mxu0 %vm5451_vm0, %v5452_v4  ;;  %5116 = vmatpush3.bf16.msra.mxu0 %v5113_v42 }
 0x5e7   :  { %5118 = vmatprep.subr.bf16.mxu0 %v5117_v26 }
 0x5e8   :  { %v1249_v36 = vpop.f32.mrb[24].mxu1 }
 0x5e9   :  { %v4711_v41 = vpop.f32.mrb[25].mxu1  ;;  %4744 = vmatmul.mubr.msk.f32.gmra.mrb[26].mxu0 %vm664_vm5, %v1249_v36  ;;  %v6024_v36 = vsel %vm1735_vm6, 1.0, %v5452_v4  ;;  %vm2013_vm6 = vcmask 130048  }
 0x5ea   :  { %4746 = vmatprep.mubr.msk.f32.mxu0 %vm5451_vm0, %v5452_v4  ;;  %5120 = vmatpush3.bf16.msra.mxu0 %v5117_v26  ;;  %v4198_v26 = vld [vmem:[%s6512_s11] ss:$0 sm:$0xff] }
 0x5eb   :  { %5122 = vmatprep.subr.bf16.mxu0 %v5121_v62 }
 0x5ec   :  { %v1254_v37 = vpop.f32.mrb[26].mxu1 }
 0x5ed   :  { %v4714_v45 = vpop.f32.mrb[27].mxu1  ;;  %4747 = vmatmul.mubr.msk.f32.gmra.mrb[28].mxu0 %vm664_vm5, %v1254_v37 }
 0x5ee   :  { %4769 = vmatprep.mubr.msk.f32.mxu0 %vm664_vm5, %v1151_v18 }
 0x5f0   :  { %v1333_v40 = vpop.f32.mrb[28].mxu1 }
 0x5f1   :  { %v4725_v50 = vpop.f32.mrb[29].mxu1  ;;  %4770 = vmatmul.mubr.msk.f32.vlgmr.msra.gmra.mrb[30].mxu0 %vm664_vm5, %v1152_v17 }
 0x5f2   :  { %4772 = vmatprep.mubr.msk.f32.mxu0 %vm664_vm5, %v1153_v29  ;;  %5124 = vmatpush3.bf16.msra.mxu0 %v5121_v62 }
 0x5f3   :  { %5126 = vmatprep.subr.bf16.mxu0 %v5125_v63 }
 0x5f4   :  { %v1338_v52 = vpop.f32.mrb[30].mxu1 }
 0x5f5   :  { %v4728_v55 = vpop.f32.mrb[31].mxu1  ;;  %4773 = vmatmul.mubr.msk.f32.gmra.mrb[32].mxu0 %vm664_vm5, %v1154_v28  ;;  %v1759_v28 = vld [vmem:[%s6511_s10 + $0x8] sm:$0xff] }
 0x5f6   :  { %5128 = vmatpush3.bf16.msra.mxu0 %v5125_v63  ;;  %v5129_v32 = vpack.c.bf16 %v1759_v28, %v1758_v25  ;;  %v6062_v63 = vsel %vm1748_vm2, 1.0, %v5452_v4  ;;  %v1750_v25 = vand.u32 7, %v5567_v3  ;;  %v5455_v28 = vmov -1e+09  }
 0x5f8   :  { %v1343_v5 = vpop.f32.mrb[32].mxu1 }
 0x5f9   :  { %v4731_v58 = vpop.f32.mrb[33].mxu1 }
 0x5fa   :  { %v6047_v58 = vsel %vm1740_vm10, 1.0, %v5452_v4 }
 0x6b8   :  { %v1422_v53 = vpop.f32.mrb[24].mxu0 }
 0x6b9   :  { %v1423_v54 = vadd.f32 %v1422_v53, %v1333_v40  ;;  %v4742_v7 = vpop.f32.mrb[25].mxu0 }
 0x6ba   :  { %v6072_v7 = vsub.s32 5, %v5567_v3 }
 0x6bb   :  { %v1440_v11 = vadd.f32 %v1439_v60, %v1423_v54 }
 0x6bc   :  { %v1427_v8 = vpop.f32.mrb[26].mxu0 }
 0x6bd   :  { %v1428_v13 = vadd.f32 %v1427_v8, %v1338_v52  ;;  %v4745_v14 = vpop.f32.mrb[27].mxu0  ;;  %v1443_v17 = vmax.f32 %v1440_v11, 0.0  ;;  %v1723_v8 = vrot.slane %v5689_v44, %v6072_v7 }
 0x6bf   :  { %v1441_v15 = vadd.f32 %v1439_v60, %v1428_v13 }
 0x6c0   :  { %v1432_v16 = vpop.f32.mrb[28].mxu0 }
 0x6c1   :  { %v1444_v18 = vmax.f32 %v1441_v15, 0.0  ;;  %v1433_v19 = vadd.f32 %v1432_v16, %v1343_v5  ;;  %v4748_v20 = vpop.f32.mrb[29].mxu0 }
 0x6c3   :  { %v1442_v22 = vadd.f32 %v1439_v60, %v1433_v19  ;;  %v5109_v23 = vpack.c.bf16 %v1444_v18, %v1443_v17  ;;  %v5999_v33 = vadd.f32 %v1728_v56, %v1444_v18 }
 0x6c5   :  { %v1445_v29 = vmax.f32 %v1442_v22, 0.0  ;;  %5110 = vmatprep.subr.bf16.mxu1 %v5109_v23  ;;  %v1751_v22 = vand.u32 7, %v5575_v6 }
 0x6c6   :  { %5112 = vmatpush3.bf16.msra.mxu1 %v5109_v23  ;;  %v1752_v23 = vand.u32 7, %v6013_v21 }
 0x6c7   :  { %4753 = vmatprep.subr.mxu1 %v1445_v29 }
 0x6c8   :  { %v4774_v35 = vpop.f32.mrb[32].mxu0  ;;  %vm1753_vm4 = vcmp.eq.s32.totalorder %v1750_v25, %v1752_v23 }
 0x6c9   :  { %v1618_v38 = vpop.f32.mrb[33].mxu0  ;;  %v6083_v35 = vsel %vm1753_vm4, 0.0, %v5455_v28  ;;  %vm3661_vm4 = vcmask 80896  }
 0x6ca   :  { %4754 = vmatpush3.msra.mxu1 %v1445_v29 }
 0x6cb   :  { %4756 = vmatmul.mubr.msk.f32.vlgmr.msra.gmra.mrb[34].mxu1 %vm310_vm3, %v5834_v46  ;;  %5130 = vmatprep.subr.bf16.mxu1 %v5129_v32  ;;  %v6008_v46 = vadd.f32 %v1729_v34, %v1445_v29 }
 0x6cc   :  { %4758 = vmatprep.mubr.msk.f32.mxu1 %vm310_vm3, %v5838_v51  ;;  %5132 = vmatpush3.bf16.msra.mxu1 %v5129_v32 }
 0x6cd   :  { %5134 = vmatprep.subr.bf16.mxu1 %v5133_v39 }
 0x6cf   :  { %4759 = vmatmul.mubr.msk.f32.gmra.mrb[36].mxu1 %vm310_vm3, %v5851_v57  ;;  %vm1754_vm3 = vcmp.eq.s32.totalorder %v1751_v22, %v1752_v23 }
 0x6d0   :  { %5136 = vmatpush3.bf16.msra.mxu1 %v5133_v39  ;;  %4797 = vmatprep.mubr.msk.f32.mxu1 %vm664_vm5, %v5999_v33  ;;  %v6081_v44 = vsel %vm1754_vm3, 0.0, %v5455_v28  ;;  %vm5262_vm3 = vmpackc.low %vm3668_vm1, %vm5453_vm12 }
 0x6d3   :  { %4798 = vmatmul.mubr.msk.f32.vlgmr.msra.gmra.mrb[38].mxu1 %vm664_vm5, %v6008_v46 }
 0x79e   :  { %v4757_v51 = vpop.f32.mrb[34].mxu1 }
 0x79f   :  { %v1512_v42 = vpop.f32.mrb[35].mxu1 }
 0x7a0   :  { %4783 = vmatprep.mubr.msk.f32.mxu0 %vm664_vm5, %v1512_v42 }
 0x7a1   :  { %4784 = vmatmul.mubr.msk.f32.vlgmr.msra.gmra.mrb[30].mxu0 %vm664_vm5, %v4757_v51 }
 0x7a2   :  { %v4760_v24 = vpop.f32.mrb[36].mxu1 }
 0x7a3   :  { %v1522_v57 = vpop.f32.mrb[37].mxu1 }
 0x7a4   :  { %4786 = vmatprep.mubr.msk.f32.mxu0 %vm664_vm5, %v1522_v57 }
 0x7a5   :  { %4787 = vmatmul.mubr.msk.f32.gmra.mrb[34].mxu0 %vm664_vm5, %v4760_v24 }
 0x7a6   :  { %v4799_v47 = vpop.f32.mrb[38].mxu1 }
 0x7a7   :  { %v1847_v27 = vadd.f32 %v4799_v47, %v4198_v26  ;;  %v1841_v0 = vpop.f32.mrb[39].mxu1 }
 0x7a8   :  { %v1842_v41 = vadd.f32 %v4198_v26, %v1841_v0 }
 0x7a9   :  { %v1851_v59 = vmul.f32 %v1847_v27, %v6024_v36  ;;  %v1853_v62 = vmul.f32 %v1847_v27, %v6047_v58  ;;  %v1855_v53 = vmul.f32 %v1847_v27, %v6055_v61  ;;  %v1857_v60 = vmul.f32 %v1847_v27, %v6062_v63 }
 0x7aa   :  { %v6026_v37 = vpack.i.bf16 %v1847_v27, %v1842_v41  ;;  %v1850_v45 = vmul.f32 %v1842_v41, %v6024_v36  ;;  %v1852_v2 = vmul.f32 %v1842_v41, %v6047_v58  ;;  %v1854_v49 = vmul.f32 %v1842_v41, %v6055_v61 }
 0x7ab   :  { %v1856_v54 = vmul.f32 %v1842_v41, %v6062_v63 }
 0x7ac   :  { %5300 = vrot.lane.b32.xlu1 %v6026_v37, %s5454_s5  ;;  %4804 = vmatprep.mubr.msk.f32.mxu1 %vm664_vm5, %v1850_v45 }
 0x81e   :  { %v5301_v40 = vpop.permute.xlu1 %5300 }
 0x81f   :  { %v5303_v50 = vunpack.i.h.bf16 %v5301_v40  ;;  %v5302_v52 = vunpack.i.l.bf16 %v5301_v40 }
 0x821   :  { %v5137_v5 = vpack.c.bf16 %v5303_v50, %v5302_v52 }
 0x823   :  { %5139 = vmatprep.subr.msk.bf16.mxu1 %vm6034_vm7, %v5137_v5 }
 0x824   :  { %5142 = vmatpush3.bf16.xpose.msk.msra.mxu1 %vm6034_vm7, %v5137_v5 }
 0x82b   :  { %4805 = vmatmul.mubr.msk.f32.vlgmr.msra.gmra.mrb[40].mxu1 %vm664_vm5, %v1851_v59 }
 0x82c   :  { %4807 = vmatprep.mubr.msk.f32.mxu1 %vm664_vm5, %v1852_v2 }
 0x82f   :  { %4808 = vmatmul.mubr.msk.f32.gmra.mrb[42].mxu1 %vm664_vm5, %v1853_v62 }
 0x830   :  { %4810 = vmatprep.mubr.msk.f32.mxu1 %vm664_vm5, %v1854_v49 }
 0x833   :  { %4811 = vmatmul.mubr.msk.f32.gmra.mrb[44].mxu1 %vm664_vm5, %v1855_v53 }
 0x834   :  { %4813 = vmatprep.mubr.msk.f32.mxu1 %vm664_vm5, %v1856_v54 }
 0x837   :  { %4814 = vmatmul.mubr.msk.f32.gmra.mrb[46].mxu1 %vm664_vm5, %v1857_v60 }
 0x874   :  { %v4785_v11 = vpop.f32.mrb[30].mxu0 }
 0x875   :  { %v1725_v13 = vadd.f32 %v4785_v11, %v1723_v8  ;;  %v1703_v14 = vpop.f32.mrb[31].mxu0 }
 0x876   :  { %v1724_v15 = vadd.f32 %v1723_v8, %v1703_v14 }
 0x877   :  { %v1727_v16 = vmax.f32 %v1725_v13, 0.0 }
 0x878   :  { %v1726_v17 = vmax.f32 %v1724_v15, 0.0  ;;  %v4788_v18 = vpop.f32.mrb[34].mxu0 }
 0x879   :  { %v1713_v19 = vpop.f32.mrb[35].mxu0 }
 0x87a   :  { %v6076_v20 = vpack.c.bf16 %v1727_v16, %v1726_v17 }
 0x8fe   :  { %v4806_v29 = vpop.f32.mrb[40].mxu1 }
 0x8ff   :  { %v1998_v30 = vmul.f32 0.35355338, %v4806_v29  ;;  %v1958_v31 = vpop.f32.mrb[41].mxu1 }
 0x900   :  { %v1997_v32 = vmul.f32 0.35355338, %v1958_v31 }
 0x901   :  { %v2006_v38 = vadd.f32 %v1998_v30, %v6081_v44 }
 0x902   :  { %v4809_v39 = vpop.f32.mrb[42].mxu1  ;;  %v2005_v3 = vadd.f32 %v1997_v32, %v6083_v35 }
 0x903   :  { %v2000_v6 = vmul.f32 0.35355338, %v4809_v39  ;;  %v1968_v56 = vpop.f32.mrb[43].mxu1  ;;  %v2017_v34 = vsel %vm2013_vm6, %v2006_v38, -inf }
 0x904   :  { %2018 = vmax.xlane.f32.xlu0 %v2017_v34  ;;  %v1999_v42 = vmul.f32 0.35355338, %v1968_v56  ;;  %v2014_v57 = vsel %vm2013_vm6, %v2005_v3, -inf }
 0x905   :  { %v2008_v26 = vadd.f32 %v2000_v6, %v6081_v44 }
 0x906   :  { %v4812_v51 = vpop.f32.mrb[44].mxu1  ;;  %v2007_v50 = vadd.f32 %v1999_v42, %v6083_v35 }
 0x907   :  { %v1978_v24 = vpop.f32.mrb[45].mxu1  ;;  %v2002_v41 = vmul.f32 0.35355338, %v4812_v51  ;;  %v2023_v40 = vsel %vm2013_vm6, %v2008_v26, -inf }
 0x908   :  { %v2001_v47 = vmul.f32 0.35355338, %v1978_v24  ;;  %2015 = vmax.xlane.f32.xlu0 %v2014_v57  ;;  %v2020_v59 = vsel %vm2013_vm6, %v2007_v50, -inf }
 0x909   :  { %v2010_v2 = vadd.f32 %v2002_v41, %v6081_v44 }
 0x90a   :  { %v4815_v27 = vpop.f32.mrb[46].mxu1  ;;  %v2009_v0 = vadd.f32 %v2001_v47, %v6083_v35 }
 0x90b   :  { %v1988_v45 = vpop.f32.mrb[47].mxu1  ;;  %v2004_v62 = vmul.f32 0.35355338, %v4815_v27  ;;  %v2029_v49 = vsel %vm2013_vm6, %v2010_v2, -inf }
 0x90c   :  { %2024 = vmax.xlane.f32.xlu0 %v2023_v40  ;;  %v2026_v52 = vsel %vm2013_vm6, %v2009_v0, -inf  ;;  %v2003_v5 = vmul.f32 0.35355338, %v1988_v45 }
 0x90d   :  { %2027 = vmax.xlane.f32.xlu1 %v2026_v52  ;;  %v2012_v60 = vadd.f32 %v2004_v62, %v6081_v44 }
 0x90e   :  { %v2011_v53 = vadd.f32 %v2003_v5, %v6083_v35 }
 0x90f   :  { %v2035_v8 = vsel %vm2013_vm6, %v2012_v60, -inf }
 0x910   :  { %2021 = vmax.xlane.f32.xlu0 %v2020_v59  ;;  %v2032_v54 = vsel %vm2013_vm6, %v2011_v53, -inf }
 0x914   :  { %2030 = vmax.xlane.f32.xlu0 %v2029_v49 }
 0x918   :  { %2033 = vmax.xlane.f32.xlu0 %v2032_v54 }
 0x91c   :  { %2036 = vmax.xlane.f32.xlu0 %v2035_v8 }
 0x991   :  { %v2019_v11 = vpop.xlane.xlu0 %2018 }
 0x992   :  { %v2039_v13 = vsub.f32 %v2006_v38, %v2019_v11 }
 0x994   :  { %v2048_v14 = vmul.f32 1.442695, %v2039_v13 }
 0x995   :  { %v2016_v15 = vpop.xlane.xlu0 %2015 }
 0x996   :  { %5335 = vpow2.f32 %v2048_v14  ;;  %v2038_v16 = vsub.f32 %v2005_v3, %v2016_v15 }
 0x998   :  { %v2046_v17 = vmul.f32 1.442695, %v2038_v16 }
 0x999   :  { %v2025_v18 = vpop.xlane.xlu0 %2024 }
 0x99a   :  { %5337 = vpow2.f32 %v2046_v17  ;;  %v2041_v19 = vsub.f32 %v2008_v26, %v2025_v18  ;;  %v2028_v22 = vpop.xlane.xlu1 %2027 }
 0x99b   :  { %v2042_v25 = vsub.f32 %v2009_v0, %v2028_v22 }
 0x99c   :  { %v2052_v23 = vmul.f32 1.442695, %v2041_v19 }
 0x99d   :  { %v2022_v28 = vpop.xlane.xlu0 %2021  ;;  %v2054_v31 = vmul.f32 1.442695, %v2042_v25 }
 0x99e   :  { %5339 = vpow2.f32 %v2052_v23  ;;  %v2040_v29 = vsub.f32 %v2007_v50, %v2022_v28 }
 0x9a0   :  { %v6101_v30 = vpop.eup %5335  ;;  %v2050_v32 = vmul.f32 1.442695, %v2040_v29 }
 0x9a1   :  { %v2031_v39 = vpop.xlane.xlu0 %2030  ;;  %v2065_v38 = vsel %vm2013_vm6, %v6101_v30, 0.0 }
 0x9a2   :  { %5341 = vpow2.f32 %v2050_v32  ;;  %v2043_v6 = vsub.f32 %v2010_v2, %v2031_v39  ;;  %2066 = vadd.xlane.f32.xlu0 %v2065_v38 }
 0x9a3   :  { %5343 = vpow2.f32 %v2054_v31 }
 0x9a4   :  { %v5338_v56 = vpop.eup %5337  ;;  %v2056_v34 = vmul.f32 1.442695, %v2043_v6 }
 0x9a5   :  { %v2034_v3 = vpop.xlane.xlu0 %2033  ;;  %v2062_v51 = vsel %vm2013_vm6, %v5338_v56, 0.0 }
 0x9a6   :  { %v2044_v42 = vsub.f32 %v2011_v53, %v2034_v3  ;;  %2063 = vadd.xlane.f32.xlu0 %v2062_v51  ;;  %5345 = vpow2.f32 %v2056_v34 }
 0x9a8   :  { %v5340_v24 = vpop.eup %5339  ;;  %v2058_v57 = vmul.f32 1.442695, %v2044_v42  ;;  %v2251_v42 = vld [vmem:[%s6513_s12] sm:$0xff] }
 0x9a9   :  { %v2037_v26 = vpop.xlane.xlu0 %2036  ;;  %v2071_v47 = vsel %vm2013_vm6, %v5340_v24, 0.0 }
 0x9aa   :  { %5347 = vpow2.f32 %v2058_v57  ;;  %v2045_v27 = vsub.f32 %v2012_v60, %v2037_v26  ;;  %2072 = vadd.xlane.f32.xlu0 %v2071_v47  ;;  %v2253_v26 = vld [vmem:[%s6513_s12 + $0x10] sm:$0xff]  ;;  %v2254_v47 = vld [vmem:[%s6513_s12 + $0x18] sm:$0xff] }
 0x9ac   :  { %v5342_v0 = vpop.eup %5341  ;;  %v2060_v41 = vmul.f32 1.442695, %v2045_v27  ;;  %v5151_v27 = vpack.c.bf16 %v2254_v47, %v2253_v26  ;;  %v2383_v47 = vld [vmem:[%s6514_s13 + $0x10] sm:$0xff] }
 0x9ad   :  { %v2068_v45 = vsel %vm2013_vm6, %v5342_v0, 0.0  ;;  %v5344_v40 = vpop.eup %5343 }
 0x9ae   :  { %5349 = vpow2.f32 %v2060_v41  ;;  %2069 = vadd.xlane.f32.xlu0 %v2068_v45  ;;  %v2074_v50 = vsel %vm2013_vm6, %v5344_v40, 0.0 }
 0x9b0   :  { %v5346_v52 = vpop.eup %5345 }
 0x9b1   :  { %v2077_v59 = vsel %vm2013_vm6, %v5346_v52, 0.0 }
 0x9b2   :  { %2075 = vadd.xlane.f32.xlu0 %v2074_v50 }
 0x9b4   :  { %v5348_v5 = vpop.eup %5347 }
 0x9b5   :  { %v2080_v2 = vsel %vm2013_vm6, %v5348_v5, 0.0 }
 0x9b6   :  { %2078 = vadd.xlane.f32.xlu0 %v2077_v59  ;;  %2081 = vadd.xlane.f32.xlu1 %v2080_v2 }
 0x9b8   :  { %v5350_v62 = vpop.eup %5349 }
 0x9b9   :  { %v2083_v49 = vsel %vm2013_vm6, %v5350_v62, 0.0 }
 0x9ba   :  { %2084 = vadd.xlane.f32.xlu0 %v2083_v49 }
 0x9c7   :  { %5305 = vrot.lane.b32.xlu1 %v6026_v37, %s5456_s29 }
 0xa2f   :  { %v2067_v53 = vpop.xlane.xlu0 %2066 }
 0xa33   :  { %v2064_v54 = vpop.xlane.xlu0 %2063 }
 0xa34   :  { %5351 = vrcp.f32 %v2064_v54 }
 0xa35   :  { %5353 = vrcp.f32 %v2067_v53 }
 0xa37   :  { %v2073_v60 = vpop.xlane.xlu0 %2072 }
 0xa3b   :  { %v2070_v8 = vpop.xlane.xlu0 %2069 }
 0xa3c   :  { %5355 = vrcp.f32 %v2070_v8 }
 0xa3d   :  { %5357 = vrcp.f32 %v2073_v60 }
 0xa3e   :  { %v5352_v11 = vpop.eup %5351 }
 0xa3f   :  { %v2076_v13 = vpop.xlane.xlu0 %2075  ;;  %v2087_v14 = vmul.f32 %v5352_v11, %v5338_v56  ;;  %v5354_v23 = vpop.eup %5353 }
 0xa40   :  { %5359 = vrcp.f32 %v2076_v13  ;;  %v2089_v28 = vmul.f32 %v5354_v23, %v6101_v30 }
 0xa41   :  { %4820 = vmatprep.mubr.msk.f32.mxu0 %vm2013_vm6, %v2087_v14 }
 0xa43   :  { %v2082_v15 = vpop.xlane.xlu1 %2081  ;;  %v2079_v16 = vpop.xlane.xlu0 %2078 }
 0xa44   :  { %5361 = vrcp.f32 %v2079_v16 }
 0xa45   :  { %5363 = vrcp.f32 %v2082_v15 }
 0xa46   :  { %v5356_v25 = vpop.eup %5355 }
 0xa47   :  { %v5306_v17 = vpop.permute.xlu1 %5305  ;;  %v2085_v22 = vpop.xlane.xlu0 %2084  ;;  %v2091_v31 = vmul.f32 %v5356_v25, %v5342_v0 }
 0xa48   :  { %v5308_v18 = vunpack.i.h.bf16 %v5306_v17  ;;  %v5307_v19 = vunpack.i.l.bf16 %v5306_v17  ;;  %5365 = vrcp.f32 %v2085_v22  ;;  %v5358_v29 = vpop.eup %5357 }
 0xa49   :  { %v2093_v39 = vmul.f32 %v5358_v29, %v5340_v24  ;;  %v2252_v24 = vld [vmem:[%s6513_s12 + $0x8] sm:$0xff] }
 0xa4a   :  { %v5143_v37 = vpack.c.bf16 %v5308_v18, %v5307_v19  ;;  %v5360_v32 = vpop.eup %5359  ;;  %v5147_v57 = vpack.c.bf16 %v2252_v24, %v2251_v42  ;;  %v6148_v19 = vld [vmem:[%s6517_s16] sm:$0x3f] }
 0xa4b   :  { %v2095_v6 = vmul.f32 %v5360_v32, %v5344_v40 }
 0xa4c   :  { %5144 = vmatprep.subr.bf16.mxu0 %v5143_v37  ;;  %5148 = vmatprep.subr.bf16.mxu1 %v5147_v57 }
 0xa4d   :  { %5146 = vmatpush3.bf16.msra.mxu0 %v5143_v37  ;;  %5150 = vmatpush3.bf16.msra.mxu1 %v5147_v57  ;;  %v2258_v37 = vrot.slane %v6148_v19, %v5743_v12  ;;  %v2382_v57 = vld [vmem:[%s6514_s13 + $0x8] sm:$0xff] }
 0xa4e   :  { %v5362_v38 = vpop.eup %5361  ;;  %5152 = vmatprep.subr.bf16.mxu1 %v5151_v27 }
 0xa4f   :  { %v5364_v56 = vpop.eup %5363  ;;  %v2097_v34 = vmul.f32 %v5362_v38, %v5346_v52 }
 0xa50   :  { %4821 = vmatmul.mubr.msk.f32.vlgmr.msra.gmra.mrb[36].mxu0 %vm2013_vm6, %v2089_v28  ;;  %v2099_v51 = vmul.f32 %v5364_v56, %v5348_v5 }
 0xa51   :  { %4823 = vmatprep.mubr.msk.f32.mxu0 %vm2013_vm6, %v2091_v31  ;;  %5154 = vmatpush3.bf16.msra.mxu1 %v5151_v27  ;;  %v2384_v27 = vld [vmem:[%s6514_s13 + $0x18] sm:$0xff] }
 0xa52   :  { %v5366_v3 = vpop.eup %5365 }
 0xa53   :  { %v2101_v30 = vmul.f32 %v5366_v3, %v5350_v62 }
 0xa54   :  { %4824 = vmatmul.mubr.msk.f32.gmra.mrb[38].mxu0 %vm2013_vm6, %v2093_v39 }
 0xa55   :  { %4826 = vmatprep.mubr.msk.f32.mxu0 %vm2013_vm6, %v2095_v6 }
 0xa58   :  { %4827 = vmatmul.mubr.msk.f32.gmra.mrb[40].mxu0 %vm2013_vm6, %v2097_v34 }
 0xa59   :  { %4829 = vmatprep.mubr.msk.f32.mxu0 %vm2013_vm6, %v2099_v51 }
 0xa5c   :  { %4830 = vmatmul.mubr.msk.f32.gmra.mrb[42].mxu0 %vm2013_vm6, %v2101_v30 }
 0xb23   :  { %v4822_v0 = vpop.f32.mrb[36].mxu0 }
 0xb24   :  { %v2198_v41 = vpop.f32.mrb[37].mxu0  ;;  %v2238_v40 = vmul.f32 %v4822_v0, %v6024_v36  ;;  %v5159_v0 = vpack.c.bf16 %v2384_v27, %v2383_v47 }
 0xb25   :  { %v2237_v5 = vmul.f32 %v2198_v41, %v6024_v36 }
 0xb27   :  { %v4825_v45 = vpop.f32.mrb[38].mxu0 }
 0xb28   :  { %v2240_v50 = vmul.f32 %v4825_v45, %v6047_v58  ;;  %v2208_v52 = vpop.f32.mrb[39].mxu0 }
 0xb29   :  { %v2239_v59 = vmul.f32 %v2208_v52, %v6047_v58 }
 0xb2a   :  { %v2242_v2 = vadd.f32 %v2240_v50, %v2238_v40 }
 0xb2b   :  { %v2241_v62 = vadd.f32 %v2239_v59, %v2237_v5  ;;  %v4828_v49 = vpop.f32.mrb[40].mxu0  ;;  %v2372_v59 = vrot.slane %v6148_v19, %v5684_v43 }
 0xb2c   :  { %v2244_v53 = vmul.f32 %v4828_v49, %v6055_v61  ;;  %v2218_v54 = vpop.f32.mrb[41].mxu0  ;;  %v2378_v49 = vrot.slane %v6148_v19, %v5804_v9 }
 0xb2d   :  { %v2243_v60 = vmul.f32 %v2218_v54, %v6055_v61 }
 0xb2e   :  { %v2246_v8 = vadd.f32 %v2244_v53, %v2242_v2 }
 0xb2f   :  { %v2245_v11 = vadd.f32 %v2243_v60, %v2241_v62  ;;  %v4831_v13 = vpop.f32.mrb[42].mxu0 }
 0xb30   :  { %v2248_v14 = vmul.f32 %v4831_v13, %v6062_v63  ;;  %v2228_v15 = vpop.f32.mrb[43].mxu0 }
 0xb31   :  { %v2247_v16 = vmul.f32 %v2228_v15, %v6062_v63  ;;  %v2528_v15 = vld [vmem:[%s6516_s15 + $0x8] sm:$0xff] }
 0xb32   :  { %v2250_v17 = vadd.f32 %v2248_v14, %v2246_v8  ;;  %v2527_v14 = vld [vmem:[%s6516_s15] sm:$0xff] }
 0xb33   :  { %v2249_v18 = vadd.f32 %v2247_v16, %v2245_v11  ;;  %v5163_v16 = vpack.c.bf16 %v2528_v15, %v2527_v14 }
 0xb35   :  { %4840 = vmatprep.mubr.msk.f32.mxu1 %vm664_vm5, %v2249_v18  ;;  %5164 = vmatprep.subr.bf16.mxu1 %v5163_v16  ;;  %v2530_v18 = vld [vmem:[%s6516_s15 + $0x18] sm:$0xff] }
 0xb36   :  { %4841 = vmatmul.mubr.msk.f32.vlgmr.msra.gmra.mrb[48].mxu1 %vm664_vm5, %v2250_v17  ;;  %v2529_v17 = vld [vmem:[%s6516_s15 + $0x10] sm:$0xff] }
 0xb37   :  { %5166 = vmatpush3.bf16.msra.mxu1 %v5163_v16 }
 0xc09   :  { %v4842_v22 = vpop.f32.mrb[48].mxu1 }
 0xc0a   :  { %v2331_v23 = vpop.f32.mrb[49].mxu1  ;;  %v2337_v25 = vadd.f32 %v4842_v22, %v2258_v37  ;;  %v2531_v22 = vld [vmem:[%s6516_s15 + $0x20] sm:$0xff] }
 0xc0b   :  { %v2332_v28 = vadd.f32 %v2331_v23, %v2258_v37  ;;  %v5167_v37 = vpack.c.bf16 %v2530_v18, %v2529_v17  ;;  %v2532_v23 = vld [vmem:[%s6516_s15 + $0x28] sm:$0xff] }
 0xc0c   :  { %v2341_v32 = vadd.f32 %v2337_v25, %v6008_v46  ;;  %v2381_v46 = vld [vmem:[%s6514_s13] sm:$0xff]  ;;  %v5171_v25 = vpack.c.bf16 %v2532_v23, %v2531_v22 }
 0xc0d   :  { %v2340_v29 = vadd.f32 %v2332_v28, %v5999_v33  ;;  %v5155_v26 = vpack.c.bf16 %v2382_v57, %v2381_v46  ;;  %5168 = vmatprep.subr.bf16.mxu1 %v5167_v37  ;;  %v2533_v28 = vld [vmem:[%s6516_s15 + $0x30] sm:$0xff]  ;;  %v4221_v46 = vld [vmem:[%s6515_s14] ss:$0 sm:$0xff] }
 0xc0e   :  { %v2345_v39 = vsel %vm664_vm5, %v2341_v32, 0.0  ;;  %5170 = vmatpush3.bf16.msra.mxu1 %v5167_v37 }
 0xc0f   :  { %v2342_v31 = vsel %vm664_vm5, %v2340_v29, 0.0  ;;  %5156 = vmatprep.subr.bf16.mxu0 %v5155_v26  ;;  %5172 = vmatprep.subr.bf16.mxu1 %v5171_v25 }
 0xc10   :  { %2343 = vadd.xlane.f32.xlu0 %v2342_v31  ;;  %5158 = vmatpush3.bf16.msra.mxu0 %v5155_v26 }
 0xc11   :  { %5160 = vmatprep.subr.bf16.mxu0 %v5159_v0 }
 0xc12   :  { %5174 = vmatpush3.bf16.msra.mxu1 %v5171_v25 }
 0xc14   :  { %2346 = vadd.xlane.f32.xlu0 %v2345_v39  ;;  %5162 = vmatpush3.bf16.msra.mxu0 %v5159_v0  ;;  %v2536_v39 = vld [vmem:[%s6516_s15 + $0x48] sm:$0xff] }
 0xc9d   :  { %v2344_v38 = vpop.xlane.xlu0 %2343 }
 0xc9e   :  { %v2349_v6 = vmul.f32 0.03125, %v2344_v38 }
 0xca0   :  { %v2351_v56 = vsub.f32 %v2340_v29, %v2349_v6  ;;  %v2534_v29 = vld [vmem:[%s6516_s15 + $0x38] sm:$0xff]  ;;  %v2537_v6 = vld [vmem:[%s6516_s15 + $0x50] sm:$0xff] }
 0xca1   :  { %v2347_v34 = vpop.xlane.xlu0 %2346  ;;  %v5175_v31 = vpack.c.bf16 %v2534_v29, %v2533_v28 }
 0xca2   :  { %v2350_v3 = vmul.f32 0.03125, %v2347_v34  ;;  %v2353_v51 = vmul.f32 %v2351_v56, %v2351_v56 }
 0xca3   :  { %5176 = vmatprep.subr.bf16.mxu1 %v5175_v31 }
 0xca4   :  { %v2352_v30 = vsub.f32 %v2341_v32, %v2350_v3  ;;  %v2355_v42 = vsel %vm664_vm5, %v2353_v51, 0.0  ;;  %5178 = vmatpush3.bf16.msra.mxu1 %v5175_v31  ;;  %v2535_v32 = vld [vmem:[%s6516_s15 + $0x40] sm:$0xff]  ;;  %v2540_v51 = vld [vmem:[%s6516_s15 + $0x68] sm:$0xff] }
 0xca5   :  { %2356 = vadd.xlane.f32.xlu0 %v2355_v42  ;;  %v5179_v38 = vpack.c.bf16 %v2536_v39, %v2535_v32  ;;  %v2539_v3 = vld [vmem:[%s6516_s15 + $0x60] sm:$0xff]  ;;  %v2541_v42 = vld [vmem:[%s6516_s15 + $0x70] sm:$0xff] }
 0xca6   :  { %v2354_v24 = vmul.f32 %v2352_v30, %v2352_v30 }
 0xca7   :  { %5180 = vmatprep.subr.bf16.mxu1 %v5179_v38 }
 0xca8   :  { %v2358_v33 = vsel %vm664_vm5, %v2354_v24, 0.0  ;;  %5182 = vmatpush3.bf16.msra.mxu1 %v5179_v38  ;;  %v2542_v24 = vld [vmem:[%s6516_s15 + $0x78] sm:$0xff] }
 0xca9   :  { %2359 = vadd.xlane.f32.xlu0 %v2358_v33  ;;  %v5191_v33 = vpack.c.bf16 %v2542_v24, %v2541_v42 }
 0xd32   :  { %v2357_v41 = vpop.xlane.xlu0 %2356 }
 0xd33   :  { %v2361_v45 = vmul.f32 0.03125, %v2357_v41 }
 0xd35   :  { %v2363_v40 = vadd.f32 1e-05, %v2361_v45 }
 0xd36   :  { %v2360_v50 = vpop.xlane.xlu0 %2359 }
 0xd37   :  { %5367 = vrsqrt.f32 %v2363_v40  ;;  %v2362_v52 = vmul.f32 0.03125, %v2360_v50 }
 0xd39   :  { %v2364_v5 = vadd.f32 1e-05, %v2362_v52 }
 0xd3b   :  { %5369 = vrsqrt.f32 %v2364_v5 }
 0xd41   :  { %v5368_v2 = vpop.eup %5367 }
 0xd42   :  { %v2367_v62 = vmul.f32 %v5368_v2, %v2351_v56  ;;  %v2538_v56 = vld [vmem:[%s6516_s15 + $0x58] sm:$0xff] }
 0xd43   :  { %v5183_v34 = vpack.c.bf16 %v2538_v56, %v2537_v6 }
 0xd44   :  { %v2373_v53 = vmul.f32 %v2372_v59, %v2367_v62 }
 0xd45   :  { %v5370_v54 = vpop.eup %5369  ;;  %5184 = vmatprep.subr.bf16.mxu1 %v5183_v34 }
 0xd46   :  { %v2368_v60 = vmul.f32 %v5370_v54, %v2352_v30  ;;  %v6174_v8 = vadd.f32 %v2378_v49, %v2373_v53  ;;  %5186 = vmatpush3.bf16.msra.mxu1 %v5183_v34  ;;  %v5187_v30 = vpack.c.bf16 %v2540_v51, %v2539_v3 }
 0xd48   :  { %v2374_v11 = vmul.f32 %v2372_v59, %v2368_v60  ;;  %4851 = vmatprep.mubr.msk.f32.mxu0 %vm664_vm5, %v6174_v8  ;;  %5188 = vmatprep.subr.bf16.mxu1 %v5187_v30 }
 0xd4a   :  { %v6178_v13 = vadd.f32 %v2378_v49, %v2374_v11  ;;  %5190 = vmatpush3.bf16.msra.mxu1 %v5187_v30 }
 0xd4b   :  { %5192 = vmatprep.subr.bf16.mxu1 %v5191_v33 }
 0xd4c   :  { %4852 = vmatmul.mubr.msk.f32.vlgmr.msra.gmra.mrb[44].mxu0 %vm664_vm5, %v6178_v13 }
 0xd4e   :  { %5194 = vmatpush3.bf16.msra.mxu1 %v5191_v33 }
 0xe1f   :  { %v4853_v57 = vpop.f32.mrb[44].mxu0 }
 0xe20   :  { %v2470_v26 = vadd.f32 %v4853_v57, %v4221_v46  ;;  %v2464_v47 = vpop.f32.mrb[45].mxu0 }
 0xe21   :  { %v2465_v27 = vadd.f32 %v4221_v46, %v2464_v47 }
 0xe22   :  { %v2476_v0 = vmul.f32 0.70710677, %v2470_v26 }
 0xe23   :  { %v2475_v41 = vmul.f32 0.70710677, %v2465_v27 }
 0xe24   :  { %v2478_v45 = vand.u32 2147483647, %v2476_v0  ;;  %vm2518_vm8 = vcmp.ge.f32.partialorder %v2476_v0, 0.0 }
 0xe25   :  { %v2477_v40 = vand.u32 2147483647, %v2475_v41  ;;  %vm2517_vm9 = vcmp.ge.f32.partialorder %v2475_v41, 0.0 }
 0xe26   :  { %v2480_v50 = vmul.f32 0.3275911, %v2478_v45  ;;  %v2506_v2 = vsub.f32 0.0, %v2478_v45 }
 0xe27   :  { %v2479_v52 = vmul.f32 0.3275911, %v2477_v40  ;;  %v2505_v62 = vsub.f32 0.0, %v2477_v40 }
 0xe28   :  { %v2482_v5 = vadd.f32 1.0, %v2480_v50  ;;  %v2508_v53 = vmul.f32 %v2506_v2, %v2478_v45 }
 0xe29   :  { %v2481_v59 = vadd.f32 1.0, %v2479_v52  ;;  %v2507_v11 = vmul.f32 %v2505_v62, %v2477_v40  ;;  %v2473_v52 = vmul.f32 0.5, %v2465_v27 }
 0xe2a   :  { %5371 = vrcp.f32 %v2482_v5  ;;  %v2511_v16 = vmul.f32 1.442695, %v2508_v53 }
 0xe2b   :  { %5373 = vrcp.f32 %v2481_v59  ;;  %v2509_v37 = vmul.f32 1.442695, %v2507_v11  ;;  %v2474_v59 = vmul.f32 0.5, %v2470_v26 }
 0xe2c   :  { %5375 = vpow2.f32 %v2511_v16 }
 0xe2d   :  { %5377 = vpow2.f32 %v2509_v37 }
 0xe34   :  { %v5372_v49 = vpop.eup %5371 }
 0xe35   :  { %v5374_v54 = vpop.eup %5373  ;;  %v2488_v60 = vmul.f32 1.0614054, %v5372_v49 }
 0xe36   :  { %v2487_v14 = vmul.f32 1.0614054, %v5374_v54  ;;  %v5376_v3 = vpop.eup %5375 }
 0xe37   :  { %v4225_v15 = vadd.f32 -1.4531521, %v2488_v60  ;;  %v5378_v30 = vpop.eup %5377 }
 0xe38   :  { %v4224_v17 = vadd.f32 -1.4531521, %v2487_v14 }
 0xe39   :  { %v2492_v18 = vmul.f32 %v5372_v49, %v4225_v15 }
 0xe3a   :  { %v2491_v22 = vmul.f32 %v5374_v54, %v4224_v17 }
 0xe3b   :  { %v2494_v23 = vadd.f32 1.4214138, %v2492_v18 }
 0xe3c   :  { %v2493_v25 = vadd.f32 1.4214138, %v2491_v22 }
 0xe3d   :  { %v2496_v28 = vmul.f32 %v5372_v49, %v2494_v23 }
 0xe3e   :  { %v2495_v29 = vmul.f32 %v5374_v54, %v2493_v25 }
 0xe3f   :  { %v4227_v31 = vadd.f32 -0.28449672, %v2496_v28  ;;  %v4230_v28 = vld [vmem:[%s6511_s10 + $0x28] sm:$0xff] }
 0xe40   :  { %v4226_v32 = vadd.f32 -0.28449672, %v2495_v29 }
 0xe41   :  { %v2500_v39 = vmul.f32 %v5372_v49, %v4227_v31  ;;  %v4231_v31 = vld [vmem:[%s6511_s10 + $0x30] sm:$0xff] }
 0xe42   :  { %v2499_v38 = vmul.f32 %v5374_v54, %v4226_v32  ;;  %v4232_v32 = vld [vmem:[%s6511_s10 + $0x38] sm:$0xff] }
 0xe43   :  { %v2502_v6 = vadd.f32 0.2548296, %v2500_v39  ;;  %v5199_v39 = vpack.c.bf16 %v4232_v32, %v4231_v31 }
 0xe44   :  { %v2501_v56 = vadd.f32 0.2548296, %v2499_v38 }
 0xe45   :  { %v2504_v34 = vmul.f32 %v5372_v49, %v2502_v6  ;;  %v2546_v49 = vrot.slane %v6148_v19, %v5890_v10 }
 0xe46   :  { %v2503_v51 = vmul.f32 %v5374_v54, %v2501_v56 }
 0xe47   :  { %v2514_v42 = vmul.f32 %v5376_v3, %v2504_v34 }
 0xe48   :  { %v2513_v24 = vmul.f32 %v5378_v30, %v2503_v51  ;;  %v2653_v30 = vrot.slane %v6148_v19, %v5976_v48 }
 0xe49   :  { %v2516_v33 = vsub.f32 1.0, %v2514_v42 }
 0xe4a   :  { %v2515_v46 = vsub.f32 1.0, %v2513_v24 }
 0xe4b   :  { %v2520_v57 = vsub.f32 0.0, %v2516_v33 }
 0xe4c   :  { %v2519_v47 = vsub.f32 0.0, %v2515_v46 }
 0xe4d   :  { %v2522_v45 = vsel %vm2518_vm8, %v2516_v33, %v2520_v57  ;;  %v2659_v33 = vrot.slane %v6148_v19, %v6072_v7  ;;  %vm4094_vm8 = vcmask 90112  }
 0xe4e   :  { %v2524_v40 = vadd.f32 1.0, %v2522_v45  ;;  %v2521_v50 = vsel %vm2517_vm9, %v2515_v46, %v2519_v47 }
 0xe4f   :  { %v2523_v5 = vadd.f32 1.0, %v2521_v50 }
 0xe50   :  { %v2526_v62 = vmul.f32 %v2524_v40, %v2474_v59 }
 0xe51   :  { %v2525_v2 = vmul.f32 %v2523_v5, %v2473_v52  ;;  %v4234_v52 = vld [vmem:[%s6512_s11 + $0x1] ss:$0 sm:$0xff] }
 0xe53   :  { %4886 = vmatprep.mubr.f32.mxu1 %v2525_v2 }
 0xe54   :  { %4887 = vmatmul.mubr.f32.vlgmr.msra.gmra.mrb[50].mxu1 %v2526_v62 }
 0xf27   :  { %v4888_v53 = vpop.f32.mrb[50].mxu1 }
 0xf28   :  { %v2619_v54 = vadd.f32 %v4888_v53, %v2546_v49  ;;  %v2613_v60 = vpop.f32.mrb[51].mxu1 }
 0xf29   :  { %v2614_v11 = vadd.f32 %v2613_v60, %v2546_v49 }
 0xf2a   :  { %v2623_v0 = vadd.f32 %v2619_v54, %v6178_v13 }
 0xf2b   :  { %v2622_v41 = vadd.f32 %v2614_v11, %v6174_v8  ;;  %v4229_v8 = vld [vmem:[%s6511_s10 + $0x20] sm:$0xff]  ;;  %s6537_s10 = sld [smem:[#allocation6_spill]] }
 0xf2c   :  { %v2627_v14 = vsel %vm664_vm5, %v2623_v0, 0.0  ;;  %v5195_v29 = vpack.c.bf16 %v4230_v28, %v4229_v8 }
 0xf2d   :  { %2628 = vadd.xlane.f32.xlu0 %v2627_v14  ;;  %v2624_v26 = vsel %vm664_vm5, %v2622_v41, 0.0 }
 0xf2e   :  { %2625 = vadd.xlane.f32.xlu1 %v2624_v26  ;;  %5196 = vmatprep.subr.bf16.mxu0 %v5195_v29 }
 0xf2f   :  { %5198 = vmatpush3.bf16.msra.mxu0 %v5195_v29 }
 0xf30   :  { %5200 = vmatprep.subr.bf16.mxu0 %v5199_v39 }
 0xf33   :  { %5202 = vmatpush3.bf16.msra.mxu0 %v5199_v39 }
 0xfba   :  { %v2629_v27 = vpop.xlane.xlu0 %2628 }
 0xfbb   :  { %v2631_v15 = vmul.f32 0.03125, %v2629_v27  ;;  %v2626_v16 = vpop.xlane.xlu1 %2625 }
 0xfbc   :  { %v2630_v17 = vmul.f32 0.03125, %v2626_v16 }
 0xfbd   :  { %v2633_v18 = vsub.f32 %v2623_v0, %v2631_v15 }
 0xfbe   :  { %v2632_v37 = vsub.f32 %v2622_v41, %v2630_v17 }
 0xfbf   :  { %v2635_v25 = vmul.f32 %v2633_v18, %v2633_v18 }
 0xfc0   :  { %v2634_v22 = vmul.f32 %v2632_v37, %v2632_v37 }
 0xfc1   :  { %v2639_v13 = vsel %vm664_vm5, %v2635_v25, 0.0 }
 0xfc2   :  { %v2636_v23 = vsel %vm664_vm5, %v2634_v22, 0.0 }
 0xfc3   :  { %2637 = vadd.xlane.f32.xlu0 %v2636_v23 }
 0xfc7   :  { %2640 = vadd.xlane.f32.xlu0 %v2639_v13 }
0x1050   :  { %v2638_v38 = vpop.xlane.xlu0 %2637 }
0x1051   :  { %v2642_v6 = vmul.f32 0.03125, %v2638_v38 }
0x1053   :  { %v2644_v56 = vadd.f32 1e-05, %v2642_v6 }
0x1054   :  { %v2641_v34 = vpop.xlane.xlu0 %2640 }
0x1055   :  { %5379 = vrsqrt.f32 %v2644_v56  ;;  %v2643_v3 = vmul.f32 0.03125, %v2641_v34 }
0x1057   :  { %v2645_v51 = vadd.f32 1e-05, %v2643_v3 }
0x1059   :  { %5381 = vrsqrt.f32 %v2645_v51 }
0x105f   :  { %v5380_v42 = vpop.eup %5379 }
0x1060   :  { %v2648_v24 = vmul.f32 %v5380_v42, %v2632_v37 }
0x1062   :  { %v2654_v46 = vmul.f32 %v2653_v30, %v2648_v24 }
0x1063   :  { %v5382_v57 = vpop.eup %5381 }
0x1064   :  { %v2649_v47 = vmul.f32 %v5382_v57, %v2633_v18  ;;  %v6257_v45 = vadd.f32 %v2659_v33, %v2654_v46 }
0x1066   :  { %v2655_v40 = vmul.f32 %v2653_v30, %v2649_v47  ;;  %4897 = vmatprep.mubr.msk.f32.mxu0 %vm664_vm5, %v6257_v45 }
0x1068   :  { %v6261_v50 = vadd.f32 %v2659_v33, %v2655_v40 }
0x106a   :  { %4898 = vmatmul.mubr.msk.f32.vlgmr.msra.gmra.mrb[46].mxu0 %vm664_vm5, %v6261_v50 }
0x113d   :  { %v4899_v5 = vpop.f32.mrb[46].mxu0 }
0x113e   :  { %v2755_v19 = vadd.f32 %v4899_v5, %v4234_v52  ;;  %v2749_v59 = vpop.f32.mrb[47].mxu0 }
0x113f   :  { %v2750_v2 = vadd.f32 %v4234_v52, %v2749_v59 }
0x1140   :  { %v2759_v0 = vmul.f32 %v2755_v19, %v6024_v36  ;;  %v2761_v14 = vmul.f32 %v2755_v19, %v6047_v58  ;;  %v2763_v27 = vmul.f32 %v2755_v19, %v6055_v61  ;;  %v2765_v16 = vmul.f32 %v2755_v19, %v6062_v63 }
0x1141   :  { %v6268_v62 = vpack.i.bf16 %v2755_v19, %v2750_v2  ;;  %v2758_v49 = vmul.f32 %v2750_v2, %v6024_v36  ;;  %v2760_v41 = vmul.f32 %v2750_v2, %v6047_v58  ;;  %v2762_v26 = vmul.f32 %v2750_v2, %v6055_v61 }
0x1142   :  { %v2764_v15 = vmul.f32 %v2750_v2, %v6062_v63 }
0x1143   :  { %5310 = vrot.lane.b32.xlu0 %v6268_v62, %s5454_s5  ;;  %4904 = vmatprep.mubr.msk.f32.mxu0 %vm664_vm5, %v2758_v49 }
0x11b5   :  { %v5311_v53 = vpop.permute.xlu0 %5310 }
0x11b6   :  { %v5313_v54 = vunpack.i.h.bf16 %v5311_v53  ;;  %v5312_v60 = vunpack.i.l.bf16 %v5311_v53 }
0x11b8   :  { %v5203_v11 = vpack.c.bf16 %v5313_v54, %v5312_v60 }
0x11ba   :  { %5205 = vmatprep.subr.msk.bf16.mxu0 %vm6034_vm7, %v5203_v11 }
0x11bb   :  { %5208 = vmatpush3.bf16.xpose.msk.msra.mxu0 %vm6034_vm7, %v5203_v11 }
0x11c2   :  { %4905 = vmatmul.mubr.msk.f32.vlgmr.msra.gmra.mrb[48].mxu0 %vm664_vm5, %v2759_v0 }
0x11c3   :  { %4907 = vmatprep.mubr.msk.f32.mxu0 %vm664_vm5, %v2760_v41 }
0x11c6   :  { %4908 = vmatmul.mubr.msk.f32.gmra.mrb[50].mxu0 %vm664_vm5, %v2761_v14 }
0x11c7   :  { %4910 = vmatprep.mubr.msk.f32.mxu0 %vm664_vm5, %v2762_v26 }
0x11ca   :  { %4911 = vmatmul.mubr.msk.f32.gmra.mrb[52].mxu0 %vm664_vm5, %v2763_v27 }
0x11cb   :  { %4913 = vmatprep.mubr.msk.f32.mxu0 %vm664_vm5, %v2764_v15 }
0x11ce   :  { %4914 = vmatmul.mubr.msk.f32.gmra.mrb[54].mxu0 %vm664_vm5, %v2765_v16 }
0x1295   :  { %v4906_v17 = vpop.f32.mrb[48].mxu0 }
0x1296   :  { %v2906_v18 = vmul.f32 0.35355338, %v4906_v17  ;;  %v2866_v37 = vpop.f32.mrb[49].mxu0 }
0x1297   :  { %v2905_v22 = vmul.f32 0.35355338, %v2866_v37 }
0x1298   :  { %v2914_v23 = vadd.f32 %v2906_v18, %v6081_v44 }
0x1299   :  { %v4909_v25 = vpop.f32.mrb[50].mxu0  ;;  %v2913_v13 = vadd.f32 %v2905_v22, %v6083_v35 }
0x129a   :  { %v2908_v8 = vmul.f32 0.35355338, %v4909_v25  ;;  %v2876_v28 = vpop.f32.mrb[51].mxu0  ;;  %v2924_v29 = vsel %vm2013_vm6, %v2914_v23, -inf }
0x129b   :  { %v2907_v31 = vmul.f32 0.35355338, %v2876_v28  ;;  %2925 = vmax.xlane.f32.xlu1 %v2924_v29  ;;  %v2921_v32 = vsel %vm2013_vm6, %v2913_v13, -inf }
0x129c   :  { %2922 = vmax.xlane.f32.xlu0 %v2921_v32  ;;  %v2916_v39 = vadd.f32 %v2908_v8, %v6081_v44 }
0x129d   :  { %v4912_v38 = vpop.f32.mrb[52].mxu0  ;;  %v2915_v3 = vadd.f32 %v2907_v31, %v6083_v35 }
0x129e   :  { %v2910_v6 = vmul.f32 0.35355338, %v4912_v38  ;;  %v2886_v56 = vpop.f32.mrb[53].mxu0  ;;  %v2930_v34 = vsel %vm2013_vm6, %v2916_v39, -inf }
0x129f   :  { %2931 = vmax.xlane.f32.xlu1 %v2930_v34  ;;  %v2909_v30 = vmul.f32 0.35355338, %v2886_v56  ;;  %v2927_v24 = vsel %vm2013_vm6, %v2915_v3, -inf }
0x12a0   :  { %v2918_v33 = vadd.f32 %v2910_v6, %v6081_v44 }
0x12a1   :  { %v4915_v51 = vpop.f32.mrb[54].mxu0  ;;  %v2917_v47 = vadd.f32 %v2909_v30, %v6083_v35 }
0x12a2   :  { %v2896_v42 = vpop.f32.mrb[55].mxu0  ;;  %v2936_v57 = vsel %vm2013_vm6, %v2918_v33, -inf  ;;  %v2912_v40 = vmul.f32 0.35355338, %v4915_v51 }
0x12a3   :  { %2928 = vmax.xlane.f32.xlu1 %v2927_v24  ;;  %v2911_v46 = vmul.f32 0.35355338, %v2896_v42  ;;  %v2933_v52 = vsel %vm2013_vm6, %v2917_v47, -inf }
0x12a4   :  { %v2920_v59 = vadd.f32 %v2912_v40, %v6081_v44 }
0x12a5   :  { %v2919_v5 = vadd.f32 %v2911_v46, %v6083_v35 }
0x12a6   :  { %v2942_v2 = vsel %vm2013_vm6, %v2920_v59, -inf }
0x12a7   :  { %2937 = vmax.xlane.f32.xlu1 %v2936_v57  ;;  %v2939_v19 = vsel %vm2013_vm6, %v2919_v5, -inf }
0x12ab   :  { %2934 = vmax.xlane.f32.xlu1 %v2933_v52 }
0x12af   :  { %2940 = vmax.xlane.f32.xlu1 %v2939_v19 }
0x12b3   :  { %2943 = vmax.xlane.f32.xlu1 %v2942_v2 }
0x1328   :  { %v2926_v49 = vpop.xlane.xlu1 %2925 }
0x1329   :  { %v2946_v53 = vsub.f32 %v2914_v23, %v2926_v49  ;;  %v2923_v54 = vpop.xlane.xlu0 %2922 }
0x132a   :  { %v2945_v60 = vsub.f32 %v2913_v13, %v2923_v54 }
0x132b   :  { %v2955_v11 = vmul.f32 1.442695, %v2946_v53 }
0x132c   :  { %v2953_v0 = vmul.f32 1.442695, %v2945_v60  ;;  %v2932_v41 = vpop.xlane.xlu1 %2931 }
0x132d   :  { %5383 = vpow2.f32 %v2955_v11  ;;  %v2948_v14 = vsub.f32 %v2916_v39, %v2932_v41 }
0x132e   :  { %5385 = vpow2.f32 %v2953_v0 }
0x132f   :  { %v2959_v35 = vmul.f32 1.442695, %v2948_v14 }
0x1330   :  { %v2929_v26 = vpop.xlane.xlu1 %2928 }
0x1331   :  { %5387 = vpow2.f32 %v2959_v35  ;;  %v2947_v27 = vsub.f32 %v2915_v3, %v2929_v26 }
0x1333   :  { %v2957_v15 = vmul.f32 1.442695, %v2947_v27 }
0x1334   :  { %v2938_v44 = vpop.xlane.xlu1 %2937 }
0x1335   :  { %5389 = vpow2.f32 %v2957_v15  ;;  %v2950_v16 = vsub.f32 %v2918_v33, %v2938_v44 }
0x1337   :  { %v6308_v17 = vpop.eup %5383  ;;  %v2963_v18 = vmul.f32 1.442695, %v2950_v16 }
0x1338   :  { %v5386_v37 = vpop.eup %5385  ;;  %v2935_v22 = vpop.xlane.xlu1 %2934  ;;  %v2972_v23 = vsel %vm2013_vm6, %v6308_v17, 0.0 }
0x1339   :  { %5391 = vpow2.f32 %v2963_v18  ;;  %v2949_v25 = vsub.f32 %v2917_v47, %v2935_v22  ;;  %2973 = vadd.xlane.f32.xlu0 %v2972_v23  ;;  %v2969_v13 = vsel %vm2013_vm6, %v5386_v37, 0.0 }
0x133a   :  { %2970 = vadd.xlane.f32.xlu1 %v2969_v13 }
0x133b   :  { %v5388_v8 = vpop.eup %5387  ;;  %v2961_v28 = vmul.f32 1.442695, %v2949_v25 }
0x133c   :  { %v2941_v29 = vpop.xlane.xlu1 %2940  ;;  %v2978_v31 = vsel %vm2013_vm6, %v5388_v8, 0.0 }
0x133d   :  { %5393 = vpow2.f32 %v2961_v28  ;;  %v2951_v32 = vsub.f32 %v2919_v5, %v2941_v29  ;;  %2979 = vadd.xlane.f32.xlu0 %v2978_v31  ;;  %v4256_v28 = vld [vmem:[%s6513_s12 + $0x28] sm:$0xff]  ;;  %v4257_v31 = vld [vmem:[%s6513_s12 + $0x30] sm:$0xff] }
0x133f   :  { %v5390_v39 = vpop.eup %5389  ;;  %v2965_v38 = vmul.f32 1.442695, %v2951_v32  ;;  %v4258_v32 = vld [vmem:[%s6513_s12 + $0x38] sm:$0xff] }
0x1340   :  { %v2944_v6 = vpop.xlane.xlu1 %2943  ;;  %v2975_v56 = vsel %vm2013_vm6, %v5390_v39, 0.0 }
0x1341   :  { %5395 = vpow2.f32 %v2965_v38  ;;  %v2952_v34 = vsub.f32 %v2920_v59, %v2944_v6  ;;  %2976 = vadd.xlane.f32.xlu1 %v2975_v56 }
0x1343   :  { %v5392_v3 = vpop.eup %5391  ;;  %v2967_v51 = vmul.f32 1.442695, %v2952_v34 }
0x1344   :  { %v2984_v30 = vsel %vm2013_vm6, %v5392_v3, 0.0 }
0x1345   :  { %5397 = vpow2.f32 %v2967_v51  ;;  %2985 = vadd.xlane.f32.xlu0 %v2984_v30 }
0x1347   :  { %v5394_v42 = vpop.eup %5393 }
0x1348   :  { %v2981_v24 = vsel %vm2013_vm6, %v5394_v42, 0.0 }
0x1349   :  { %2982 = vadd.xlane.f32.xlu1 %v2981_v24 }
0x134b   :  { %v5396_v33 = vpop.eup %5395 }
0x134c   :  { %v2987_v46 = vsel %vm2013_vm6, %v5396_v33, 0.0 }
0x134d   :  { %2988 = vadd.xlane.f32.xlu1 %v2987_v46 }
0x134f   :  { %v5398_v57 = vpop.eup %5397 }
0x1350   :  { %v2990_v47 = vsel %vm2013_vm6, %v5398_v57, 0.0 }
0x1351   :  { %2991 = vadd.xlane.f32.xlu0 %v2990_v47 }
0x135e   :  { %5315 = vrot.lane.b32.xlu1 %v6268_v62, %s5456_s29 }
0x13c6   :  { %v2974_v19 = vpop.xlane.xlu0 %2973 }
0x13c7   :  { %v2971_v40 = vpop.xlane.xlu1 %2970 }
0x13c8   :  { %5399 = vrcp.f32 %v2971_v40 }
0x13c9   :  { %5401 = vrcp.f32 %v2974_v19 }
0x13ca   :  { %v2980_v49 = vpop.xlane.xlu0 %2979 }
0x13ce   :  { %v2977_v5 = vpop.xlane.xlu1 %2976 }
0x13cf   :  { %5403 = vrcp.f32 %v2977_v5 }
0x13d0   :  { %5405 = vrcp.f32 %v2980_v49 }
0x13d2   :  { %v5400_v52 = vpop.eup %5399  ;;  %v2986_v54 = vpop.xlane.xlu0 %2985 }
0x13d3   :  { %v2994_v59 = vmul.f32 %v5400_v52, %v5386_v37  ;;  %v5402_v14 = vpop.eup %5401 }
0x13d4   :  { %v2996_v26 = vmul.f32 %v5402_v14, %v6308_v17 }
0x13d5   :  { %4920 = vmatprep.mubr.msk.f32.mxu0 %vm2013_vm6, %v2994_v59 }
0x13d6   :  { %v2983_v2 = vpop.xlane.xlu1 %2982 }
0x13d7   :  { %5407 = vrcp.f32 %v2983_v2 }
0x13d8   :  { %5409 = vrcp.f32 %v2986_v54 }
0x13d9   :  { %v5404_v35 = vpop.eup %5403 }
0x13da   :  { %v2989_v53 = vpop.xlane.xlu1 %2988  ;;  %v5406_v27 = vpop.eup %5405  ;;  %v2998_v15 = vmul.f32 %v5404_v35, %v5390_v39  ;;  %v5217_v39 = vpack.c.bf16 %v4258_v32, %v4257_v31 }
0x13db   :  { %5411 = vrcp.f32 %v2989_v53  ;;  %v3000_v16 = vmul.f32 %v5406_v27, %v5388_v8  ;;  %v4255_v8 = vld [vmem:[%s6513_s12 + $0x20] sm:$0xff]  ;;  %s4304_s12 = sld [smem:[#allocation2 + $0x1]] }
0x13dc   :  { %v5213_v29 = vpack.c.bf16 %v4256_v28, %v4255_v8 }
0x13de   :  { %v5316_v60 = vpop.permute.xlu1 %5315  ;;  %v2992_v62 = vpop.xlane.xlu0 %2991  ;;  %5214 = vmatprep.subr.bf16.mxu1 %v5213_v29 }
0x13df   :  { %v5318_v11 = vunpack.i.h.bf16 %v5316_v60  ;;  %v5317_v0 = vunpack.i.l.bf16 %v5316_v60  ;;  %5413 = vrcp.f32 %v2992_v62  ;;  %5216 = vmatpush3.bf16.msra.mxu1 %v5213_v29 }
0x13e0   :  { %5218 = vmatprep.subr.bf16.mxu1 %v5217_v39 }
0x13e1   :  { %v5209_v41 = vpack.c.bf16 %v5318_v11, %v5317_v0  ;;  %v5408_v44 = vpop.eup %5407 }
0x13e2   :  { %v5410_v18 = vpop.eup %5409  ;;  %v3002_v37 = vmul.f32 %v5408_v44, %v5394_v42 }
0x13e3   :  { %5210 = vmatprep.subr.bf16.mxu0 %v5209_v41  ;;  %v3004_v23 = vmul.f32 %v5410_v18, %v5392_v3  ;;  %5220 = vmatpush3.bf16.msra.mxu1 %v5217_v39 }
0x13e4   :  { %5212 = vmatpush3.bf16.msra.mxu0 %v5209_v41 }
0x13e5   :  { %v5412_v22 = vpop.eup %5411 }
0x13e6   :  { %v3006_v13 = vmul.f32 %v5412_v22, %v5396_v33  ;;  %v4262_v22 = vld [vmem:[%s6514_s13 + $0x28] sm:$0xff] }
0x13e7   :  { %4921 = vmatmul.mubr.msk.f32.vlgmr.msra.gmra.mrb[56].mxu0 %vm2013_vm6, %v2996_v26 }
0x13e8   :  { %4923 = vmatprep.mubr.msk.f32.mxu0 %vm2013_vm6, %v2998_v15 }
0x13e9   :  { %v5414_v25 = vpop.eup %5413 }
0x13ea   :  { %v3008_v17 = vmul.f32 %v5414_v25, %v5398_v57  ;;  %v4263_v25 = vld [vmem:[%s6514_s13 + $0x30] sm:$0xff] }
0x13eb   :  { %4924 = vmatmul.mubr.msk.f32.gmra.mrb[58].mxu0 %vm2013_vm6, %v3000_v16 }
0x13ec   :  { %4926 = vmatprep.mubr.msk.f32.mxu0 %vm2013_vm6, %v3002_v37 }
0x13ef   :  { %4927 = vmatmul.mubr.msk.f32.gmra.mrb[60].mxu0 %vm2013_vm6, %v3004_v23 }
0x13f0   :  { %4929 = vmatprep.mubr.msk.f32.mxu0 %vm2013_vm6, %v3006_v13  ;;  %v4264_v13 = vld [vmem:[%s6514_s13 + $0x38] sm:$0xff] }
0x13f3   :  { %4930 = vmatmul.mubr.msk.f32.gmra.mrb[62].mxu0 %vm2013_vm6, %v3008_v17  ;;  %v5225_v17 = vpack.c.bf16 %v4264_v13, %v4263_v25 }
0x14ba   :  { %v4922_v38 = vpop.f32.mrb[56].mxu0 }
0x14bb   :  { %v3105_v6 = vpop.f32.mrb[57].mxu0  ;;  %v3145_v34 = vmul.f32 %v4922_v38, %v6024_v36 }
0x14bc   :  { %v3144_v30 = vmul.f32 %v3105_v6, %v6024_v36 }
0x14be   :  { %v4925_v56 = vpop.f32.mrb[58].mxu0 }
0x14bf   :  { %v3147_v3 = vmul.f32 %v4925_v56, %v6047_v58  ;;  %v3115_v51 = vpop.f32.mrb[59].mxu0 }
0x14c0   :  { %v3146_v42 = vmul.f32 %v3115_v51, %v6047_v58  ;;  %v6355_v58 = vld [vmem:[%s6517_s16 + $0x8] sm:$0x3f] }
0x14c1   :  { %v3149_v24 = vadd.f32 %v3147_v3, %v3145_v34  ;;  %v3279_v38 = vrot.slane %v6355_v58, %v5684_v43  ;;  %v3285_v34 = vrot.slane %v6355_v58, %v5804_v9  ;;  %v4273_v43 = vld [vmem:[%s6516_s15 + $0x80] sm:$0xff]  ;;  %v4274_v9 = vld [vmem:[%s6516_s15 + $0x88] sm:$0xff] }
0x14c2   :  { %v3148_v33 = vadd.f32 %v3146_v42, %v3144_v30  ;;  %v4928_v46 = vpop.f32.mrb[60].mxu0 }
0x14c3   :  { %v3151_v57 = vmul.f32 %v4928_v46, %v6055_v61  ;;  %v3125_v47 = vpop.f32.mrb[61].mxu0  ;;  %v5229_v46 = vpack.c.bf16 %v4274_v9, %v4273_v43 }
0x14c4   :  { %v3150_v40 = vmul.f32 %v3125_v47, %v6055_v61  ;;  %v3166_v61 = vrot.slane %v6355_v58, %v5743_v12  ;;  %v4276_v47 = vld [vmem:[%s6516_s15 + $0x98] sm:$0xff] }
0x14c5   :  { %v3153_v52 = vadd.f32 %v3151_v57, %v3149_v24  ;;  %5230 = vmatprep.subr.bf16.mxu0 %v5229_v46  ;;  %v4275_v57 = vld [vmem:[%s6516_s15 + $0x90] sm:$0xff] }
0x14c6   :  { %v3152_v5 = vadd.f32 %v3150_v40, %v3148_v33  ;;  %v4931_v19 = vpop.f32.mrb[62].mxu0  ;;  %5232 = vmatpush3.bf16.msra.mxu0 %v5229_v46  ;;  %v5233_v40 = vpack.c.bf16 %v4276_v47, %v4275_v57 }
0x14c7   :  { %v3155_v59 = vmul.f32 %v4931_v19, %v6062_v63  ;;  %v3135_v2 = vpop.f32.mrb[63].mxu0 }
0x14c8   :  { %v3154_v49 = vmul.f32 %v3135_v2, %v6062_v63  ;;  %5234 = vmatprep.subr.bf16.mxu0 %v5233_v40  ;;  %v4280_v2 = vld [vmem:[%s6516_s15 + $0xb8] sm:$0xff] }
0x14c9   :  { %v3157_v53 = vadd.f32 %v3155_v59, %v3153_v52  ;;  %v4277_v52 = vld [vmem:[%s6516_s15 + $0xa0] sm:$0xff]  ;;  %v4279_v59 = vld [vmem:[%s6516_s15 + $0xb0] sm:$0xff] }
0x14ca   :  { %v3156_v36 = vadd.f32 %v3154_v49, %v3152_v5  ;;  %5236 = vmatpush3.bf16.msra.mxu0 %v5233_v40  ;;  %v4278_v5 = vld [vmem:[%s6516_s15 + $0xa8] sm:$0xff]  ;;  %v5241_v49 = vpack.c.bf16 %v4280_v2, %v4279_v59 }
0x14cb   :  { %v5237_v19 = vpack.c.bf16 %v4278_v5, %v4277_v52 }
0x14cc   :  { %4940 = vmatprep.mubr.msk.f32.mxu1 %vm664_vm5, %v3156_v36  ;;  %v4282_v36 = vld [vmem:[%s6516_s15 + $0xc8] sm:$0xff] }
0x14cd   :  { %4941 = vmatmul.mubr.msk.f32.vlgmr.msra.gmra.mrb[52].mxu1 %vm664_vm5, %v3157_v53  ;;  %5238 = vmatprep.subr.bf16.mxu0 %v5237_v19  ;;  %v4281_v53 = vld [vmem:[%s6516_s15 + $0xc0] sm:$0xff] }
0x14ce   :  { %5240 = vmatpush3.bf16.msra.mxu0 %v5237_v19 }
0x14cf   :  { %5242 = vmatprep.subr.bf16.mxu0 %v5241_v49 }
0x14d2   :  { %5244 = vmatpush3.bf16.msra.mxu0 %v5241_v49 }
0x15a0   :  { %v4942_v54 = vpop.f32.mrb[52].mxu1 }
0x15a1   :  { %v3239_v60 = vpop.f32.mrb[53].mxu1  ;;  %v3245_v11 = vadd.f32 %v4942_v54, %v3166_v61  ;;  %v4283_v54 = vld [vmem:[%s6516_s15 + $0xd0] sm:$0xff] }
0x15a2   :  { %v3240_v0 = vadd.f32 %v3239_v60, %v3166_v61  ;;  %v5245_v61 = vpack.c.bf16 %v4282_v36, %v4281_v53  ;;  %v4284_v60 = vld [vmem:[%s6516_s15 + $0xd8] sm:$0xff] }
0x15a3   :  { %v3249_v41 = vadd.f32 %v3245_v11, %v6261_v50  ;;  %v4261_v50 = vld [vmem:[%s6514_s13 + $0x20] sm:$0xff]  ;;  %v5249_v11 = vpack.c.bf16 %v4284_v60, %v4283_v54 }
0x15a4   :  { %v3248_v63 = vadd.f32 %v3240_v0, %v6257_v45  ;;  %v5221_v23 = vpack.c.bf16 %v4262_v22, %v4261_v50  ;;  %5246 = vmatprep.subr.bf16.mxu0 %v5245_v61  ;;  %v4285_v0 = vld [vmem:[%s6516_s15 + $0xe0] sm:$0xff] }
0x15a5   :  { %v3253_v14 = vsel %vm664_vm5, %v3249_v41, 0.0  ;;  %5248 = vmatpush3.bf16.msra.mxu0 %v5245_v61 }
0x15a6   :  { %v3250_v62 = vsel %vm664_vm5, %v3248_v63, 0.0  ;;  %5222 = vmatprep.subr.bf16.mxu1 %v5221_v23  ;;  %5250 = vmatprep.subr.bf16.mxu0 %v5249_v11 }
0x15a7   :  { %3251 = vadd.xlane.f32.xlu0 %v3250_v62  ;;  %5224 = vmatpush3.bf16.msra.mxu1 %v5221_v23 }
0x15a8   :  { %5226 = vmatprep.subr.bf16.mxu1 %v5225_v17 }
0x15a9   :  { %5252 = vmatpush3.bf16.msra.mxu0 %v5249_v11 }
0x15ab   :  { %3254 = vadd.xlane.f32.xlu0 %v3253_v14  ;;  %5228 = vmatpush3.bf16.msra.mxu1 %v5225_v17  ;;  %v4288_v14 = vld [vmem:[%s6516_s15 + $0xf8] sm:$0xff] }
0x1634   :  { %v3252_v35 = vpop.xlane.xlu0 %3251 }
0x1635   :  { %v3256_v26 = vmul.f32 0.03125, %v3252_v35 }
0x1637   :  { %v3258_v27 = vsub.f32 %v3248_v63, %v3256_v26  ;;  %v4286_v63 = vld [vmem:[%s6516_s15 + $0xe8] sm:$0xff]  ;;  %v4266_v26 = vld [vmem:[%s6515_s14 + $0x1] ss:$0 sm:$0xff] }
0x1638   :  { %v3255_v15 = vpop.xlane.xlu0 %3254  ;;  %v5253_v62 = vpack.c.bf16 %v4286_v63, %v4285_v0 }
0x1639   :  { %v3257_v44 = vmul.f32 0.03125, %v3255_v15  ;;  %v3260_v12 = vmul.f32 %v3258_v27, %v3258_v27 }
0x163a   :  { %5254 = vmatprep.subr.bf16.mxu0 %v5253_v62 }
0x163b   :  { %v3259_v16 = vsub.f32 %v3249_v41, %v3257_v44  ;;  %v3262_v18 = vsel %vm664_vm5, %v3260_v12, 0.0  ;;  %5256 = vmatpush3.bf16.msra.mxu0 %v5253_v62  ;;  %v4287_v41 = vld [vmem:[%s6516_s15 + $0xf0] sm:$0xff] }
0x163c   :  { %3263 = vadd.xlane.f32.xlu0 %v3262_v18  ;;  %v5257_v35 = vpack.c.bf16 %v4288_v14, %v4287_v41 }
0x163d   :  { %v3261_v37 = vmul.f32 %v3259_v16, %v3259_v16 }
0x163e   :  { %5258 = vmatprep.subr.bf16.mxu0 %v5257_v35 }
0x163f   :  { %v3265_v45 = vsel %vm664_vm5, %v3261_v37, 0.0  ;;  %5260 = vmatpush3.bf16.msra.mxu0 %v5257_v35 }
0x1640   :  { %3266 = vadd.xlane.f32.xlu0 %v3265_v45  ;;  %5275 = vmatprep.subr.bf16.mxu0 %v5450_v1 }
0x16c9   :  { %v3264_v8 = vpop.xlane.xlu0 %3263 }
0x16ca   :  { %v3268_v28 = vmul.f32 0.03125, %v3264_v8 }
0x16cc   :  { %v3270_v29 = vadd.f32 1e-05, %v3268_v28 }
0x16cd   :  { %v3267_v31 = vpop.xlane.xlu0 %3266 }
0x16ce   :  { %5415 = vrsqrt.f32 %v3270_v29  ;;  %v3269_v32 = vmul.f32 0.03125, %v3267_v31 }
0x16d0   :  { %v3271_v39 = vadd.f32 1e-05, %v3269_v32 }
0x16d2   :  { %5417 = vrsqrt.f32 %v3271_v39 }
0x16d8   :  { %v5416_v6 = vpop.eup %5415 }
0x16d9   :  { %v3274_v56 = vmul.f32 %v5416_v6, %v3258_v27 }
0x16db   :  { %v3280_v3 = vmul.f32 %v3279_v38, %v3274_v56 }
0x16dc   :  { %v5418_v51 = vpop.eup %5417 }
0x16dd   :  { %v3275_v30 = vmul.f32 %v5418_v51, %v3259_v16  ;;  %v3286_v42 = vadd.f32 %v3285_v34, %v3280_v3 }
0x16df   :  { %v3281_v24 = vmul.f32 %v3279_v38, %v3275_v30  ;;  %4951 = vmatprep.mubr.msk.f32.mxu1 %vm664_vm5, %v3286_v42 }
0x16e1   :  { %v6382_v33 = vadd.f32 %v3285_v34, %v3281_v24 }
0x16e3   :  { %4952 = vmatmul.mubr.msk.f32.vlgmr.msra.gmra.mrb[54].mxu1 %vm664_vm5, %v6382_v33 }
0x17b6   :  { %v4953_v27 = vpop.f32.mrb[54].mxu1 }
0x17b7   :  { %v3379_v15 = vadd.f32 %v4953_v27, %v4266_v26  ;;  %v3373_v44 = vpop.f32.mrb[55].mxu1  ;;  %v3555_v27 = vld [vmem:[%s6537_s10] sm:$0xff] }
0x17b8   :  { %v3374_v12 = vadd.f32 %v4266_v26, %v3373_v44  ;;  %v5457_v44 = vmov 0  }
0x17b9   :  { %v3385_v16 = vmul.f32 0.70710677, %v3379_v15  ;;  %v3383_v14 = vmul.f32 0.5, %v3379_v15  ;;  %5319 = vset.pattern.permute.xlu0 %v5457_v44  ;;  %5320 = vset.pattern.permute.xlu1 %v5457_v44 }
0x17ba   :  { %v3384_v18 = vmul.f32 0.70710677, %v3374_v12  ;;  %v3382_v62 = vmul.f32 0.5, %v3374_v12  ;;  %3558 = vperm.xlu0 %5319, %v3555_v27   ;;  %v3456_v12 = vrot.slane %v6355_v58, %v5890_v10  ;;  %v3568_v10 = vld [vmem:[%s6538_s0 + $0x8] sm:$0xf] }
0x17bb   :  { %v3387_v37 = vand.u32 2147483647, %v3385_v16  ;;  %vm3427_vm10 = vcmp.ge.f32.partialorder %v3385_v16, 0.0 }
0x17bc   :  { %v3386_v45 = vand.u32 2147483647, %v3384_v18  ;;  %vm3426_vm11 = vcmp.ge.f32.partialorder %v3384_v18, 0.0 }
0x17bd   :  { %v3389_v50 = vmul.f32 0.3275911, %v3387_v37  ;;  %v3415_v13 = vsub.f32 0.0, %v3387_v37 }
0x17be   :  { %v3388_v22 = vmul.f32 0.3275911, %v3386_v45  ;;  %v3414_v17 = vsub.f32 0.0, %v3386_v45 }
0x17bf   :  { %v3391_v23 = vadd.f32 1.0, %v3389_v50  ;;  %v3417_v28 = vmul.f32 %v3415_v13, %v3387_v37  ;;  %v3556_v50 = vld [vmem:[%s6537_s10 + $0x8] sm:$0xf] }
0x17c0   :  { %v3390_v25 = vadd.f32 1.0, %v3388_v22  ;;  %v3416_v32 = vmul.f32 %v3414_v17, %v3386_v45 }
0x17c1   :  { %5419 = vrcp.f32 %v3391_v23  ;;  %v3420_v6 = vmul.f32 1.442695, %v3417_v28  ;;  %v3567_v28 = vld [vmem:[%s6538_s0] sm:$0xff] }
0x17c2   :  { %5421 = vrcp.f32 %v3390_v25  ;;  %v3418_v3 = vmul.f32 1.442695, %v3416_v32 }
0x17c3   :  { %5423 = vpow2.f32 %v3420_v6 }
0x17c4   :  { %5425 = vpow2.f32 %v3418_v3 }
0x17cb   :  { %v5420_v8 = vpop.eup %5419 }
0x17cc   :  { %v5422_v29 = vpop.eup %5421  ;;  %v3397_v31 = vmul.f32 1.0614054, %v5420_v8 }
0x17cd   :  { %v3396_v39 = vmul.f32 1.0614054, %v5422_v29  ;;  %v5424_v19 = vpop.eup %5423 }
0x17ce   :  { %v4270_v38 = vadd.f32 -1.4531521, %v3397_v31  ;;  %v5426_v2 = vpop.eup %5425 }
0x17cf   :  { %v4269_v56 = vadd.f32 -1.4531521, %v3396_v39  ;;  %v3548_v39 = vrot.slane %v6355_v58, %v5976_v48 }
0x17d0   :  { %v3401_v34 = vmul.f32 %v5420_v8, %v4270_v38 }
0x17d1   :  { %v3400_v51 = vmul.f32 %v5422_v29, %v4269_v56 }
0x17d2   :  { %v3403_v30 = vadd.f32 1.4214138, %v3401_v34  ;;  %v3553_v34 = vrot.slane %v6355_v58, %v6072_v7  ;;  %v4303_v58 = vld [vmem:[%s6518_s17] ss:$0 sm:$0xff]  ;;  %s4012_s17 = sld [smem:[#allocation2]] }
0x17d3   :  { %v3402_v42 = vadd.f32 1.4214138, %v3400_v51 }
0x17d4   :  { %v3405_v24 = vmul.f32 %v5420_v8, %v3403_v30 }
0x17d5   :  { %v3404_v43 = vmul.f32 %v5422_v29, %v3402_v42 }
0x17d6   :  { %v4272_v9 = vadd.f32 -0.28449672, %v3405_v24 }
0x17d7   :  { %v4271_v46 = vadd.f32 -0.28449672, %v3404_v43 }
0x17d8   :  { %v3409_v57 = vmul.f32 %v5420_v8, %v4272_v9 }
0x17d9   :  { %v3408_v47 = vmul.f32 %v5422_v29, %v4271_v46 }
0x17da   :  { %v3411_v40 = vadd.f32 0.2548296, %v3409_v57 }
0x17db   :  { %v3410_v52 = vadd.f32 0.2548296, %v3408_v47 }
0x17dc   :  { %v3413_v5 = vmul.f32 %v5420_v8, %v3411_v40 }
0x17dd   :  { %v3412_v59 = vmul.f32 %v5422_v29, %v3410_v52 }
0x17de   :  { %v3423_v49 = vmul.f32 %v5424_v19, %v3413_v5 }
0x17df   :  { %v3422_v53 = vmul.f32 %v5426_v2, %v3412_v59 }
0x17e0   :  { %v3425_v36 = vsub.f32 1.0, %v3423_v49 }
0x17e1   :  { %v3424_v61 = vsub.f32 1.0, %v3422_v53 }
0x17e2   :  { %v3429_v54 = vsub.f32 0.0, %v3425_v36 }
0x17e3   :  { %v3428_v60 = vsub.f32 0.0, %v3424_v61 }
0x17e4   :  { %v3431_v11 = vsel %vm3427_vm10, %v3425_v36, %v3429_v54 }
0x17e5   :  { %v3433_v0 = vadd.f32 1.0, %v3431_v11  ;;  %v3430_v63 = vsel %vm3426_vm11, %v3424_v61, %v3428_v60  ;;  %v5458_v61 = vmov 1.0  }
0x17e6   :  { %v3432_v41 = vadd.f32 1.0, %v3430_v63 }
0x17e7   :  { %v3435_v26 = vmul.f32 %v3433_v0, %v3383_v14 }
0x17e8   :  { %v3434_v35 = vmul.f32 %v3432_v41, %v3382_v62 }
0x17ea   :  { %4986 = vmatprep.mubr.f32.mxu0 %v3434_v35 }
0x17eb   :  { %4987 = vmatmul.mubr.f32.vlgmr.msra.gmra.mrb[64].mxu0 %v3435_v26 }
0x17ec   :  { %5019 = vmatprep.mubr.msk.f32.mxu0 %vm5451_vm0, %v5452_v4 }
0x1839   :  { %v3559_v22 = vpop.permute.xlu0 %3558 }
0x183a   :  { %vm3563_vm14 = vcmp.eq.s32.totalorder %v6013_v21, %v3559_v22  ;;  %v4014_v22 = vstv %s4012_s17 }
0x183b   :  { %v3565_v23 = vsel %vm3563_vm14, 1.0, %v5452_v4 }
0x183c   :  { %4991 = vmatprep.mubr.msk.f32.mxu1 %vm3579_vm13, %v3565_v23 }
0x18be   :  { %v4988_v16 = vpop.f32.mrb[64].mxu0 }
0x18bf   :  { %v3528_v15 = vadd.f32 %v4988_v16, %v3456_v12  ;;  %v3523_v18 = vpop.f32.mrb[65].mxu0 }
0x18c1   :  { %v3531_v37 = vadd.f32 %v3528_v15, %v6382_v33 }
0x18c3   :  { %v3532_v45 = vsel %vm664_vm5, %v3531_v37, 0.0 }
0x18c4   :  { %3533 = vadd.xlane.f32.xlu1 %v3532_v45 }
0x18d5   :  { %3561 = vperm.xlu1 %5320, %v3556_v50  }
0x18d9   :  { %3573 = vperm.xlu1 %5320, %v3568_v10  }
0x1951   :  { %v3534_v33 = vpop.xlane.xlu1 %3533 }
0x1952   :  { %v3535_v25 = vmul.f32 0.03125, %v3534_v33  ;;  %v4092_v33 = vstv %s4304_s12 }
0x1954   :  { %v3536_v13 = vsub.f32 %v3531_v37, %v3535_v25 }
0x1955   :  { %v3562_v6 = vpop.permute.xlu1 %3561 }
0x1956   :  { %v3537_v17 = vmul.f32 %v3536_v13, %v3536_v13  ;;  %vm3564_vm15 = vcmp.eq.s32.totalorder %v6013_v21, %v3562_v6 }
0x1957   :  { %v3566_v42 = vsel %vm3564_vm15, 1.0, %v5452_v4 }
0x1958   :  { %v3538_v8 = vsel %vm664_vm5, %v3537_v17, 0.0 }
0x1959   :  { %3539 = vadd.xlane.f32.xlu0 %v3538_v8  ;;  %v3574_v24 = vpop.permute.xlu1 %3573 }
0x195a   :  { %vm3576_vm6 = vcmp.eq.s32.totalorder %v6013_v21, %v3574_v24 }
0x195b   :  { %v3578_v7 = vsel %vm3576_vm6, 1.0, %v5452_v4 }
0x196f   :  { %3570 = vperm.xlu0 %5319, %v3567_v28  }
0x19e6   :  { %v3540_v29 = vpop.xlane.xlu0 %3539 }
0x19e7   :  { %v3541_v31 = vmul.f32 0.03125, %v3540_v29 }
0x19e9   :  { %v3542_v32 = vadd.f32 1e-05, %v3541_v31 }
0x19eb   :  { %5427 = vrsqrt.f32 %v3542_v32 }
0x19ee   :  { %v3571_v3 = vpop.permute.xlu0 %3570 }
0x19ef   :  { %vm3575_vm2 = vcmp.eq.s32.totalorder %v6013_v21, %v3571_v3 }
0x19f0   :  { %v3577_v48 = vsel %vm3575_vm2, 1.0, %v5452_v4 }
0x19f5   :  { %v5428_v38 = vpop.eup %5427 }
0x19f6   :  { %v3544_v56 = vmul.f32 %v5428_v38, %v3536_v13 }
0x19f8   :  { %v3549_v51 = vmul.f32 %v3548_v39, %v3544_v56 }
0x19fa   :  { %v3554_v30 = vadd.f32 %v3553_v34, %v3549_v51 }
0x19fc   :  { %4989 = vmatprep.subr.mxu1 %v3554_v30 }
0x19fd   :  { %4990 = vmatpush3.msra.mxu1 %v3554_v30 }
0x19fe   :  { %4992 = vmatmul.mubr.msk.f32.vlgmr.msra.gmra.mrb[56].mxu1 %vm3579_vm13, %v3566_v42  ;;  %5263 = vmatprep.subr.msk.bf16.mxu1 %vm5262_vm3, %v6076_v20 }
0x19ff   :  { %5266 = vmatpush3.bf16.msk.msra.mxu1 %vm5262_vm3, %v6076_v20  ;;  %4998 = vmatprep.mubr.msk.f32.mxu1 %vm3661_vm4, %v3577_v48 }
0x1a00   :  { %5267 = vmatprep.subr.bf16.mxu1 %v5450_v1 }
0x1a02   :  { %4999 = vmatmul.mubr.msk.f32.vlgmr.msra.gmra.mrb[58].mxu1 %vm3661_vm4, %v3578_v7 }
0x1a03   :  { %5005 = vmatprep.mubr.msk.f32.mxu1 %vm5451_vm0, %v5452_v4 }
0x1ad1   :  { %v4993_v43 = vpop.f32.mrb[56].mxu1 }
0x1ad2   :  { %v3829_v9 = vmul.f32 %v4993_v43, %v4993_v43  ;;  %v4011_v46 = vmul.f32 %v4993_v43, %v4303_v58  ;;  %v3652_v57 = vpop.f32.mrb[57].mxu1 }
0x1ad3   :  { %v3828_v21 = vmul.f32 %v3652_v57, %v3652_v57  ;;  %v4010_v47 = vmul.f32 %v4303_v58, %v3652_v57 }
0x1ad5   :  { %v5272_v20 = vpack.c.bf16 %v3829_v9, %v3828_v21  ;;  %v5280_v40 = vpack.c.bf16 %v4011_v46, %v4010_v47  ;;  %v5000_v52 = vpop.f32.mrb[58].mxu1 }
0x1ad6   :  { %v3748_v5 = vmul.f32 %v5000_v52, %v4993_v43  ;;  %v3914_v19 = vmul.f32 %v5000_v52, %v5000_v52  ;;  %v3738_v59 = vpop.f32.mrb[59].mxu1 }
0x1ad7   :  { %v3747_v2 = vmul.f32 %v3738_v59, %v3652_v57  ;;  %v3913_v49 = vmul.f32 %v3738_v59, %v3738_v59 }
0x1ad9   :  { %v5268_v53 = vpack.c.bf16 %v3748_v5, %v3747_v2  ;;  %v5276_v36 = vpack.c.bf16 %v3914_v19, %v3913_v49 }
0x1adb   :  { %5270 = vmatpush3.bf16.xpose.msk.msra.mxu1 %vm6034_vm7, %v5268_v53  ;;  %5278 = vmatpush3.bf16.xpose.msk.msra.mxu0 %vm6034_vm7, %v5276_v36 }
0x1adc   :  { %5271 = vmatprep.subr.bf16.mxu1 %v5450_v1 }
0x1ae2   :  { %5006 = vmatmul.mubr.msk.f32.vlgmr.msra.gmra.mrb[60].mxu1 %vm664_vm5, %v5458_v61  ;;  %5020 = vmatmul.mubr.msk.f32.vlgmr.msra.gmra.mrb[66].mxu0 %vm664_vm5, %v5458_v61 }
0x1ae3   :  { %5274 = vmatpush3.bf16.xpose.msk.msra.mxu1 %vm6034_vm7, %v5272_v20  ;;  %5012 = vmatprep.mubr.msk.f32.mxu1 %vm5451_vm0, %v5452_v4 }
0x1ae4   :  { %5279 = vmatprep.subr.bf16.mxu1 %v5450_v1 }
0x1aea   :  { %5013 = vmatmul.mubr.msk.f32.vlgmr.msra.gmra.mrb[62].mxu1 %vm664_vm5, %v5458_v61 }
0x1aeb   :  { %5282 = vmatpush3.bf16.xpose.msk.msra.mxu1 %vm6034_vm7, %v5280_v40  ;;  %5026 = vmatprep.mubr.msk.f32.mxu1 %vm5451_vm0, %v5452_v4 }
0x1af2   :  { %5027 = vmatmul.mubr.msk.f32.vlgmr.msra.gmra.mrb[64].mxu1 %vm664_vm5, %v5458_v61 }
0x1bb5   :  { %v3824_v54 = vpop.f32.mrb[60].mxu1  ;;  %v3987_v60 = vpop.f32.mrb[66].mxu0 }
0x1bb6   :  { %v5007_v11 = vpop.f32.mrb[61].mxu1  ;;  %5429 = vrsqrt.f32 %v3987_v60  ;;  %v5021_v0 = vpop.f32.mrb[67].mxu0  ;;  %vm3993_vm12 = vcmp.eq.f32.partialorder %v3987_v60, inf  ;;  %v3996_v27 = vand.u32 2147483648, %v3987_v60  ;;  %vm3995_vm0 = vcmp.eq.f32.partialorder %v3987_v60, 0.0 }
0x1bbd   :  { %v3902_v63 = vpop.f32.mrb[62].mxu1 }
0x1bbe   :  { %5431 = vrsqrt.f32 %v3902_v63  ;;  %v5014_v62 = vpop.f32.mrb[63].mxu1  ;;  %vm3908_vm7 = vcmp.eq.f32.partialorder %v3902_v63, inf  ;;  %v3911_v4 = vand.u32 2147483648, %v3902_v63  ;;  %vm3910_vm5 = vcmp.eq.f32.partialorder %v3902_v63, 0.0 }
0x1bc0   :  { %v5430_v41 = vpop.eup %5429 }
0x1bc1   :  { %v3992_v1 = vmul.f32 %v5430_v41, %v3987_v60 }
0x1bc3   :  { %v3994_v55 = vsel %vm3993_vm12, %v3987_v60, %v3992_v1 }
0x1bc4   :  { %v3997_v12 = vsel %vm3995_vm0, %v3996_v27, %v3994_v55 }
0x1bc5   :  { %v4088_v14 = vpop.f32.mrb[64].mxu1  ;;  %v3999_v37 = vmax.f32 %v3997_v12, 1e-08 }
0x1bc6   :  { %v5028_v35 = vpop.f32.mrb[65].mxu1 }
0x1bc8   :  { %v5432_v26 = vpop.eup %5431 }
0x1bc9   :  { %v3907_v44 = vmul.f32 %v5432_v26, %v3902_v63 }
0x1bcb   :  { %v3909_v16 = vsel %vm3908_vm7, %v3902_v63, %v3907_v44 }
0x1bcc   :  { %v3912_v15 = vsel %vm3910_vm5, %v3911_v4, %v3909_v16 }
0x1bcd   :  { %v3998_v18 = vmax.f32 %v3912_v15, 1e-08 }
0x1bcf   :  { %v4000_v45 = vmul.f32 %v3999_v37, %v3998_v18 }
0x1bd1   :  { %5433 = vrcp.f32 %v4000_v45 }
0x1bdb   :  { %v5434_v50 = vpop.eup %5433 }
0x1bdc   :  { %v4002_v10 = vmul.f32 %v5434_v50, %v3824_v54 }
0x1bde   :  { %v4015_v23 = vmul.f32 %v4014_v22, %v4002_v10 }
0x1be0   :  { %v4089_v25 = vadd.f32 %v4088_v14, %v4015_v23 }
0x1be2   :  { %v4093_v13 = vadd.f32 %v4092_v33, %v4089_v25 }
0x1be4   :  { %4095 = vst.msk [vmem:[%s6520_s19] sm:$0x1] %vm4094_vm8, %v4093_v13 }
0x1be5   :  { %4100 = vsyncpa [#allocation3], 1 }

</bundles_post_ra>
